<compile_context>
chip_gen: v7x
topology: tpu7x:2x2x1
jax: 0.10.0
libtpu: 0.0.40
codegen_flags: <defaults>
</compile_context>

<pallas_src>
import functools

import jax
import jax.numpy as jnp
from jax.experimental import pallas as pl
from jax.experimental.pallas import tpu as pltpu

num_classes = {'CoLA': 2, 'SST-2': 2, 'MRPC': 2, 'QQP': 2,
               'MNLI': 3, 'QNLI': 2, 'RTE': 2}
task_types = {'CoLA': 'single', 'SST-2': 'single', 'MRPC': 'pair',
              'QQP': 'pair', 'MNLI': 'pair', 'QNLI': 'pair', 'RTE': 'pair'}


# ----------------------------------------------------------------------------
# Generation-aware compiler params / tiling helpers
# ----------------------------------------------------------------------------
def _derive_vmem_limit():
    # ~96 MiB on v5e/v6e (128 MiB physical), ~48 MiB on v7x (64 MiB physical).
    try:
        cap = int(pltpu.get_tpu_info().vmem_capacity_bytes)
        return min(cap * 3 // 4, 100 * 1024 * 1024)
    except Exception:
        return 32 * 1024 * 1024


_VMEM_LIMIT = _derive_vmem_limit()


def _cparams():
    # Every grid below is a single batch-parallel axis.
    return pltpu.CompilerParams(dimension_semantics=("parallel",),
                                vmem_limit_bytes=_VMEM_LIMIT)


_MXU_TARGET_ROWS = 256   # >=256 rows fills the v6e/v7x MXU; v5e needs >=128.


def _pick_batch_tile(B, target=_MXU_TARGET_ROWS):
    """Batch tile honoring the (8,128) sublane rule: the full batch, or a
    multiple of 8 that divides it, capped near `target`."""
    if B <= target:
        return B
    best = None
    for bb in range(8, target + 1, 8):
        if B % bb == 0:
            best = bb
    return best if best is not None else B


def _paired_batch_tile(half_B, target=_MXU_TARGET_ROWS):
    """Tile for the 'partner index_map' kernels reading a (T, 2B, .) slab whose
    halves are the two sentences.  The block is a strict sub-block of the batch
    axis so it must be a multiple of 8 that divides B; None -> not possible."""
    if half_B % 8 != 0:
        return None
    best = 8
    for bb in range(8, min(half_B, target) + 1, 8):
        if half_B % bb == 0:
            best = bb
    return best


# ----------------------------------------------------------------------------
# Kernel 1: fused bidirectional LSTM layer (time-major, both directions,
#           optionally multiple input streams with a row-split W_ih)
# ----------------------------------------------------------------------------
def _lstm_cell(pre, c_prev, H):
    # PyTorch gate order i, f, g, o.  Gate math kept in f32.
    # TODO(synk): on v6e/v7x the EUP supports packed bf16 — run the 5
    #             transcendentals per direction per step on bf16 inputs there.
    # TODO(synk): pad H to a multiple of 128 at production sizes so the gate
    #             slices and the fwd/bwd output halves are lane-aligned.
    i = jax.nn.sigmoid(pre[:, 0 * H:1 * H])
    f = jax.nn.sigmoid(pre[:, 1 * H:2 * H])
    g = jnp.tanh(pre[:, 2 * H:3 * H])
    o = jax.nn.sigmoid(pre[:, 3 * H:4 * H])
    c_new = f * c_prev + i * g
    h_new = o * jnp.tanh(c_new)
    return h_new, c_new


def _bilstm_kernel(*refs, n_inputs):
    # refs = x_0..x_{n-1}, wih_0..wih_{n-1}, whh_f, whh_b, b, out, xproj
    #   x_i:   (T, bb, D_i) bf16  time-major input stream
    #   wih_i: (D_i, 8H)    bf16  [fwd i,f,g,o | bwd i,f,g,o] (transposed)
    #   whh_*: (H, 4H)      bf16  hidden->gates per direction
    #   b:     (1, 8H)      f32   b_ih+b_hh, fwd | bwd
    #   out:   (T, bb, 2H)  bf16  [..., :H]=fwd, [..., H:]=bwd
    #   xproj: (T, bb, 8H)  bf16  VMEM scratch (batch-tiled, bf16 -> small)
    x_refs = refs[:n_inputs]
    wih_refs = refs[n_inputs:2 * n_inputs]
    whh_f_ref, whh_b_ref, b_ref, out_ref, xproj_ref = refs[2 * n_inputs:]

    T, bb, _ = out_ref.shape
    H = whh_f_ref.shape[0]
    out_dt = out_ref.dtype

    # (1) Hoisted input projection for all timesteps and both directions —
    #     off the recurrence critical path.  Multiple input streams implement
    #     a fused concat ([lstm_out | context]) without materializing it.
    wih_vals = [wr[...] for wr in wih_refs]            # bf16, loaded once
    bias = b_ref[...]                                  # (1, 8H) f32
    for t in range(T):
        acc = bias
        for xr, wv in zip(x_refs, wih_vals):
            acc = acc + jnp.dot(xr[t], wv, preferred_element_type=jnp.float32)
        xproj_ref[t] = acc.astype(xproj_ref.dtype)

    whh_f = whh_f_ref[...]
    whh_b = whh_b_ref[...]

    h_f = jnp.zeros((bb, H), jnp.float32)
    c_f = jnp.zeros((bb, H), jnp.float32)
    h_b = jnp.zeros((bb, H), jnp.float32)
    c_b = jnp.zeros((bb, H), jnp.float32)

    # (2) Fused fwd/bwd recurrence.  Per-timestep stores keep only the current
    #     (bb, H) tiles live (no end-of-loop stack/concatenate mega-store).
    # TODO(synk): switch to lax.fori_loop + pl.ds for very long T to bound
    #             compile time (T is small & static here).
    for t in range(T):
        tb = T - 1 - t
        pre_f = (xproj_ref[t, :, 0:4 * H].astype(jnp.float32) +
                 jnp.dot(h_f.astype(jnp.bfloat16), whh_f,
                         preferred_element_type=jnp.float32))
        pre_b = (xproj_ref[tb, :, 4 * H:8 * H].astype(jnp.float32) +
                 jnp.dot(h_b.astype(jnp.bfloat16), whh_b,
                         preferred_element_type=jnp.float32))
        h_f, c_f = _lstm_cell(pre_f, c_f, H)
        h_b, c_b = _lstm_cell(pre_b, c_b, H)
        out_ref[t, :, 0:H] = h_f.astype(out_dt)
        out_ref[tb, :, H:2 * H] = h_b.astype(out_dt)


def bilstm_layer(xs, layer_params):
    """xs: tuple of time-major (T, B, D_i) bf16 arrays -> (T, B, 2H) bf16."""
    wihs, whh_f, whh_b, b = layer_params
    assert len(xs) == len(wihs)
    T, B, _ = xs[0].shape
    H = whh_f.shape[0]
    bb = _pick_batch_tile(B)

    x_specs = [pl.BlockSpec((T, bb, int(x.shape[2])), lambda i: (0, i, 0))
               for x in xs]
    w_specs = ([pl.BlockSpec(w.shape, lambda i: (0, 0)) for w in wihs] +
               [pl.BlockSpec(whh_f.shape, lambda i: (0, 0)),
                pl.BlockSpec(whh_b.shape, lambda i: (0, 0)),
                pl.BlockSpec(b.shape, lambda i: (0, 0))])

    return pl.pallas_call(
        functools.partial(_bilstm_kernel, n_inputs=len(xs)),
        out_shape=jax.ShapeDtypeStruct((T, B, 2 * H), jnp.bfloat16),
        grid=(B // bb,),
        in_specs=x_specs + w_specs,
        out_specs=pl.BlockSpec((T, bb, 2 * H), lambda i: (0, i, 0)),
        scratch_shapes=[pltpu.VMEM((T, bb, 8 * H), jnp.bfloat16)],
        compiler_params=_cparams(),
    )(*xs, *wihs, whh_f, whh_b, b)


def run_stacked_bilstm(x, layers):
    h = x
    for lp in layers:
        h = bilstm_layer((h,), lp)
    return h


def run_bilstm_dual(xa, xb, layers):
    """First layer consumes (xa, xb) with a row-split W_ih (fused concat)."""
    h = bilstm_layer((xa, xb), layers[0])
    for lp in layers[1:]:
        h = bilstm_layer((h,), lp)
    return h


# ----------------------------------------------------------------------------
# Kernel 2: cross-attention contexts (time-major, batch-gridded)
# ----------------------------------------------------------------------------
def _attention_ctx_kernel(q_ref, k_ref, ctx_ref):
    # q_ref: (Tq, bb, D), k_ref: (Tk, bb, D) time-major bf16 blocks.
    # ctx[q] = softmax_k(q . k) @ k  per batch element (raw scores, no scaling
    # or mask — matches the PyTorch module).
    # TODO(synk): online-softmax over Tk tiles for very long sequences so the
    #             (bb, Tq, Tk) score block never has to fit VMEM whole.
    q = pltpu.einshape("tbd->btd", q_ref[...])                   # (bb, Tq, D)
    k = pltpu.einshape("tbd->btd", k_ref[...])                   # (bb, Tk, D)
    s = jnp.einsum('bqd,bkd->bqk', q, k, preferred_element_type=jnp.float32)
    w = jax.nn.softmax(s, axis=-1).astype(jnp.bfloat16)          # softmax in f32
    ctx = jnp.einsum('bqk,bkd->bqd', w, k, preferred_element_type=jnp.float32)
    ctx_ref[...] = pltpu.einshape("btd->tbd", ctx.astype(ctx_ref.dtype))


def cross_context(lq, lk):
    """General path (supports T1 != T2): contexts for lq attending over lk."""
    Tq, B, D = lq.shape
    Tk = lk.shape[0]
    bb = _pick_batch_tile(B)
    return pl.pallas_call(
        _attention_ctx_kernel,
        out_shape=jax.ShapeDtypeStruct((Tq, B, D), jnp.bfloat16),
        grid=(B // bb,),
        in_specs=[pl.BlockSpec((Tq, bb, D), lambda i: (0, i, 0)),
                  pl.BlockSpec((Tk, bb, D), lambda i: (0, i, 0))],
        out_specs=pl.BlockSpec((Tq, bb, D), lambda i: (0, i, 0)),
        compiler_params=_cparams(),
    )(lq, lk)


def paired_attention_contexts(lstm_out, half_B, bb):
    """lstm_out: (T, 2B, D) with sentence 1 in [:, :B] and sentence 2 in
    [:, B:].  One launch computes both cross-attention contexts by pairing
    each query block with its partner block half_B rows away."""
    T, B2, D = lstm_out.shape
    nb = B2 // bb
    half = half_B // bb
    q_map = lambda i: (0, i, 0)
    k_map = lambda i: (0, (i + half) % nb, 0)
    return pl.pallas_call(
        _attention_ctx_kernel,
        out_shape=jax.ShapeDtypeStruct((T, B2, D), jnp.bfloat16),
        grid=(nb,),
        in_specs=[pl.BlockSpec((T, bb, D), q_map),
                  pl.BlockSpec((T, bb, D), k_map)],
        out_specs=pl.BlockSpec((T, bb, D), q_map),
        compiler_params=_cparams(),
    )(lstm_out, lstm_out)


# ----------------------------------------------------------------------------
# Kernels 3a/3b: classifier heads (max-pool over time + Linear/Tanh/Linear)
# ----------------------------------------------------------------------------
def _single_head_kernel(e_ref, w1_ref, b1_ref, w2_ref, b2_ref, out_ref):
    pooled = jnp.max(e_ref[...], axis=0)                         # (bb, 2H) bf16
    h = jnp.tanh(jnp.dot(pooled, w1_ref[...],
                         preferred_element_type=jnp.float32) + b1_ref[...])
    out_ref[...] = (jnp.dot(h.astype(jnp.bfloat16), w2_ref[...],
                            preferred_element_type=jnp.float32) + b2_ref[...])


def _pair_head_kernel(e1_ref, e2_ref, w1_ref, b1_ref, w2_ref, b2_ref, out_ref):
    u = jnp.max(e1_ref[...], axis=0).astype(jnp.float32)
    v = jnp.max(e2_ref[...], axis=0).astype(jnp.float32)
    feats = jnp.concatenate([u, v, jnp.abs(u - v), u * v], axis=-1)  # (bb, 8H)
    h = jnp.tanh(jnp.dot(feats.astype(jnp.bfloat16), w1_ref[...],
                         preferred_element_type=jnp.float32) + b1_ref[...])
    out_ref[...] = (jnp.dot(h.astype(jnp.bfloat16), w2_ref[...],
                            preferred_element_type=jnp.float32) + b2_ref[...])


def _head_weight_specs(w1, b1, w2, b2):
    return [pl.BlockSpec(w1.shape, lambda i: (0, 0)),
            pl.BlockSpec(b1.shape, lambda i: (0, 0)),
            pl.BlockSpec(w2.shape, lambda i: (0, 0)),
            pl.BlockSpec(b2.shape, lambda i: (0, 0))]


def single_head(enc, head_params):
    (w1, b1), (w2, b2) = head_params
    T, B, D = enc.shape
    n_cls = w2.shape[1]
    bb = _pick_batch_tile(B)
    return pl.pallas_call(
        _single_head_kernel,
        out_shape=jax.ShapeDtypeStruct((B, n_cls), jnp.float32),
        grid=(B // bb,),
        in_specs=[pl.BlockSpec((T, bb, D), lambda i: (0, i, 0))]
                 + _head_weight_specs(w1, b1, w2, b2),
        out_specs=pl.BlockSpec((bb, n_cls), lambda i: (i, 0)),
        compiler_params=_cparams(),
    )(enc, w1, b1, w2, b2)


def pair_head(enc1, enc2, head_params):
    (w1, b1), (w2, b2) = head_params
    T1, B, D = enc1.shape
    T2 = enc2.shape[0]
    n_cls = w2.shape[1]
    bb = _pick_batch_tile(B)
    return pl.pallas_call(
        _pair_head_kernel,
        out_shape=jax.ShapeDtypeStruct((B, n_cls), jnp.float32),
        grid=(B // bb,),
        in_specs=[pl.BlockSpec((T1, bb, D), lambda i: (0, i, 0)),
                  pl.BlockSpec((T2, bb, D), lambda i: (0, i, 0))]
                 + _head_weight_specs(w1, b1, w2, b2),
        out_specs=pl.BlockSpec((bb, n_cls), lambda i: (i, 0)),
        compiler_params=_cparams(),
    )(enc1, enc2, w1, b1, w2, b2)


def pair_head_combined(enc_all, half_B, bb, head_params):
    """enc_all: (T, 2B, D), two sentences stacked on the batch axis; both
    halves are read via two BlockSpec views on the same array (no host slice)."""
    (w1, b1), (w2, b2) = head_params
    T, _, D = enc_all.shape
    n_cls = w2.shape[1]
    half = half_B // bb
    return pl.pallas_call(
        _pair_head_kernel,
        out_shape=jax.ShapeDtypeStruct((half_B, n_cls), jnp.float32),
        grid=(half,),
        in_specs=[pl.BlockSpec((T, bb, D), lambda i: (0, i, 0)),
                  pl.BlockSpec((T, bb, D), lambda i: (0, i + half, 0))]
                 + _head_weight_specs(w1, b1, w2, b2),
        out_specs=pl.BlockSpec((bb, n_cls), lambda i: (i, 0)),
        compiler_params=_cparams(),
    )(enc_all, enc_all, w1, b1, w2, b2)


# ----------------------------------------------------------------------------
# Parameter initialization (deterministic, PyTorch-style uniform(-k, k))
# ----------------------------------------------------------------------------
def _uniform(key, shape, k):
    return jax.random.uniform(key, shape, jnp.float32, minval=-k, maxval=k)


def _init_lstm_direction(key, input_size, hidden_size):
    k = 1.0 / (hidden_size ** 0.5)
    k1, k2, k3, k4 = jax.random.split(key, 4)
    wih_t = _uniform(k1, (input_size, 4 * hidden_size), k)        # (D, 4H)
    whh_t = _uniform(k2, (hidden_size, 4 * hidden_size), k)       # (H, 4H)
    b = (_uniform(k3, (4 * hidden_size,), k) +
         _uniform(k4, (4 * hidden_size,), k)).reshape(1, 4 * hidden_size)
    return wih_t, whh_t, b


def init_bilstm_layer(key, input_size, hidden_size, split_sizes=None):
    kf, kb = jax.random.split(key)
    wih_f, whh_f, b_f = _init_lstm_direction(kf, input_size, hidden_size)
    wih_b, whh_b, b_b = _init_lstm_direction(kb, input_size, hidden_size)
    wih = jnp.concatenate([wih_f, wih_b], axis=1).astype(jnp.bfloat16)  # (D, 8H)
    b = jnp.concatenate([b_f, b_b], axis=1)                             # (1, 8H)
    if split_sizes is None:
        wihs = (wih,)
    else:  # row-split W_ih so [x | ctx] never has to be concatenated in HBM
        offs, acc = [], 0
        for s in split_sizes[:-1]:
            acc += s
            offs.append(acc)
        wihs = tuple(jnp.split(wih, offs, axis=0))
    return (wihs, whh_f.astype(jnp.bfloat16), whh_b.astype(jnp.bfloat16), b)


def init_stacked_bilstm(key, input_size, hidden_size, num_layers):
    layers, in_sz = [], input_size
    for _ in range(num_layers):
        key, kl = jax.random.split(key)
        layers.append(init_bilstm_layer(kl, in_sz, hidden_size))
        in_sz = 2 * hidden_size
    return layers


def init_linear(key, in_dim, out_dim):
    k = 1.0 / (in_dim ** 0.5)
    k1, k2 = jax.random.split(key)
    w_t = _uniform(k1, (in_dim, out_dim), k).astype(jnp.bfloat16)  # transposed
    b = _uniform(k2, (out_dim,), k).reshape(1, out_dim)
    return w_t, b


def init_model(key, embedding_dim, hidden_size):
    key, k_bi, k_pair = jax.random.split(key, 3)
    params = {
        'bilstm': init_stacked_bilstm(k_bi, embedding_dim, hidden_size, 2),
        'bilstm_pair': [init_bilstm_layer(
            k_pair, 4 * hidden_size, hidden_size,
            split_sizes=(2 * hidden_size, 2 * hidden_size))],
        'classifiers': {},
    }
    for task, n_cls in num_classes.items():
        key, k1, k2 = jax.random.split(key, 3)
        in_dim = hidden_size * 8 if task_types[task] == 'pair' else hidden_size * 2
        params['classifiers'][task] = (init_linear(k1, in_dim, 512),
                                       init_linear(k2, 512, n_cls))
    return params


# ----------------------------------------------------------------------------
# Forward pass (mirrors MultiTaskBiLSTM.forward; dropout = identity)
# ----------------------------------------------------------------------------
@functools.partial(jax.jit, static_argnums=(1,))
def forward(params, task, embeddings1, embeddings2=None):
    if task not in task_types:
        raise ValueError(f'Unknown task: {task}')
    head = params['classifiers'][task]

    if task_types[task] == 'single':
        e1_tm = jnp.transpose(embeddings1.astype(jnp.bfloat16), (1, 0, 2))
        enc = run_stacked_bilstm(e1_tm, params['bilstm'])
        return single_head(enc, head)

    if embeddings2 is None:
        raise ValueError(f'Embeddings2 must be provided for task {task}.')

    if embeddings1.shape == embeddings2.shape:
        # Fast path: stack the two sentences on the batch axis so the BiLSTM
        # stack and the pair encoder each run once on 2B rows.
        B = embeddings1.shape[0]
        x = jnp.transpose(
            jnp.concatenate([embeddings1, embeddings2], axis=0)
            .astype(jnp.bfloat16), (1, 0, 2))                      # (T, 2B, E)
        lstm_out = run_stacked_bilstm(x, params['bilstm'])          # (T, 2B, 2H)

        bb_pair = _paired_batch_tile(B)
        if bb_pair is not None:
            ctx = paired_attention_contexts(lstm_out, B, bb_pair)
        else:
            # Batch too small / misaligned for the partner-index_map trick.
            l1, l2 = lstm_out[:, :B], lstm_out[:, B:]
            ctx = jnp.concatenate([cross_context(l1, l2),
                                   cross_context(l2, l1)], axis=1)

        enc = run_bilstm_dual(lstm_out, ctx, params['bilstm_pair'])  # (T, 2B, 2H)
        if bb_pair is not None:
            return pair_head_combined(enc, B, bb_pair, head)
        return pair_head(enc[:, :B], enc[:, B:], head)

    # General path (different sequence lengths for the two sentences).
    e1_tm = jnp.transpose(embeddings1.astype(jnp.bfloat16), (1, 0, 2))
    e2_tm = jnp.transpose(embeddings2.astype(jnp.bfloat16), (1, 0, 2))
    l1 = run_stacked_bilstm(e1_tm, params['bilstm'])
    l2 = run_stacked_bilstm(e2_tm, params['bilstm'])
    ctx1 = cross_context(l1, l2)
    ctx2 = cross_context(l2, l1)
    enc1 = run_bilstm_dual(l1, ctx1, params['bilstm_pair'])
    enc2 = run_bilstm_dual(l2, ctx2, params['bilstm_pair'])
    return pair_head(enc1, enc2, head)


# ----------------------------------------------------------------------------
if __name__ == "__main__":
    B, T, EMB, HID = 2, 8, 16, 32

    key = jax.random.PRNGKey(0)
    k_params, k_e1, k_e2, k_e3, k_e4 = jax.random.split(key, 5)
    params = init_model(k_params, EMB, HID)

    embeddings1 = jax.random.normal(k_e1, (B, T, EMB), jnp.float32)
    embeddings2 = jax.random.normal(k_e2, (B, T, EMB), jnp.float32)

    # single-sentence task (T3 head)
    out_single = jax.block_until_ready(forward(params, 'SST-2', embeddings1))
    assert out_single.shape == (B, num_classes['SST-2'])
    assert bool(jnp.all(jnp.isfinite(out_single)))

    # sentence-pair task (T2 head; small batch -> host-slice attention path)
    out_pair = jax.block_until_ready(
        forward(params, 'MNLI', embeddings1, embeddings2))
    assert out_pair.shape == (B, num_classes['MNLI'])
    assert bool(jnp.all(jnp.isfinite(out_pair)))

    # sentence-pair task with batch >= 8 to exercise the batched
    # partner-index_map attention + combined pair-head fast path.
    B8 = 8
    e1b = jax.random.normal(k_e3, (B8, T, EMB), jnp.float32)
    e2b = jax.random.normal(k_e4, (B8, T, EMB), jnp.float32)
    out_pair8 = jax.block_until_ready(forward(params, 'QQP', e1b, e2b))
    assert out_pair8.shape == (B8, num_classes['QQP'])
    assert bool(jnp.all(jnp.isfinite(out_pair8)))

    print("KERNEL_OK")
</pallas_src>

<mosaic_0001>
module attributes {stable_mosaic.version = 11 : i64} {
  func.func @_bilstm_kernel(%arg0: i32, %arg1: memref<8x2x64xbf16, #tpu.memory_space<vmem>>, %arg2: memref<64x256xbf16, #tpu.memory_space<vmem>>, %arg3: memref<32x128xbf16, #tpu.memory_space<vmem>>, %arg4: memref<32x128xbf16, #tpu.memory_space<vmem>>, %arg5: memref<1x256xf32, #tpu.memory_space<vmem>>, %arg6: memref<8x2x64xbf16, #tpu.memory_space<vmem>>, %arg7: memref<8x2x256xbf16, #tpu.memory_space<vmem>>) attributes {dimension_semantics = [#tpu.dimension_semantics<parallel>], iteration_bounds = array<i64: 1>, scalar_prefetch = 0 : i64, scratch_operands = 1 : i64, tpu.core_type = #tpu.core_type<tc>, window_params = [{transform_indices = @transform_0, window_bounds = array<i64: 8, 2, 64>}, {pipeline_mode = #tpu.pipeline_mode<synchronous>, transform_indices = @transform_1, window_bounds = array<i64: 64, 256>}, {pipeline_mode = #tpu.pipeline_mode<synchronous>, transform_indices = @transform_2, window_bounds = array<i64: 32, 128>}, {pipeline_mode = #tpu.pipeline_mode<synchronous>, transform_indices = @transform_3, window_bounds = array<i64: 32, 128>}, {pipeline_mode = #tpu.pipeline_mode<synchronous>, transform_indices = @transform_4, window_bounds = array<i64: 1, 256>}, {transform_indices = @transform_5, window_bounds = array<i64: 8, 2, 64>}]} {
    %c0 = arith.constant 0 : index
    %c0_0 = arith.constant 0 : index
    %0 = vector.load %arg2[%c0, %c0_0] : memref<64x256xbf16, #tpu.memory_space<vmem>>, vector<64x256xbf16>
    %c0_1 = arith.constant 0 : index
    %c0_2 = arith.constant 0 : index
    %1 = vector.load %arg5[%c0_1, %c0_2] : memref<1x256xf32, #tpu.memory_space<vmem>>, vector<1x256xf32>
    %c0_3 = arith.constant 0 : index
    %c0_4 = arith.constant 0 : index
    %c0_5 = arith.constant 0 : index
    %2 = vector.load %arg1[%c0_3, %c0_4, %c0_5] : memref<8x2x64xbf16, #tpu.memory_space<vmem>>, vector<1x2x64xbf16>
    %3 = vector.shape_cast %2 : vector<1x2x64xbf16> to vector<2x64xbf16>
    %cst = arith.constant dense<0.000000e+00> : vector<2x256xf32>
    %4 = tpu.matmul %3, %0, %cst {dimension_numbers = #tpu.dot_dimension_numbers<[1], [0], [0], [1], [0, 0, 1, 1], [], []>} : vector<2x64xbf16>, vector<64x256xbf16>, vector<2x256xf32> -> vector<2x256xf32>
    %5 = vector.broadcast %1 : vector<1x256xf32> to vector<2x256xf32>
    %6 = arith.addf %5, %4 : vector<2x256xf32>
    %7 = arith.truncf %6 : vector<2x256xf32> to vector<2x256xbf16>
    %c0_6 = arith.constant 0 : index
    %c0_7 = arith.constant 0 : index
    %c0_8 = arith.constant 0 : index
    %8 = vector.load %arg7[%c0_6, %c0_7, %c0_8] : memref<8x2x256xbf16, #tpu.memory_space<vmem>>, vector<1x2x256xbf16>
    %9 = vector.shape_cast %8 : vector<1x2x256xbf16> to vector<2x256xbf16>
    %10 = vector.shape_cast %7 : vector<2x256xbf16> to vector<1x2x256xbf16>
    tpu.vector_store %arg7[%c0_6, %c0_7, %c0_8], %10 {strides = array<i32>} : memref<8x2x256xbf16, #tpu.memory_space<vmem>>, vector<1x2x256xbf16>,
    %c1 = arith.constant 1 : index
    %c0_9 = arith.constant 0 : index
    %c0_10 = arith.constant 0 : index
    %11 = vector.load %arg1[%c1, %c0_9, %c0_10] : memref<8x2x64xbf16, #tpu.memory_space<vmem>>, vector<1x2x64xbf16>
    %12 = vector.shape_cast %11 : vector<1x2x64xbf16> to vector<2x64xbf16>
    %cst_11 = arith.constant dense<0.000000e+00> : vector<2x256xf32>
    %13 = tpu.matmul %12, %0, %cst_11 {dimension_numbers = #tpu.dot_dimension_numbers<[1], [0], [0], [1], [0, 0, 1, 1], [], []>} : vector<2x64xbf16>, vector<64x256xbf16>, vector<2x256xf32> -> vector<2x256xf32>
    %14 = vector.broadcast %1 : vector<1x256xf32> to vector<2x256xf32>
    %15 = arith.addf %14, %13 : vector<2x256xf32>
    %16 = arith.truncf %15 : vector<2x256xf32> to vector<2x256xbf16>
    %c1_12 = arith.constant 1 : index
    %c0_13 = arith.constant 0 : index
    %c0_14 = arith.constant 0 : index
    %17 = vector.load %arg7[%c1_12, %c0_13, %c0_14] : memref<8x2x256xbf16, #tpu.memory_space<vmem>>, vector<1x2x256xbf16>
    %18 = vector.shape_cast %17 : vector<1x2x256xbf16> to vector<2x256xbf16>
    %19 = vector.shape_cast %16 : vector<2x256xbf16> to vector<1x2x256xbf16>
    tpu.vector_store %arg7[%c1_12, %c0_13, %c0_14], %19 {strides = array<i32>} : memref<8x2x256xbf16, #tpu.memory_space<vmem>>, vector<1x2x256xbf16>,
    %c2 = arith.constant 2 : index
    %c0_15 = arith.constant 0 : index
    %c0_16 = arith.constant 0 : index
    %20 = vector.load %arg1[%c2, %c0_15, %c0_16] : memref<8x2x64xbf16, #tpu.memory_space<vmem>>, vector<1x2x64xbf16>
    %21 = vector.shape_cast %20 : vector<1x2x64xbf16> to vector<2x64xbf16>
    %cst_17 = arith.constant dense<0.000000e+00> : vector<2x256xf32>
    %22 = tpu.matmul %21, %0, %cst_17 {dimension_numbers = #tpu.dot_dimension_numbers<[1], [0], [0], [1], [0, 0, 1, 1], [], []>} : vector<2x64xbf16>, vector<64x256xbf16>, vector<2x256xf32> -> vector<2x256xf32>
    %23 = vector.broadcast %1 : vector<1x256xf32> to vector<2x256xf32>
    %24 = arith.addf %23, %22 : vector<2x256xf32>
    %25 = arith.truncf %24 : vector<2x256xf32> to vector<2x256xbf16>
    %c2_18 = arith.constant 2 : index
    %c0_19 = arith.constant 0 : index
    %c0_20 = arith.constant 0 : index
    %26 = vector.load %arg7[%c2_18, %c0_19, %c0_20] : memref<8x2x256xbf16, #tpu.memory_space<vmem>>, vector<1x2x256xbf16>
    %27 = vector.shape_cast %26 : vector<1x2x256xbf16> to vector<2x256xbf16>
    %28 = vector.shape_cast %25 : vector<2x256xbf16> to vector<1x2x256xbf16>
    tpu.vector_store %arg7[%c2_18, %c0_19, %c0_20], %28 {strides = array<i32>} : memref<8x2x256xbf16, #tpu.memory_space<vmem>>, vector<1x2x256xbf16>,
    %c3 = arith.constant 3 : index
    %c0_21 = arith.constant 0 : index
    %c0_22 = arith.constant 0 : index
    %29 = vector.load %arg1[%c3, %c0_21, %c0_22] : memref<8x2x64xbf16, #tpu.memory_space<vmem>>, vector<1x2x64xbf16>
    %30 = vector.shape_cast %29 : vector<1x2x64xbf16> to vector<2x64xbf16>
    %cst_23 = arith.constant dense<0.000000e+00> : vector<2x256xf32>
    %31 = tpu.matmul %30, %0, %cst_23 {dimension_numbers = #tpu.dot_dimension_numbers<[1], [0], [0], [1], [0, 0, 1, 1], [], []>} : vector<2x64xbf16>, vector<64x256xbf16>, vector<2x256xf32> -> vector<2x256xf32>
    %32 = vector.broadcast %1 : vector<1x256xf32> to vector<2x256xf32>
    %33 = arith.addf %32, %31 : vector<2x256xf32>
    %34 = arith.truncf %33 : vector<2x256xf32> to vector<2x256xbf16>
    %c3_24 = arith.constant 3 : index
    %c0_25 = arith.constant 0 : index
    %c0_26 = arith.constant 0 : index
    %35 = vector.load %arg7[%c3_24, %c0_25, %c0_26] : memref<8x2x256xbf16, #tpu.memory_space<vmem>>, vector<1x2x256xbf16>
    %36 = vector.shape_cast %35 : vector<1x2x256xbf16> to vector<2x256xbf16>
    %37 = vector.shape_cast %34 : vector<2x256xbf16> to vector<1x2x256xbf16>
    tpu.vector_store %arg7[%c3_24, %c0_25, %c0_26], %37 {strides = array<i32>} : memref<8x2x256xbf16, #tpu.memory_space<vmem>>, vector<1x2x256xbf16>,
    %c4 = arith.constant 4 : index
    %c0_27 = arith.constant 0 : index
    %c0_28 = arith.constant 0 : index
    %38 = vector.load %arg1[%c4, %c0_27, %c0_28] : memref<8x2x64xbf16, #tpu.memory_space<vmem>>, vector<1x2x64xbf16>
    %39 = vector.shape_cast %38 : vector<1x2x64xbf16> to vector<2x64xbf16>
    %cst_29 = arith.constant dense<0.000000e+00> : vector<2x256xf32>
    %40 = tpu.matmul %39, %0, %cst_29 {dimension_numbers = #tpu.dot_dimension_numbers<[1], [0], [0], [1], [0, 0, 1, 1], [], []>} : vector<2x64xbf16>, vector<64x256xbf16>, vector<2x256xf32> -> vector<2x256xf32>
    %41 = vector.broadcast %1 : vector<1x256xf32> to vector<2x256xf32>
    %42 = arith.addf %41, %40 : vector<2x256xf32>
    %43 = arith.truncf %42 : vector<2x256xf32> to vector<2x256xbf16>
    %c4_30 = arith.constant 4 : index
    %c0_31 = arith.constant 0 : index
    %c0_32 = arith.constant 0 : index
    %44 = vector.load %arg7[%c4_30, %c0_31, %c0_32] : memref<8x2x256xbf16, #tpu.memory_space<vmem>>, vector<1x2x256xbf16>
    %45 = vector.shape_cast %44 : vector<1x2x256xbf16> to vector<2x256xbf16>
    %46 = vector.shape_cast %43 : vector<2x256xbf16> to vector<1x2x256xbf16>
    tpu.vector_store %arg7[%c4_30, %c0_31, %c0_32], %46 {strides = array<i32>} : memref<8x2x256xbf16, #tpu.memory_space<vmem>>, vector<1x2x256xbf16>,
    %c5 = arith.constant 5 : index
    %c0_33 = arith.constant 0 : index
    %c0_34 = arith.constant 0 : index
    %47 = vector.load %arg1[%c5, %c0_33, %c0_34] : memref<8x2x64xbf16, #tpu.memory_space<vmem>>, vector<1x2x64xbf16>
    %48 = vector.shape_cast %47 : vector<1x2x64xbf16> to vector<2x64xbf16>
    %cst_35 = arith.constant dense<0.000000e+00> : vector<2x256xf32>
    %49 = tpu.matmul %48, %0, %cst_35 {dimension_numbers = #tpu.dot_dimension_numbers<[1], [0], [0], [1], [0, 0, 1, 1], [], []>} : vector<2x64xbf16>, vector<64x256xbf16>, vector<2x256xf32> -> vector<2x256xf32>
    %50 = vector.broadcast %1 : vector<1x256xf32> to vector<2x256xf32>
    %51 = arith.addf %50, %49 : vector<2x256xf32>
    %52 = arith.truncf %51 : vector<2x256xf32> to vector<2x256xbf16>
    %c5_36 = arith.constant 5 : index
    %c0_37 = arith.constant 0 : index
    %c0_38 = arith.constant 0 : index
    %53 = vector.load %arg7[%c5_36, %c0_37, %c0_38] : memref<8x2x256xbf16, #tpu.memory_space<vmem>>, vector<1x2x256xbf16>
    %54 = vector.shape_cast %53 : vector<1x2x256xbf16> to vector<2x256xbf16>
    %55 = vector.shape_cast %52 : vector<2x256xbf16> to vector<1x2x256xbf16>
    tpu.vector_store %arg7[%c5_36, %c0_37, %c0_38], %55 {strides = array<i32>} : memref<8x2x256xbf16, #tpu.memory_space<vmem>>, vector<1x2x256xbf16>,
    %c6 = arith.constant 6 : index
    %c0_39 = arith.constant 0 : index
    %c0_40 = arith.constant 0 : index
    %56 = vector.load %arg1[%c6, %c0_39, %c0_40] : memref<8x2x64xbf16, #tpu.memory_space<vmem>>, vector<1x2x64xbf16>
    %57 = vector.shape_cast %56 : vector<1x2x64xbf16> to vector<2x64xbf16>
    %cst_41 = arith.constant dense<0.000000e+00> : vector<2x256xf32>
    %58 = tpu.matmul %57, %0, %cst_41 {dimension_numbers = #tpu.dot_dimension_numbers<[1], [0], [0], [1], [0, 0, 1, 1], [], []>} : vector<2x64xbf16>, vector<64x256xbf16>, vector<2x256xf32> -> vector<2x256xf32>
    %59 = vector.broadcast %1 : vector<1x256xf32> to vector<2x256xf32>
    %60 = arith.addf %59, %58 : vector<2x256xf32>
    %61 = arith.truncf %60 : vector<2x256xf32> to vector<2x256xbf16>
    %c6_42 = arith.constant 6 : index
    %c0_43 = arith.constant 0 : index
    %c0_44 = arith.constant 0 : index
    %62 = vector.load %arg7[%c6_42, %c0_43, %c0_44] : memref<8x2x256xbf16, #tpu.memory_space<vmem>>, vector<1x2x256xbf16>
    %63 = vector.shape_cast %62 : vector<1x2x256xbf16> to vector<2x256xbf16>
    %64 = vector.shape_cast %61 : vector<2x256xbf16> to vector<1x2x256xbf16>
    tpu.vector_store %arg7[%c6_42, %c0_43, %c0_44], %64 {strides = array<i32>} : memref<8x2x256xbf16, #tpu.memory_space<vmem>>, vector<1x2x256xbf16>,
    %c7 = arith.constant 7 : index
    %c0_45 = arith.constant 0 : index
    %c0_46 = arith.constant 0 : index
    %65 = vector.load %arg1[%c7, %c0_45, %c0_46] : memref<8x2x64xbf16, #tpu.memory_space<vmem>>, vector<1x2x64xbf16>
    %66 = vector.shape_cast %65 : vector<1x2x64xbf16> to vector<2x64xbf16>
    %cst_47 = arith.constant dense<0.000000e+00> : vector<2x256xf32>
    %67 = tpu.matmul %66, %0, %cst_47 {dimension_numbers = #tpu.dot_dimension_numbers<[1], [0], [0], [1], [0, 0, 1, 1], [], []>} : vector<2x64xbf16>, vector<64x256xbf16>, vector<2x256xf32> -> vector<2x256xf32>
    %68 = vector.broadcast %1 : vector<1x256xf32> to vector<2x256xf32>
    %69 = arith.addf %68, %67 : vector<2x256xf32>
    %70 = arith.truncf %69 : vector<2x256xf32> to vector<2x256xbf16>
    %c7_48 = arith.constant 7 : index
    %c0_49 = arith.constant 0 : index
    %c0_50 = arith.constant 0 : index
    %71 = vector.load %arg7[%c7_48, %c0_49, %c0_50] : memref<8x2x256xbf16, #tpu.memory_space<vmem>>, vector<1x2x256xbf16>
    %72 = vector.shape_cast %71 : vector<1x2x256xbf16> to vector<2x256xbf16>
    %73 = vector.shape_cast %70 : vector<2x256xbf16> to vector<1x2x256xbf16>
    tpu.vector_store %arg7[%c7_48, %c0_49, %c0_50], %73 {strides = array<i32>} : memref<8x2x256xbf16, #tpu.memory_space<vmem>>, vector<1x2x256xbf16>,
    %c0_51 = arith.constant 0 : index
    %c0_52 = arith.constant 0 : index
    %74 = vector.load %arg3[%c0_51, %c0_52] : memref<32x128xbf16, #tpu.memory_space<vmem>>, vector<32x128xbf16>
    %c0_53 = arith.constant 0 : index
    %c0_54 = arith.constant 0 : index
    %75 = vector.load %arg4[%c0_53, %c0_54] : memref<32x128xbf16, #tpu.memory_space<vmem>>, vector<32x128xbf16>
    %cst_55 = arith.constant 0.000000e+00 : f32
    %76 = vector.broadcast %cst_55 : f32 to vector<2x32xf32>
    %cst_56 = arith.constant 0.000000e+00 : f32
    %77 = vector.broadcast %cst_56 : f32 to vector<2x32xf32>
    %cst_57 = arith.constant 0.000000e+00 : f32
    %78 = vector.broadcast %cst_57 : f32 to vector<2x32xf32>
    %cst_58 = arith.constant 0.000000e+00 : f32
    %79 = vector.broadcast %cst_58 : f32 to vector<2x32xf32>
    %c0_59 = arith.constant 0 : index
    %c0_60 = arith.constant 0 : index
    %c0_61 = arith.constant 0 : index
    %80 = vector.load %arg7[%c0_59, %c0_60, %c0_61] : memref<8x2x256xbf16, #tpu.memory_space<vmem>>, vector<1x2x128xbf16>
    %81 = vector.shape_cast %80 : vector<1x2x128xbf16> to vector<2x128xbf16>
    %82 = arith.extf %81 : vector<2x128xbf16> to vector<2x128xf32>
    %83 = arith.truncf %76 : vector<2x32xf32> to vector<2x32xbf16>
    %cst_62 = arith.constant dense<0.000000e+00> : vector<2x128xf32>
    %84 = tpu.matmul %83, %74, %cst_62 {dimension_numbers = #tpu.dot_dimension_numbers<[1], [0], [0], [1], [0, 0, 1, 1], [], []>} : vector<2x32xbf16>, vector<32x128xbf16>, vector<2x128xf32> -> vector<2x128xf32>
    %85 = arith.addf %82, %84 : vector<2x128xf32>
    %c7_63 = arith.constant 7 : index
    %c0_64 = arith.constant 0 : index
    %c128 = arith.constant 128 : index
    %86 = vector.load %arg7[%c7_63, %c0_64, %c128] : memref<8x2x256xbf16, #tpu.memory_space<vmem>>, vector<1x2x128xbf16>
    %87 = vector.shape_cast %86 : vector<1x2x128xbf16> to vector<2x128xbf16>
    %88 = arith.extf %87 : vector<2x128xbf16> to vector<2x128xf32>
    %89 = arith.truncf %78 : vector<2x32xf32> to vector<2x32xbf16>
    %cst_65 = arith.constant dense<0.000000e+00> : vector<2x128xf32>
    %90 = tpu.matmul %89, %75, %cst_65 {dimension_numbers = #tpu.dot_dimension_numbers<[1], [0], [0], [1], [0, 0, 1, 1], [], []>} : vector<2x32xbf16>, vector<32x128xbf16>, vector<2x128xf32> -> vector<2x128xf32>
    %91 = arith.addf %88, %90 : vector<2x128xf32>
    %92 = vector.extract_strided_slice %85 {offsets = [0, 0], sizes = [2, 32], strides = [1, 1]} : vector<2x128xf32> to vector<2x32xf32>
    %93 = arith.negf %92 : vector<2x32xf32>
    %94 = math.exp %93 : vector<2x32xf32>
    %cst_66 = arith.constant 1.000000e+00 : f32
    %95 = vector.broadcast %cst_66 : f32 to vector<2x32xf32>
    %96 = arith.addf %95, %94 : vector<2x32xf32>
    %97 = arith.divf %95, %96 : vector<2x32xf32>
    %98 = vector.extract_strided_slice %85 {offsets = [0, 32], sizes = [2, 32], strides = [1, 1]} : vector<2x128xf32> to vector<2x32xf32>
    %99 = arith.negf %98 : vector<2x32xf32>
    %100 = math.exp %99 : vector<2x32xf32>
    %cst_67 = arith.constant 1.000000e+00 : f32
    %101 = vector.broadcast %cst_67 : f32 to vector<2x32xf32>
    %102 = arith.addf %101, %100 : vector<2x32xf32>
    %103 = arith.divf %101, %102 : vector<2x32xf32>
    %104 = vector.extract_strided_slice %85 {offsets = [0, 64], sizes = [2, 32], strides = [1, 1]} : vector<2x128xf32> to vector<2x32xf32>
    %105 = math.tanh %104 : vector<2x32xf32>
    %106 = vector.extract_strided_slice %85 {offsets = [0, 96], sizes = [2, 32], strides = [1, 1]} : vector<2x128xf32> to vector<2x32xf32>
    %107 = arith.negf %106 : vector<2x32xf32>
    %108 = math.exp %107 : vector<2x32xf32>
    %cst_68 = arith.constant 1.000000e+00 : f32
    %109 = vector.broadcast %cst_68 : f32 to vector<2x32xf32>
    %110 = arith.addf %109, %108 : vector<2x32xf32>
    %111 = arith.divf %109, %110 : vector<2x32xf32>
    %112 = arith.mulf %103, %77 : vector<2x32xf32>
    %113 = arith.mulf %97, %105 : vector<2x32xf32>
    %114 = arith.addf %112, %113 : vector<2x32xf32>
    %115 = math.tanh %114 : vector<2x32xf32>
    %116 = arith.mulf %111, %115 : vector<2x32xf32>
    %117 = vector.extract_strided_slice %91 {offsets = [0, 0], sizes = [2, 32], strides = [1, 1]} : vector<2x128xf32> to vector<2x32xf32>
    %118 = arith.negf %117 : vector<2x32xf32>
    %119 = math.exp %118 : vector<2x32xf32>
    %cst_69 = arith.constant 1.000000e+00 : f32
    %120 = vector.broadcast %cst_69 : f32 to vector<2x32xf32>
    %121 = arith.addf %120, %119 : vector<2x32xf32>
    %122 = arith.divf %120, %121 : vector<2x32xf32>
    %123 = vector.extract_strided_slice %91 {offsets = [0, 32], sizes = [2, 32], strides = [1, 1]} : vector<2x128xf32> to vector<2x32xf32>
    %124 = arith.negf %123 : vector<2x32xf32>
    %125 = math.exp %124 : vector<2x32xf32>
    %cst_70 = arith.constant 1.000000e+00 : f32
    %126 = vector.broadcast %cst_70 : f32 to vector<2x32xf32>
    %127 = arith.addf %126, %125 : vector<2x32xf32>
    %128 = arith.divf %126, %127 : vector<2x32xf32>
    %129 = vector.extract_strided_slice %91 {offsets = [0, 64], sizes = [2, 32], strides = [1, 1]} : vector<2x128xf32> to vector<2x32xf32>
    %130 = math.tanh %129 : vector<2x32xf32>
    %131 = vector.extract_strided_slice %91 {offsets = [0, 96], sizes = [2, 32], strides = [1, 1]} : vector<2x128xf32> to vector<2x32xf32>
    %132 = arith.negf %131 : vector<2x32xf32>
    %133 = math.exp %132 : vector<2x32xf32>
    %cst_71 = arith.constant 1.000000e+00 : f32
    %134 = vector.broadcast %cst_71 : f32 to vector<2x32xf32>
    %135 = arith.addf %134, %133 : vector<2x32xf32>
    %136 = arith.divf %134, %135 : vector<2x32xf32>
    %137 = arith.mulf %128, %79 : vector<2x32xf32>
    %138 = arith.mulf %122, %130 : vector<2x32xf32>
    %139 = arith.addf %137, %138 : vector<2x32xf32>
    %140 = math.tanh %139 : vector<2x32xf32>
    %141 = arith.mulf %136, %140 : vector<2x32xf32>
    %142 = arith.truncf %116 : vector<2x32xf32> to vector<2x32xbf16>
    %c0_72 = arith.constant 0 : index
    %c0_73 = arith.constant 0 : index
    %c0_74 = arith.constant 0 : index
    %143 = vector.load %arg6[%c0_72, %c0_73, %c0_74] : memref<8x2x64xbf16, #tpu.memory_space<vmem>>, vector<1x2x32xbf16>
    %144 = vector.shape_cast %143 : vector<1x2x32xbf16> to vector<2x32xbf16>
    %145 = vector.shape_cast %142 : vector<2x32xbf16> to vector<1x2x32xbf16>
    tpu.vector_store %arg6[%c0_72, %c0_73, %c0_74], %145 {strides = array<i32>} : memref<8x2x64xbf16, #tpu.memory_space<vmem>>, vector<1x2x32xbf16>,
    %146 = arith.truncf %141 : vector<2x32xf32> to vector<2x32xbf16>
    %c7_75 = arith.constant 7 : index
    %c0_76 = arith.constant 0 : index
    %c32 = arith.constant 32 : index
    %147 = vector.load %arg6[%c7_75, %c0_76, %c32] : memref<8x2x64xbf16, #tpu.memory_space<vmem>>, vector<1x2x32xbf16>
    %148 = vector.shape_cast %147 : vector<1x2x32xbf16> to vector<2x32xbf16>
    %149 = vector.shape_cast %146 : vector<2x32xbf16> to vector<1x2x32xbf16>
    tpu.vector_store %arg6[%c7_75, %c0_76, %c32], %149 {strides = array<i32>} : memref<8x2x64xbf16, #tpu.memory_space<vmem>>, vector<1x2x32xbf16>,
    %c1_77 = arith.constant 1 : index
    %c0_78 = arith.constant 0 : index
    %c0_79 = arith.constant 0 : index
    %150 = vector.load %arg7[%c1_77, %c0_78, %c0_79] : memref<8x2x256xbf16, #tpu.memory_space<vmem>>, vector<1x2x128xbf16>
    %151 = vector.shape_cast %150 : vector<1x2x128xbf16> to vector<2x128xbf16>
    %152 = arith.extf %151 : vector<2x128xbf16> to vector<2x128xf32>
    %153 = arith.truncf %116 : vector<2x32xf32> to vector<2x32xbf16>
    %cst_80 = arith.constant dense<0.000000e+00> : vector<2x128xf32>
    %154 = tpu.matmul %153, %74, %cst_80 {dimension_numbers = #tpu.dot_dimension_numbers<[1], [0], [0], [1], [0, 0, 1, 1], [], []>} : vector<2x32xbf16>, vector<32x128xbf16>, vector<2x128xf32> -> vector<2x128xf32>
    %155 = arith.addf %152, %154 : vector<2x128xf32>
    %c6_81 = arith.constant 6 : index
    %c0_82 = arith.constant 0 : index
    %c128_83 = arith.constant 128 : index
    %156 = vector.load %arg7[%c6_81, %c0_82, %c128_83] : memref<8x2x256xbf16, #tpu.memory_space<vmem>>, vector<1x2x128xbf16>
    %157 = vector.shape_cast %156 : vector<1x2x128xbf16> to vector<2x128xbf16>
    %158 = arith.extf %157 : vector<2x128xbf16> to vector<2x128xf32>
    %159 = arith.truncf %141 : vector<2x32xf32> to vector<2x32xbf16>
    %cst_84 = arith.constant dense<0.000000e+00> : vector<2x128xf32>
    %160 = tpu.matmul %159, %75, %cst_84 {dimension_numbers = #tpu.dot_dimension_numbers<[1], [0], [0], [1], [0, 0, 1, 1], [], []>} : vector<2x32xbf16>, vector<32x128xbf16>, vector<2x128xf32> -> vector<2x128xf32>
    %161 = arith.addf %158, %160 : vector<2x128xf32>
    %162 = vector.extract_strided_slice %155 {offsets = [0, 0], sizes = [2, 32], strides = [1, 1]} : vector<2x128xf32> to vector<2x32xf32>
    %163 = arith.negf %162 : vector<2x32xf32>
    %164 = math.exp %163 : vector<2x32xf32>
    %cst_85 = arith.constant 1.000000e+00 : f32
    %165 = vector.broadcast %cst_85 : f32 to vector<2x32xf32>
    %166 = arith.addf %165, %164 : vector<2x32xf32>
    %167 = arith.divf %165, %166 : vector<2x32xf32>
    %168 = vector.extract_strided_slice %155 {offsets = [0, 32], sizes = [2, 32], strides = [1, 1]} : vector<2x128xf32> to vector<2x32xf32>
    %169 = arith.negf %168 : vector<2x32xf32>
    %170 = math.exp %169 : vector<2x32xf32>
    %cst_86 = arith.constant 1.000000e+00 : f32
    %171 = vector.broadcast %cst_86 : f32 to vector<2x32xf32>
    %172 = arith.addf %171, %170 : vector<2x32xf32>
    %173 = arith.divf %171, %172 : vector<2x32xf32>
    %174 = vector.extract_strided_slice %155 {offsets = [0, 64], sizes = [2, 32], strides = [1, 1]} : vector<2x128xf32> to vector<2x32xf32>
    %175 = math.tanh %174 : vector<2x32xf32>
    %176 = vector.extract_strided_slice %155 {offsets = [0, 96], sizes = [2, 32], strides = [1, 1]} : vector<2x128xf32> to vector<2x32xf32>
    %177 = arith.negf %176 : vector<2x32xf32>
    %178 = math.exp %177 : vector<2x32xf32>
    %cst_87 = arith.constant 1.000000e+00 : f32
    %179 = vector.broadcast %cst_87 : f32 to vector<2x32xf32>
    %180 = arith.addf %179, %178 : vector<2x32xf32>
    %181 = arith.divf %179, %180 : vector<2x32xf32>
    %182 = arith.mulf %173, %114 : vector<2x32xf32>
    %183 = arith.mulf %167, %175 : vector<2x32xf32>
    %184 = arith.addf %182, %183 : vector<2x32xf32>
    %185 = math.tanh %184 : vector<2x32xf32>
    %186 = arith.mulf %181, %185 : vector<2x32xf32>
    %187 = vector.extract_strided_slice %161 {offsets = [0, 0], sizes = [2, 32], strides = [1, 1]} : vector<2x128xf32> to vector<2x32xf32>
    %188 = arith.negf %187 : vector<2x32xf32>
    %189 = math.exp %188 : vector<2x32xf32>
    %cst_88 = arith.constant 1.000000e+00 : f32
    %190 = vector.broadcast %cst_88 : f32 to vector<2x32xf32>
    %191 = arith.addf %190, %189 : vector<2x32xf32>
    %192 = arith.divf %190, %191 : vector<2x32xf32>
    %193 = vector.extract_strided_slice %161 {offsets = [0, 32], sizes = [2, 32], strides = [1, 1]} : vector<2x128xf32> to vector<2x32xf32>
    %194 = arith.negf %193 : vector<2x32xf32>
    %195 = math.exp %194 : vector<2x32xf32>
    %cst_89 = arith.constant 1.000000e+00 : f32
    %196 = vector.broadcast %cst_89 : f32 to vector<2x32xf32>
    %197 = arith.addf %196, %195 : vector<2x32xf32>
    %198 = arith.divf %196, %197 : vector<2x32xf32>
    %199 = vector.extract_strided_slice %161 {offsets = [0, 64], sizes = [2, 32], strides = [1, 1]} : vector<2x128xf32> to vector<2x32xf32>
    %200 = math.tanh %199 : vector<2x32xf32>
    %201 = vector.extract_strided_slice %161 {offsets = [0, 96], sizes = [2, 32], strides = [1, 1]} : vector<2x128xf32> to vector<2x32xf32>
    %202 = arith.negf %201 : vector<2x32xf32>
    %203 = math.exp %202 : vector<2x32xf32>
    %cst_90 = arith.constant 1.000000e+00 : f32
    %204 = vector.broadcast %cst_90 : f32 to vector<2x32xf32>
    %205 = arith.addf %204, %203 : vector<2x32xf32>
    %206 = arith.divf %204, %205 : vector<2x32xf32>
    %207 = arith.mulf %198, %139 : vector<2x32xf32>
    %208 = arith.mulf %192, %200 : vector<2x32xf32>
    %209 = arith.addf %207, %208 : vector<2x32xf32>
    %210 = math.tanh %209 : vector<2x32xf32>
    %211 = arith.mulf %206, %210 : vector<2x32xf32>
    %212 = arith.truncf %186 : vector<2x32xf32> to vector<2x32xbf16>
    %c1_91 = arith.constant 1 : index
    %c0_92 = arith.constant 0 : index
    %c0_93 = arith.constant 0 : index
    %213 = vector.load %arg6[%c1_91, %c0_92, %c0_93] : memref<8x2x64xbf16, #tpu.memory_space<vmem>>, vector<1x2x32xbf16>
    %214 = vector.shape_cast %213 : vector<1x2x32xbf16> to vector<2x32xbf16>
    %215 = vector.shape_cast %212 : vector<2x32xbf16> to vector<1x2x32xbf16>
    tpu.vector_store %arg6[%c1_91, %c0_92, %c0_93], %215 {strides = array<i32>} : memref<8x2x64xbf16, #tpu.memory_space<vmem>>, vector<1x2x32xbf16>,
    %216 = arith.truncf %211 : vector<2x32xf32> to vector<2x32xbf16>
    %c6_94 = arith.constant 6 : index
    %c0_95 = arith.constant 0 : index
    %c32_96 = arith.constant 32 : index
    %217 = vector.load %arg6[%c6_94, %c0_95, %c32_96] : memref<8x2x64xbf16, #tpu.memory_space<vmem>>, vector<1x2x32xbf16>
    %218 = vector.shape_cast %217 : vector<1x2x32xbf16> to vector<2x32xbf16>
    %219 = vector.shape_cast %216 : vector<2x32xbf16> to vector<1x2x32xbf16>
    tpu.vector_store %arg6[%c6_94, %c0_95, %c32_96], %219 {strides = array<i32>} : memref<8x2x64xbf16, #tpu.memory_space<vmem>>, vector<1x2x32xbf16>,
    %c2_97 = arith.constant 2 : index
    %c0_98 = arith.constant 0 : index
    %c0_99 = arith.constant 0 : index
    %220 = vector.load %arg7[%c2_97, %c0_98, %c0_99] : memref<8x2x256xbf16, #tpu.memory_space<vmem>>, vector<1x2x128xbf16>
    %221 = vector.shape_cast %220 : vector<1x2x128xbf16> to vector<2x128xbf16>
    %222 = arith.extf %221 : vector<2x128xbf16> to vector<2x128xf32>
    %223 = arith.truncf %186 : vector<2x32xf32> to vector<2x32xbf16>
    %cst_100 = arith.constant dense<0.000000e+00> : vector<2x128xf32>
    %224 = tpu.matmul %223, %74, %cst_100 {dimension_numbers = #tpu.dot_dimension_numbers<[1], [0], [0], [1], [0, 0, 1, 1], [], []>} : vector<2x32xbf16>, vector<32x128xbf16>, vector<2x128xf32> -> vector<2x128xf32>
    %225 = arith.addf %222, %224 : vector<2x128xf32>
    %c5_101 = arith.constant 5 : index
    %c0_102 = arith.constant 0 : index
    %c128_103 = arith.constant 128 : index
    %226 = vector.load %arg7[%c5_101, %c0_102, %c128_103] : memref<8x2x256xbf16, #tpu.memory_space<vmem>>, vector<1x2x128xbf16>
    %227 = vector.shape_cast %226 : vector<1x2x128xbf16> to vector<2x128xbf16>
    %228 = arith.extf %227 : vector<2x128xbf16> to vector<2x128xf32>
    %229 = arith.truncf %211 : vector<2x32xf32> to vector<2x32xbf16>
    %cst_104 = arith.constant dense<0.000000e+00> : vector<2x128xf32>
    %230 = tpu.matmul %229, %75, %cst_104 {dimension_numbers = #tpu.dot_dimension_numbers<[1], [0], [0], [1], [0, 0, 1, 1], [], []>} : vector<2x32xbf16>, vector<32x128xbf16>, vector<2x128xf32> -> vector<2x128xf32>
    %231 = arith.addf %228, %230 : vector<2x128xf32>
    %232 = vector.extract_strided_slice %225 {offsets = [0, 0], sizes = [2, 32], strides = [1, 1]} : vector<2x128xf32> to vector<2x32xf32>
    %233 = arith.negf %232 : vector<2x32xf32>
    %234 = math.exp %233 : vector<2x32xf32>
    %cst_105 = arith.constant 1.000000e+00 : f32
    %235 = vector.broadcast %cst_105 : f32 to vector<2x32xf32>
    %236 = arith.addf %235, %234 : vector<2x32xf32>
    %237 = arith.divf %235, %236 : vector<2x32xf32>
    %238 = vector.extract_strided_slice %225 {offsets = [0, 32], sizes = [2, 32], strides = [1, 1]} : vector<2x128xf32> to vector<2x32xf32>
    %239 = arith.negf %238 : vector<2x32xf32>
    %240 = math.exp %239 : vector<2x32xf32>
    %cst_106 = arith.constant 1.000000e+00 : f32
    %241 = vector.broadcast %cst_106 : f32 to vector<2x32xf32>
    %242 = arith.addf %241, %240 : vector<2x32xf32>
    %243 = arith.divf %241, %242 : vector<2x32xf32>
    %244 = vector.extract_strided_slice %225 {offsets = [0, 64], sizes = [2, 32], strides = [1, 1]} : vector<2x128xf32> to vector<2x32xf32>
    %245 = math.tanh %244 : vector<2x32xf32>
    %246 = vector.extract_strided_slice %225 {offsets = [0, 96], sizes = [2, 32], strides = [1, 1]} : vector<2x128xf32> to vector<2x32xf32>
    %247 = arith.negf %246 : vector<2x32xf32>
    %248 = math.exp %247 : vector<2x32xf32>
    %cst_107 = arith.constant 1.000000e+00 : f32
    %249 = vector.broadcast %cst_107 : f32 to vector<2x32xf32>
    %250 = arith.addf %249, %248 : vector<2x32xf32>
    %251 = arith.divf %249, %250 : vector<2x32xf32>
    %252 = arith.mulf %243, %184 : vector<2x32xf32>
    %253 = arith.mulf %237, %245 : vector<2x32xf32>
    %254 = arith.addf %252, %253 : vector<2x32xf32>
    %255 = math.tanh %254 : vector<2x32xf32>
    %256 = arith.mulf %251, %255 : vector<2x32xf32>
    %257 = vector.extract_strided_slice %231 {offsets = [0, 0], sizes = [2, 32], strides = [1, 1]} : vector<2x128xf32> to vector<2x32xf32>
    %258 = arith.negf %257 : vector<2x32xf32>
    %259 = math.exp %258 : vector<2x32xf32>
    %cst_108 = arith.constant 1.000000e+00 : f32
    %260 = vector.broadcast %cst_108 : f32 to vector<2x32xf32>
    %261 = arith.addf %260, %259 : vector<2x32xf32>
    %262 = arith.divf %260, %261 : vector<2x32xf32>
    %263 = vector.extract_strided_slice %231 {offsets = [0, 32], sizes = [2, 32], strides = [1, 1]} : vector<2x128xf32> to vector<2x32xf32>
    %264 = arith.negf %263 : vector<2x32xf32>
    %265 = math.exp %264 : vector<2x32xf32>
    %cst_109 = arith.constant 1.000000e+00 : f32
    %266 = vector.broadcast %cst_109 : f32 to vector<2x32xf32>
    %267 = arith.addf %266, %265 : vector<2x32xf32>
    %268 = arith.divf %266, %267 : vector<2x32xf32>
    %269 = vector.extract_strided_slice %231 {offsets = [0, 64], sizes = [2, 32], strides = [1, 1]} : vector<2x128xf32> to vector<2x32xf32>
    %270 = math.tanh %269 : vector<2x32xf32>
    %271 = vector.extract_strided_slice %231 {offsets = [0, 96], sizes = [2, 32], strides = [1, 1]} : vector<2x128xf32> to vector<2x32xf32>
    %272 = arith.negf %271 : vector<2x32xf32>
    %273 = math.exp %272 : vector<2x32xf32>
    %cst_110 = arith.constant 1.000000e+00 : f32
    %274 = vector.broadcast %cst_110 : f32 to vector<2x32xf32>
    %275 = arith.addf %274, %273 : vector<2x32xf32>
    %276 = arith.divf %274, %275 : vector<2x32xf32>
    %277 = arith.mulf %268, %209 : vector<2x32xf32>
    %278 = arith.mulf %262, %270 : vector<2x32xf32>
    %279 = arith.addf %277, %278 : vector<2x32xf32>
    %280 = math.tanh %279 : vector<2x32xf32>
    %281 = arith.mulf %276, %280 : vector<2x32xf32>
    %282 = arith.truncf %256 : vector<2x32xf32> to vector<2x32xbf16>
    %c2_111 = arith.constant 2 : index
    %c0_112 = arith.constant 0 : index
    %c0_113 = arith.constant 0 : index
    %283 = vector.load %arg6[%c2_111, %c0_112, %c0_113] : memref<8x2x64xbf16, #tpu.memory_space<vmem>>, vector<1x2x32xbf16>
    %284 = vector.shape_cast %283 : vector<1x2x32xbf16> to vector<2x32xbf16>
    %285 = vector.shape_cast %282 : vector<2x32xbf16> to vector<1x2x32xbf16>
    tpu.vector_store %arg6[%c2_111, %c0_112, %c0_113], %285 {strides = array<i32>} : memref<8x2x64xbf16, #tpu.memory_space<vmem>>, vector<1x2x32xbf16>,
    %286 = arith.truncf %281 : vector<2x32xf32> to vector<2x32xbf16>
    %c5_114 = arith.constant 5 : index
    %c0_115 = arith.constant 0 : index
    %c32_116 = arith.constant 32 : index
    %287 = vector.load %arg6[%c5_114, %c0_115, %c32_116] : memref<8x2x64xbf16, #tpu.memory_space<vmem>>, vector<1x2x32xbf16>
    %288 = vector.shape_cast %287 : vector<1x2x32xbf16> to vector<2x32xbf16>
    %289 = vector.shape_cast %286 : vector<2x32xbf16> to vector<1x2x32xbf16>
    tpu.vector_store %arg6[%c5_114, %c0_115, %c32_116], %289 {strides = array<i32>} : memref<8x2x64xbf16, #tpu.memory_space<vmem>>, vector<1x2x32xbf16>,
    %c3_117 = arith.constant 3 : index
    %c0_118 = arith.constant 0 : index
    %c0_119 = arith.constant 0 : index
    %290 = vector.load %arg7[%c3_117, %c0_118, %c0_119] : memref<8x2x256xbf16, #tpu.memory_space<vmem>>, vector<1x2x128xbf16>
    %291 = vector.shape_cast %290 : vector<1x2x128xbf16> to vector<2x128xbf16>
    %292 = arith.extf %291 : vector<2x128xbf16> to vector<2x128xf32>
    %293 = arith.truncf %256 : vector<2x32xf32> to vector<2x32xbf16>
    %cst_120 = arith.constant dense<0.000000e+00> : vector<2x128xf32>
    %294 = tpu.matmul %293, %74, %cst_120 {dimension_numbers = #tpu.dot_dimension_numbers<[1], [0], [0], [1], [0, 0, 1, 1], [], []>} : vector<2x32xbf16>, vector<32x128xbf16>, vector<2x128xf32> -> vector<2x128xf32>
    %295 = arith.addf %292, %294 : vector<2x128xf32>
    %c4_121 = arith.constant 4 : index
    %c0_122 = arith.constant 0 : index
    %c128_123 = arith.constant 128 : index
    %296 = vector.load %arg7[%c4_121, %c0_122, %c128_123] : memref<8x2x256xbf16, #tpu.memory_space<vmem>>, vector<1x2x128xbf16>
    %297 = vector.shape_cast %296 : vector<1x2x128xbf16> to vector<2x128xbf16>
    %298 = arith.extf %297 : vector<2x128xbf16> to vector<2x128xf32>
    %299 = arith.truncf %281 : vector<2x32xf32> to vector<2x32xbf16>
    %cst_124 = arith.constant dense<0.000000e+00> : vector<2x128xf32>
    %300 = tpu.matmul %299, %75, %cst_124 {dimension_numbers = #tpu.dot_dimension_numbers<[1], [0], [0], [1], [0, 0, 1, 1], [], []>} : vector<2x32xbf16>, vector<32x128xbf16>, vector<2x128xf32> -> vector<2x128xf32>
    %301 = arith.addf %298, %300 : vector<2x128xf32>
    %302 = vector.extract_strided_slice %295 {offsets = [0, 0], sizes = [2, 32], strides = [1, 1]} : vector<2x128xf32> to vector<2x32xf32>
    %303 = arith.negf %302 : vector<2x32xf32>
    %304 = math.exp %303 : vector<2x32xf32>
    %cst_125 = arith.constant 1.000000e+00 : f32
    %305 = vector.broadcast %cst_125 : f32 to vector<2x32xf32>
    %306 = arith.addf %305, %304 : vector<2x32xf32>
    %307 = arith.divf %305, %306 : vector<2x32xf32>
    %308 = vector.extract_strided_slice %295 {offsets = [0, 32], sizes = [2, 32], strides = [1, 1]} : vector<2x128xf32> to vector<2x32xf32>
    %309 = arith.negf %308 : vector<2x32xf32>
    %310 = math.exp %309 : vector<2x32xf32>
    %cst_126 = arith.constant 1.000000e+00 : f32
    %311 = vector.broadcast %cst_126 : f32 to vector<2x32xf32>
    %312 = arith.addf %311, %310 : vector<2x32xf32>
    %313 = arith.divf %311, %312 : vector<2x32xf32>
    %314 = vector.extract_strided_slice %295 {offsets = [0, 64], sizes = [2, 32], strides = [1, 1]} : vector<2x128xf32> to vector<2x32xf32>
    %315 = math.tanh %314 : vector<2x32xf32>
    %316 = vector.extract_strided_slice %295 {offsets = [0, 96], sizes = [2, 32], strides = [1, 1]} : vector<2x128xf32> to vector<2x32xf32>
    %317 = arith.negf %316 : vector<2x32xf32>
    %318 = math.exp %317 : vector<2x32xf32>
    %cst_127 = arith.constant 1.000000e+00 : f32
    %319 = vector.broadcast %cst_127 : f32 to vector<2x32xf32>
    %320 = arith.addf %319, %318 : vector<2x32xf32>
    %321 = arith.divf %319, %320 : vector<2x32xf32>
    %322 = arith.mulf %313, %254 : vector<2x32xf32>
    %323 = arith.mulf %307, %315 : vector<2x32xf32>
    %324 = arith.addf %322, %323 : vector<2x32xf32>
    %325 = math.tanh %324 : vector<2x32xf32>
    %326 = arith.mulf %321, %325 : vector<2x32xf32>
    %327 = vector.extract_strided_slice %301 {offsets = [0, 0], sizes = [2, 32], strides = [1, 1]} : vector<2x128xf32> to vector<2x32xf32>
    %328 = arith.negf %327 : vector<2x32xf32>
    %329 = math.exp %328 : vector<2x32xf32>
    %cst_128 = arith.constant 1.000000e+00 : f32
    %330 = vector.broadcast %cst_128 : f32 to vector<2x32xf32>
    %331 = arith.addf %330, %329 : vector<2x32xf32>
    %332 = arith.divf %330, %331 : vector<2x32xf32>
    %333 = vector.extract_strided_slice %301 {offsets = [0, 32], sizes = [2, 32], strides = [1, 1]} : vector<2x128xf32> to vector<2x32xf32>
    %334 = arith.negf %333 : vector<2x32xf32>
    %335 = math.exp %334 : vector<2x32xf32>
    %cst_129 = arith.constant 1.000000e+00 : f32
    %336 = vector.broadcast %cst_129 : f32 to vector<2x32xf32>
    %337 = arith.addf %336, %335 : vector<2x32xf32>
    %338 = arith.divf %336, %337 : vector<2x32xf32>
    %339 = vector.extract_strided_slice %301 {offsets = [0, 64], sizes = [2, 32], strides = [1, 1]} : vector<2x128xf32> to vector<2x32xf32>
    %340 = math.tanh %339 : vector<2x32xf32>
    %341 = vector.extract_strided_slice %301 {offsets = [0, 96], sizes = [2, 32], strides = [1, 1]} : vector<2x128xf32> to vector<2x32xf32>
    %342 = arith.negf %341 : vector<2x32xf32>
    %343 = math.exp %342 : vector<2x32xf32>
    %cst_130 = arith.constant 1.000000e+00 : f32
    %344 = vector.broadcast %cst_130 : f32 to vector<2x32xf32>
    %345 = arith.addf %344, %343 : vector<2x32xf32>
    %346 = arith.divf %344, %345 : vector<2x32xf32>
    %347 = arith.mulf %338, %279 : vector<2x32xf32>
    %348 = arith.mulf %332, %340 : vector<2x32xf32>
    %349 = arith.addf %347, %348 : vector<2x32xf32>
    %350 = math.tanh %349 : vector<2x32xf32>
    %351 = arith.mulf %346, %350 : vector<2x32xf32>
    %352 = arith.truncf %326 : vector<2x32xf32> to vector<2x32xbf16>
    %c3_131 = arith.constant 3 : index
    %c0_132 = arith.constant 0 : index
    %c0_133 = arith.constant 0 : index
    %353 = vector.load %arg6[%c3_131, %c0_132, %c0_133] : memref<8x2x64xbf16, #tpu.memory_space<vmem>>, vector<1x2x32xbf16>
    %354 = vector.shape_cast %353 : vector<1x2x32xbf16> to vector<2x32xbf16>
    %355 = vector.shape_cast %352 : vector<2x32xbf16> to vector<1x2x32xbf16>
    tpu.vector_store %arg6[%c3_131, %c0_132, %c0_133], %355 {strides = array<i32>} : memref<8x2x64xbf16, #tpu.memory_space<vmem>>, vector<1x2x32xbf16>,
    %356 = arith.truncf %351 : vector<2x32xf32> to vector<2x32xbf16>
    %c4_134 = arith.constant 4 : index
    %c0_135 = arith.constant 0 : index
    %c32_136 = arith.constant 32 : index
    %357 = vector.load %arg6[%c4_134, %c0_135, %c32_136] : memref<8x2x64xbf16, #tpu.memory_space<vmem>>, vector<1x2x32xbf16>
    %358 = vector.shape_cast %357 : vector<1x2x32xbf16> to vector<2x32xbf16>
    %359 = vector.shape_cast %356 : vector<2x32xbf16> to vector<1x2x32xbf16>
    tpu.vector_store %arg6[%c4_134, %c0_135, %c32_136], %359 {strides = array<i32>} : memref<8x2x64xbf16, #tpu.memory_space<vmem>>, vector<1x2x32xbf16>,
    %c4_137 = arith.constant 4 : index
    %c0_138 = arith.constant 0 : index
    %c0_139 = arith.constant 0 : index
    %360 = vector.load %arg7[%c4_137, %c0_138, %c0_139] : memref<8x2x256xbf16, #tpu.memory_space<vmem>>, vector<1x2x128xbf16>
    %361 = vector.shape_cast %360 : vector<1x2x128xbf16> to vector<2x128xbf16>
    %362 = arith.extf %361 : vector<2x128xbf16> to vector<2x128xf32>
    %363 = arith.truncf %326 : vector<2x32xf32> to vector<2x32xbf16>
    %cst_140 = arith.constant dense<0.000000e+00> : vector<2x128xf32>
    %364 = tpu.matmul %363, %74, %cst_140 {dimension_numbers = #tpu.dot_dimension_numbers<[1], [0], [0], [1], [0, 0, 1, 1], [], []>} : vector<2x32xbf16>, vector<32x128xbf16>, vector<2x128xf32> -> vector<2x128xf32>
    %365 = arith.addf %362, %364 : vector<2x128xf32>
    %c3_141 = arith.constant 3 : index
    %c0_142 = arith.constant 0 : index
    %c128_143 = arith.constant 128 : index
    %366 = vector.load %arg7[%c3_141, %c0_142, %c128_143] : memref<8x2x256xbf16, #tpu.memory_space<vmem>>, vector<1x2x128xbf16>
    %367 = vector.shape_cast %366 : vector<1x2x128xbf16> to vector<2x128xbf16>
    %368 = arith.extf %367 : vector<2x128xbf16> to vector<2x128xf32>
    %369 = arith.truncf %351 : vector<2x32xf32> to vector<2x32xbf16>
    %cst_144 = arith.constant dense<0.000000e+00> : vector<2x128xf32>
    %370 = tpu.matmul %369, %75, %cst_144 {dimension_numbers = #tpu.dot_dimension_numbers<[1], [0], [0], [1], [0, 0, 1, 1], [], []>} : vector<2x32xbf16>, vector<32x128xbf16>, vector<2x128xf32> -> vector<2x128xf32>
    %371 = arith.addf %368, %370 : vector<2x128xf32>
    %372 = vector.extract_strided_slice %365 {offsets = [0, 0], sizes = [2, 32], strides = [1, 1]} : vector<2x128xf32> to vector<2x32xf32>
    %373 = arith.negf %372 : vector<2x32xf32>
    %374 = math.exp %373 : vector<2x32xf32>
    %cst_145 = arith.constant 1.000000e+00 : f32
    %375 = vector.broadcast %cst_145 : f32 to vector<2x32xf32>
    %376 = arith.addf %375, %374 : vector<2x32xf32>
    %377 = arith.divf %375, %376 : vector<2x32xf32>
    %378 = vector.extract_strided_slice %365 {offsets = [0, 32], sizes = [2, 32], strides = [1, 1]} : vector<2x128xf32> to vector<2x32xf32>
    %379 = arith.negf %378 : vector<2x32xf32>
    %380 = math.exp %379 : vector<2x32xf32>
    %cst_146 = arith.constant 1.000000e+00 : f32
    %381 = vector.broadcast %cst_146 : f32 to vector<2x32xf32>
    %382 = arith.addf %381, %380 : vector<2x32xf32>
    %383 = arith.divf %381, %382 : vector<2x32xf32>
    %384 = vector.extract_strided_slice %365 {offsets = [0, 64], sizes = [2, 32], strides = [1, 1]} : vector<2x128xf32> to vector<2x32xf32>
    %385 = math.tanh %384 : vector<2x32xf32>
    %386 = vector.extract_strided_slice %365 {offsets = [0, 96], sizes = [2, 32], strides = [1, 1]} : vector<2x128xf32> to vector<2x32xf32>
    %387 = arith.negf %386 : vector<2x32xf32>
    %388 = math.exp %387 : vector<2x32xf32>
    %cst_147 = arith.constant 1.000000e+00 : f32
    %389 = vector.broadcast %cst_147 : f32 to vector<2x32xf32>
    %390 = arith.addf %389, %388 : vector<2x32xf32>
    %391 = arith.divf %389, %390 : vector<2x32xf32>
    %392 = arith.mulf %383, %324 : vector<2x32xf32>
    %393 = arith.mulf %377, %385 : vector<2x32xf32>
    %394 = arith.addf %392, %393 : vector<2x32xf32>
    %395 = math.tanh %394 : vector<2x32xf32>
    %396 = arith.mulf %391, %395 : vector<2x32xf32>
    %397 = vector.extract_strided_slice %371 {offsets = [0, 0], sizes = [2, 32], strides = [1, 1]} : vector<2x128xf32> to vector<2x32xf32>
    %398 = arith.negf %397 : vector<2x32xf32>
    %399 = math.exp %398 : vector<2x32xf32>
    %cst_148 = arith.constant 1.000000e+00 : f32
    %400 = vector.broadcast %cst_148 : f32 to vector<2x32xf32>
    %401 = arith.addf %400, %399 : vector<2x32xf32>
    %402 = arith.divf %400, %401 : vector<2x32xf32>
    %403 = vector.extract_strided_slice %371 {offsets = [0, 32], sizes = [2, 32], strides = [1, 1]} : vector<2x128xf32> to vector<2x32xf32>
    %404 = arith.negf %403 : vector<2x32xf32>
    %405 = math.exp %404 : vector<2x32xf32>
    %cst_149 = arith.constant 1.000000e+00 : f32
    %406 = vector.broadcast %cst_149 : f32 to vector<2x32xf32>
    %407 = arith.addf %406, %405 : vector<2x32xf32>
    %408 = arith.divf %406, %407 : vector<2x32xf32>
    %409 = vector.extract_strided_slice %371 {offsets = [0, 64], sizes = [2, 32], strides = [1, 1]} : vector<2x128xf32> to vector<2x32xf32>
    %410 = math.tanh %409 : vector<2x32xf32>
    %411 = vector.extract_strided_slice %371 {offsets = [0, 96], sizes = [2, 32], strides = [1, 1]} : vector<2x128xf32> to vector<2x32xf32>
    %412 = arith.negf %411 : vector<2x32xf32>
    %413 = math.exp %412 : vector<2x32xf32>
    %cst_150 = arith.constant 1.000000e+00 : f32
    %414 = vector.broadcast %cst_150 : f32 to vector<2x32xf32>
    %415 = arith.addf %414, %413 : vector<2x32xf32>
    %416 = arith.divf %414, %415 : vector<2x32xf32>
    %417 = arith.mulf %408, %349 : vector<2x32xf32>
    %418 = arith.mulf %402, %410 : vector<2x32xf32>
    %419 = arith.addf %417, %418 : vector<2x32xf32>
    %420 = math.tanh %419 : vector<2x32xf32>
    %421 = arith.mulf %416, %420 : vector<2x32xf32>
    %422 = arith.truncf %396 : vector<2x32xf32> to vector<2x32xbf16>
    %c4_151 = arith.constant 4 : index
    %c0_152 = arith.constant 0 : index
    %c0_153 = arith.constant 0 : index
    %423 = vector.load %arg6[%c4_151, %c0_152, %c0_153] : memref<8x2x64xbf16, #tpu.memory_space<vmem>>, vector<1x2x32xbf16>
    %424 = vector.shape_cast %423 : vector<1x2x32xbf16> to vector<2x32xbf16>
    %425 = vector.shape_cast %422 : vector<2x32xbf16> to vector<1x2x32xbf16>
    tpu.vector_store %arg6[%c4_151, %c0_152, %c0_153], %425 {strides = array<i32>} : memref<8x2x64xbf16, #tpu.memory_space<vmem>>, vector<1x2x32xbf16>,
    %426 = arith.truncf %421 : vector<2x32xf32> to vector<2x32xbf16>
    %c3_154 = arith.constant 3 : index
    %c0_155 = arith.constant 0 : index
    %c32_156 = arith.constant 32 : index
    %427 = vector.load %arg6[%c3_154, %c0_155, %c32_156] : memref<8x2x64xbf16, #tpu.memory_space<vmem>>, vector<1x2x32xbf16>
    %428 = vector.shape_cast %427 : vector<1x2x32xbf16> to vector<2x32xbf16>
    %429 = vector.shape_cast %426 : vector<2x32xbf16> to vector<1x2x32xbf16>
    tpu.vector_store %arg6[%c3_154, %c0_155, %c32_156], %429 {strides = array<i32>} : memref<8x2x64xbf16, #tpu.memory_space<vmem>>, vector<1x2x32xbf16>,
    %c5_157 = arith.constant 5 : index
    %c0_158 = arith.constant 0 : index
    %c0_159 = arith.constant 0 : index
    %430 = vector.load %arg7[%c5_157, %c0_158, %c0_159] : memref<8x2x256xbf16, #tpu.memory_space<vmem>>, vector<1x2x128xbf16>
    %431 = vector.shape_cast %430 : vector<1x2x128xbf16> to vector<2x128xbf16>
    %432 = arith.extf %431 : vector<2x128xbf16> to vector<2x128xf32>
    %433 = arith.truncf %396 : vector<2x32xf32> to vector<2x32xbf16>
    %cst_160 = arith.constant dense<0.000000e+00> : vector<2x128xf32>
    %434 = tpu.matmul %433, %74, %cst_160 {dimension_numbers = #tpu.dot_dimension_numbers<[1], [0], [0], [1], [0, 0, 1, 1], [], []>} : vector<2x32xbf16>, vector<32x128xbf16>, vector<2x128xf32> -> vector<2x128xf32>
    %435 = arith.addf %432, %434 : vector<2x128xf32>
    %c2_161 = arith.constant 2 : index
    %c0_162 = arith.constant 0 : index
    %c128_163 = arith.constant 128 : index
    %436 = vector.load %arg7[%c2_161, %c0_162, %c128_163] : memref<8x2x256xbf16, #tpu.memory_space<vmem>>, vector<1x2x128xbf16>
    %437 = vector.shape_cast %436 : vector<1x2x128xbf16> to vector<2x128xbf16>
    %438 = arith.extf %437 : vector<2x128xbf16> to vector<2x128xf32>
    %439 = arith.truncf %421 : vector<2x32xf32> to vector<2x32xbf16>
    %cst_164 = arith.constant dense<0.000000e+00> : vector<2x128xf32>
    %440 = tpu.matmul %439, %75, %cst_164 {dimension_numbers = #tpu.dot_dimension_numbers<[1], [0], [0], [1], [0, 0, 1, 1], [], []>} : vector<2x32xbf16>, vector<32x128xbf16>, vector<2x128xf32> -> vector<2x128xf32>
    %441 = arith.addf %438, %440 : vector<2x128xf32>
    %442 = vector.extract_strided_slice %435 {offsets = [0, 0], sizes = [2, 32], strides = [1, 1]} : vector<2x128xf32> to vector<2x32xf32>
    %443 = arith.negf %442 : vector<2x32xf32>
    %444 = math.exp %443 : vector<2x32xf32>
    %cst_165 = arith.constant 1.000000e+00 : f32
    %445 = vector.broadcast %cst_165 : f32 to vector<2x32xf32>
    %446 = arith.addf %445, %444 : vector<2x32xf32>
    %447 = arith.divf %445, %446 : vector<2x32xf32>
    %448 = vector.extract_strided_slice %435 {offsets = [0, 32], sizes = [2, 32], strides = [1, 1]} : vector<2x128xf32> to vector<2x32xf32>
    %449 = arith.negf %448 : vector<2x32xf32>
    %450 = math.exp %449 : vector<2x32xf32>
    %cst_166 = arith.constant 1.000000e+00 : f32
    %451 = vector.broadcast %cst_166 : f32 to vector<2x32xf32>
    %452 = arith.addf %451, %450 : vector<2x32xf32>
    %453 = arith.divf %451, %452 : vector<2x32xf32>
    %454 = vector.extract_strided_slice %435 {offsets = [0, 64], sizes = [2, 32], strides = [1, 1]} : vector<2x128xf32> to vector<2x32xf32>
    %455 = math.tanh %454 : vector<2x32xf32>
    %456 = vector.extract_strided_slice %435 {offsets = [0, 96], sizes = [2, 32], strides = [1, 1]} : vector<2x128xf32> to vector<2x32xf32>
    %457 = arith.negf %456 : vector<2x32xf32>
    %458 = math.exp %457 : vector<2x32xf32>
    %cst_167 = arith.constant 1.000000e+00 : f32
    %459 = vector.broadcast %cst_167 : f32 to vector<2x32xf32>
    %460 = arith.addf %459, %458 : vector<2x32xf32>
    %461 = arith.divf %459, %460 : vector<2x32xf32>
    %462 = arith.mulf %453, %394 : vector<2x32xf32>
    %463 = arith.mulf %447, %455 : vector<2x32xf32>
    %464 = arith.addf %462, %463 : vector<2x32xf32>
    %465 = math.tanh %464 : vector<2x32xf32>
    %466 = arith.mulf %461, %465 : vector<2x32xf32>
    %467 = vector.extract_strided_slice %441 {offsets = [0, 0], sizes = [2, 32], strides = [1, 1]} : vector<2x128xf32> to vector<2x32xf32>
    %468 = arith.negf %467 : vector<2x32xf32>
    %469 = math.exp %468 : vector<2x32xf32>
    %cst_168 = arith.constant 1.000000e+00 : f32
    %470 = vector.broadcast %cst_168 : f32 to vector<2x32xf32>
    %471 = arith.addf %470, %469 : vector<2x32xf32>
    %472 = arith.divf %470, %471 : vector<2x32xf32>
    %473 = vector.extract_strided_slice %441 {offsets = [0, 32], sizes = [2, 32], strides = [1, 1]} : vector<2x128xf32> to vector<2x32xf32>
    %474 = arith.negf %473 : vector<2x32xf32>
    %475 = math.exp %474 : vector<2x32xf32>
    %cst_169 = arith.constant 1.000000e+00 : f32
    %476 = vector.broadcast %cst_169 : f32 to vector<2x32xf32>
    %477 = arith.addf %476, %475 : vector<2x32xf32>
    %478 = arith.divf %476, %477 : vector<2x32xf32>
    %479 = vector.extract_strided_slice %441 {offsets = [0, 64], sizes = [2, 32], strides = [1, 1]} : vector<2x128xf32> to vector<2x32xf32>
    %480 = math.tanh %479 : vector<2x32xf32>
    %481 = vector.extract_strided_slice %441 {offsets = [0, 96], sizes = [2, 32], strides = [1, 1]} : vector<2x128xf32> to vector<2x32xf32>
    %482 = arith.negf %481 : vector<2x32xf32>
    %483 = math.exp %482 : vector<2x32xf32>
    %cst_170 = arith.constant 1.000000e+00 : f32
    %484 = vector.broadcast %cst_170 : f32 to vector<2x32xf32>
    %485 = arith.addf %484, %483 : vector<2x32xf32>
    %486 = arith.divf %484, %485 : vector<2x32xf32>
    %487 = arith.mulf %478, %419 : vector<2x32xf32>
    %488 = arith.mulf %472, %480 : vector<2x32xf32>
    %489 = arith.addf %487, %488 : vector<2x32xf32>
    %490 = math.tanh %489 : vector<2x32xf32>
    %491 = arith.mulf %486, %490 : vector<2x32xf32>
    %492 = arith.truncf %466 : vector<2x32xf32> to vector<2x32xbf16>
    %c5_171 = arith.constant 5 : index
    %c0_172 = arith.constant 0 : index
    %c0_173 = arith.constant 0 : index
    %493 = vector.load %arg6[%c5_171, %c0_172, %c0_173] : memref<8x2x64xbf16, #tpu.memory_space<vmem>>, vector<1x2x32xbf16>
    %494 = vector.shape_cast %493 : vector<1x2x32xbf16> to vector<2x32xbf16>
    %495 = vector.shape_cast %492 : vector<2x32xbf16> to vector<1x2x32xbf16>
    tpu.vector_store %arg6[%c5_171, %c0_172, %c0_173], %495 {strides = array<i32>} : memref<8x2x64xbf16, #tpu.memory_space<vmem>>, vector<1x2x32xbf16>,
    %496 = arith.truncf %491 : vector<2x32xf32> to vector<2x32xbf16>
    %c2_174 = arith.constant 2 : index
    %c0_175 = arith.constant 0 : index
    %c32_176 = arith.constant 32 : index
    %497 = vector.load %arg6[%c2_174, %c0_175, %c32_176] : memref<8x2x64xbf16, #tpu.memory_space<vmem>>, vector<1x2x32xbf16>
    %498 = vector.shape_cast %497 : vector<1x2x32xbf16> to vector<2x32xbf16>
    %499 = vector.shape_cast %496 : vector<2x32xbf16> to vector<1x2x32xbf16>
    tpu.vector_store %arg6[%c2_174, %c0_175, %c32_176], %499 {strides = array<i32>} : memref<8x2x64xbf16, #tpu.memory_space<vmem>>, vector<1x2x32xbf16>,
    %c6_177 = arith.constant 6 : index
    %c0_178 = arith.constant 0 : index
    %c0_179 = arith.constant 0 : index
    %500 = vector.load %arg7[%c6_177, %c0_178, %c0_179] : memref<8x2x256xbf16, #tpu.memory_space<vmem>>, vector<1x2x128xbf16>
    %501 = vector.shape_cast %500 : vector<1x2x128xbf16> to vector<2x128xbf16>
    %502 = arith.extf %501 : vector<2x128xbf16> to vector<2x128xf32>
    %503 = arith.truncf %466 : vector<2x32xf32> to vector<2x32xbf16>
    %cst_180 = arith.constant dense<0.000000e+00> : vector<2x128xf32>
    %504 = tpu.matmul %503, %74, %cst_180 {dimension_numbers = #tpu.dot_dimension_numbers<[1], [0], [0], [1], [0, 0, 1, 1], [], []>} : vector<2x32xbf16>, vector<32x128xbf16>, vector<2x128xf32> -> vector<2x128xf32>
    %505 = arith.addf %502, %504 : vector<2x128xf32>
    %c1_181 = arith.constant 1 : index
    %c0_182 = arith.constant 0 : index
    %c128_183 = arith.constant 128 : index
    %506 = vector.load %arg7[%c1_181, %c0_182, %c128_183] : memref<8x2x256xbf16, #tpu.memory_space<vmem>>, vector<1x2x128xbf16>
    %507 = vector.shape_cast %506 : vector<1x2x128xbf16> to vector<2x128xbf16>
    %508 = arith.extf %507 : vector<2x128xbf16> to vector<2x128xf32>
    %509 = arith.truncf %491 : vector<2x32xf32> to vector<2x32xbf16>
    %cst_184 = arith.constant dense<0.000000e+00> : vector<2x128xf32>
    %510 = tpu.matmul %509, %75, %cst_184 {dimension_numbers = #tpu.dot_dimension_numbers<[1], [0], [0], [1], [0, 0, 1, 1], [], []>} : vector<2x32xbf16>, vector<32x128xbf16>, vector<2x128xf32> -> vector<2x128xf32>
    %511 = arith.addf %508, %510 : vector<2x128xf32>
    %512 = vector.extract_strided_slice %505 {offsets = [0, 0], sizes = [2, 32], strides = [1, 1]} : vector<2x128xf32> to vector<2x32xf32>
    %513 = arith.negf %512 : vector<2x32xf32>
    %514 = math.exp %513 : vector<2x32xf32>
    %cst_185 = arith.constant 1.000000e+00 : f32
    %515 = vector.broadcast %cst_185 : f32 to vector<2x32xf32>
    %516 = arith.addf %515, %514 : vector<2x32xf32>
    %517 = arith.divf %515, %516 : vector<2x32xf32>
    %518 = vector.extract_strided_slice %505 {offsets = [0, 32], sizes = [2, 32], strides = [1, 1]} : vector<2x128xf32> to vector<2x32xf32>
    %519 = arith.negf %518 : vector<2x32xf32>
    %520 = math.exp %519 : vector<2x32xf32>
    %cst_186 = arith.constant 1.000000e+00 : f32
    %521 = vector.broadcast %cst_186 : f32 to vector<2x32xf32>
    %522 = arith.addf %521, %520 : vector<2x32xf32>
    %523 = arith.divf %521, %522 : vector<2x32xf32>
    %524 = vector.extract_strided_slice %505 {offsets = [0, 64], sizes = [2, 32], strides = [1, 1]} : vector<2x128xf32> to vector<2x32xf32>
    %525 = math.tanh %524 : vector<2x32xf32>
    %526 = vector.extract_strided_slice %505 {offsets = [0, 96], sizes = [2, 32], strides = [1, 1]} : vector<2x128xf32> to vector<2x32xf32>
    %527 = arith.negf %526 : vector<2x32xf32>
    %528 = math.exp %527 : vector<2x32xf32>
    %cst_187 = arith.constant 1.000000e+00 : f32
    %529 = vector.broadcast %cst_187 : f32 to vector<2x32xf32>
    %530 = arith.addf %529, %528 : vector<2x32xf32>
    %531 = arith.divf %529, %530 : vector<2x32xf32>
    %532 = arith.mulf %523, %464 : vector<2x32xf32>
    %533 = arith.mulf %517, %525 : vector<2x32xf32>
    %534 = arith.addf %532, %533 : vector<2x32xf32>
    %535 = math.tanh %534 : vector<2x32xf32>
    %536 = arith.mulf %531, %535 : vector<2x32xf32>
    %537 = vector.extract_strided_slice %511 {offsets = [0, 0], sizes = [2, 32], strides = [1, 1]} : vector<2x128xf32> to vector<2x32xf32>
    %538 = arith.negf %537 : vector<2x32xf32>
    %539 = math.exp %538 : vector<2x32xf32>
    %cst_188 = arith.constant 1.000000e+00 : f32
    %540 = vector.broadcast %cst_188 : f32 to vector<2x32xf32>
    %541 = arith.addf %540, %539 : vector<2x32xf32>
    %542 = arith.divf %540, %541 : vector<2x32xf32>
    %543 = vector.extract_strided_slice %511 {offsets = [0, 32], sizes = [2, 32], strides = [1, 1]} : vector<2x128xf32> to vector<2x32xf32>
    %544 = arith.negf %543 : vector<2x32xf32>
    %545 = math.exp %544 : vector<2x32xf32>
    %cst_189 = arith.constant 1.000000e+00 : f32
    %546 = vector.broadcast %cst_189 : f32 to vector<2x32xf32>
    %547 = arith.addf %546, %545 : vector<2x32xf32>
    %548 = arith.divf %546, %547 : vector<2x32xf32>
    %549 = vector.extract_strided_slice %511 {offsets = [0, 64], sizes = [2, 32], strides = [1, 1]} : vector<2x128xf32> to vector<2x32xf32>
    %550 = math.tanh %549 : vector<2x32xf32>
    %551 = vector.extract_strided_slice %511 {offsets = [0, 96], sizes = [2, 32], strides = [1, 1]} : vector<2x128xf32> to vector<2x32xf32>
    %552 = arith.negf %551 : vector<2x32xf32>
    %553 = math.exp %552 : vector<2x32xf32>
    %cst_190 = arith.constant 1.000000e+00 : f32
    %554 = vector.broadcast %cst_190 : f32 to vector<2x32xf32>
    %555 = arith.addf %554, %553 : vector<2x32xf32>
    %556 = arith.divf %554, %555 : vector<2x32xf32>
    %557 = arith.mulf %548, %489 : vector<2x32xf32>
    %558 = arith.mulf %542, %550 : vector<2x32xf32>
    %559 = arith.addf %557, %558 : vector<2x32xf32>
    %560 = math.tanh %559 : vector<2x32xf32>
    %561 = arith.mulf %556, %560 : vector<2x32xf32>
    %562 = arith.truncf %536 : vector<2x32xf32> to vector<2x32xbf16>
    %c6_191 = arith.constant 6 : index
    %c0_192 = arith.constant 0 : index
    %c0_193 = arith.constant 0 : index
    %563 = vector.load %arg6[%c6_191, %c0_192, %c0_193] : memref<8x2x64xbf16, #tpu.memory_space<vmem>>, vector<1x2x32xbf16>
    %564 = vector.shape_cast %563 : vector<1x2x32xbf16> to vector<2x32xbf16>
    %565 = vector.shape_cast %562 : vector<2x32xbf16> to vector<1x2x32xbf16>
    tpu.vector_store %arg6[%c6_191, %c0_192, %c0_193], %565 {strides = array<i32>} : memref<8x2x64xbf16, #tpu.memory_space<vmem>>, vector<1x2x32xbf16>,
    %566 = arith.truncf %561 : vector<2x32xf32> to vector<2x32xbf16>
    %c1_194 = arith.constant 1 : index
    %c0_195 = arith.constant 0 : index
    %c32_196 = arith.constant 32 : index
    %567 = vector.load %arg6[%c1_194, %c0_195, %c32_196] : memref<8x2x64xbf16, #tpu.memory_space<vmem>>, vector<1x2x32xbf16>
    %568 = vector.shape_cast %567 : vector<1x2x32xbf16> to vector<2x32xbf16>
    %569 = vector.shape_cast %566 : vector<2x32xbf16> to vector<1x2x32xbf16>
    tpu.vector_store %arg6[%c1_194, %c0_195, %c32_196], %569 {strides = array<i32>} : memref<8x2x64xbf16, #tpu.memory_space<vmem>>, vector<1x2x32xbf16>,
    %c7_197 = arith.constant 7 : index
    %c0_198 = arith.constant 0 : index
    %c0_199 = arith.constant 0 : index
    %570 = vector.load %arg7[%c7_197, %c0_198, %c0_199] : memref<8x2x256xbf16, #tpu.memory_space<vmem>>, vector<1x2x128xbf16>
    %571 = vector.shape_cast %570 : vector<1x2x128xbf16> to vector<2x128xbf16>
    %572 = arith.extf %571 : vector<2x128xbf16> to vector<2x128xf32>
    %573 = arith.truncf %536 : vector<2x32xf32> to vector<2x32xbf16>
    %cst_200 = arith.constant dense<0.000000e+00> : vector<2x128xf32>
    %574 = tpu.matmul %573, %74, %cst_200 {dimension_numbers = #tpu.dot_dimension_numbers<[1], [0], [0], [1], [0, 0, 1, 1], [], []>} : vector<2x32xbf16>, vector<32x128xbf16>, vector<2x128xf32> -> vector<2x128xf32>
    %575 = arith.addf %572, %574 : vector<2x128xf32>
    %c0_201 = arith.constant 0 : index
    %c0_202 = arith.constant 0 : index
    %c128_203 = arith.constant 128 : index
    %576 = vector.load %arg7[%c0_201, %c0_202, %c128_203] : memref<8x2x256xbf16, #tpu.memory_space<vmem>>, vector<1x2x128xbf16>
    %577 = vector.shape_cast %576 : vector<1x2x128xbf16> to vector<2x128xbf16>
    %578 = arith.extf %577 : vector<2x128xbf16> to vector<2x128xf32>
    %579 = arith.truncf %561 : vector<2x32xf32> to vector<2x32xbf16>
    %cst_204 = arith.constant dense<0.000000e+00> : vector<2x128xf32>
    %580 = tpu.matmul %579, %75, %cst_204 {dimension_numbers = #tpu.dot_dimension_numbers<[1], [0], [0], [1], [0, 0, 1, 1], [], []>} : vector<2x32xbf16>, vector<32x128xbf16>, vector<2x128xf32> -> vector<2x128xf32>
    %581 = arith.addf %578, %580 : vector<2x128xf32>
    %582 = vector.extract_strided_slice %575 {offsets = [0, 0], sizes = [2, 32], strides = [1, 1]} : vector<2x128xf32> to vector<2x32xf32>
    %583 = arith.negf %582 : vector<2x32xf32>
    %584 = math.exp %583 : vector<2x32xf32>
    %cst_205 = arith.constant 1.000000e+00 : f32
    %585 = vector.broadcast %cst_205 : f32 to vector<2x32xf32>
    %586 = arith.addf %585, %584 : vector<2x32xf32>
    %587 = arith.divf %585, %586 : vector<2x32xf32>
    %588 = vector.extract_strided_slice %575 {offsets = [0, 32], sizes = [2, 32], strides = [1, 1]} : vector<2x128xf32> to vector<2x32xf32>
    %589 = arith.negf %588 : vector<2x32xf32>
    %590 = math.exp %589 : vector<2x32xf32>
    %cst_206 = arith.constant 1.000000e+00 : f32
    %591 = vector.broadcast %cst_206 : f32 to vector<2x32xf32>
    %592 = arith.addf %591, %590 : vector<2x32xf32>
    %593 = arith.divf %591, %592 : vector<2x32xf32>
    %594 = vector.extract_strided_slice %575 {offsets = [0, 64], sizes = [2, 32], strides = [1, 1]} : vector<2x128xf32> to vector<2x32xf32>
    %595 = math.tanh %594 : vector<2x32xf32>
    %596 = vector.extract_strided_slice %575 {offsets = [0, 96], sizes = [2, 32], strides = [1, 1]} : vector<2x128xf32> to vector<2x32xf32>
    %597 = arith.negf %596 : vector<2x32xf32>
    %598 = math.exp %597 : vector<2x32xf32>
    %cst_207 = arith.constant 1.000000e+00 : f32
    %599 = vector.broadcast %cst_207 : f32 to vector<2x32xf32>
    %600 = arith.addf %599, %598 : vector<2x32xf32>
    %601 = arith.divf %599, %600 : vector<2x32xf32>
    %602 = arith.mulf %593, %534 : vector<2x32xf32>
    %603 = arith.mulf %587, %595 : vector<2x32xf32>
    %604 = arith.addf %602, %603 : vector<2x32xf32>
    %605 = math.tanh %604 : vector<2x32xf32>
    %606 = arith.mulf %601, %605 : vector<2x32xf32>
    %607 = vector.extract_strided_slice %581 {offsets = [0, 0], sizes = [2, 32], strides = [1, 1]} : vector<2x128xf32> to vector<2x32xf32>
    %608 = arith.negf %607 : vector<2x32xf32>
    %609 = math.exp %608 : vector<2x32xf32>
    %cst_208 = arith.constant 1.000000e+00 : f32
    %610 = vector.broadcast %cst_208 : f32 to vector<2x32xf32>
    %611 = arith.addf %610, %609 : vector<2x32xf32>
    %612 = arith.divf %610, %611 : vector<2x32xf32>
    %613 = vector.extract_strided_slice %581 {offsets = [0, 32], sizes = [2, 32], strides = [1, 1]} : vector<2x128xf32> to vector<2x32xf32>
    %614 = arith.negf %613 : vector<2x32xf32>
    %615 = math.exp %614 : vector<2x32xf32>
    %cst_209 = arith.constant 1.000000e+00 : f32
    %616 = vector.broadcast %cst_209 : f32 to vector<2x32xf32>
    %617 = arith.addf %616, %615 : vector<2x32xf32>
    %618 = arith.divf %616, %617 : vector<2x32xf32>
    %619 = vector.extract_strided_slice %581 {offsets = [0, 64], sizes = [2, 32], strides = [1, 1]} : vector<2x128xf32> to vector<2x32xf32>
    %620 = math.tanh %619 : vector<2x32xf32>
    %621 = vector.extract_strided_slice %581 {offsets = [0, 96], sizes = [2, 32], strides = [1, 1]} : vector<2x128xf32> to vector<2x32xf32>
    %622 = arith.negf %621 : vector<2x32xf32>
    %623 = math.exp %622 : vector<2x32xf32>
    %cst_210 = arith.constant 1.000000e+00 : f32
    %624 = vector.broadcast %cst_210 : f32 to vector<2x32xf32>
    %625 = arith.addf %624, %623 : vector<2x32xf32>
    %626 = arith.divf %624, %625 : vector<2x32xf32>
    %627 = arith.mulf %618, %559 : vector<2x32xf32>
    %628 = arith.mulf %612, %620 : vector<2x32xf32>
    %629 = arith.addf %627, %628 : vector<2x32xf32>
    %630 = math.tanh %629 : vector<2x32xf32>
    %631 = arith.mulf %626, %630 : vector<2x32xf32>
    %632 = arith.truncf %606 : vector<2x32xf32> to vector<2x32xbf16>
    %c7_211 = arith.constant 7 : index
    %c0_212 = arith.constant 0 : index
    %c0_213 = arith.constant 0 : index
    %633 = vector.load %arg6[%c7_211, %c0_212, %c0_213] : memref<8x2x64xbf16, #tpu.memory_space<vmem>>, vector<1x2x32xbf16>
    %634 = vector.shape_cast %633 : vector<1x2x32xbf16> to vector<2x32xbf16>
    %635 = vector.shape_cast %632 : vector<2x32xbf16> to vector<1x2x32xbf16>
    tpu.vector_store %arg6[%c7_211, %c0_212, %c0_213], %635 {strides = array<i32>} : memref<8x2x64xbf16, #tpu.memory_space<vmem>>, vector<1x2x32xbf16>,
    %636 = arith.truncf %631 : vector<2x32xf32> to vector<2x32xbf16>
    %c0_214 = arith.constant 0 : index
    %c0_215 = arith.constant 0 : index
    %c32_216 = arith.constant 32 : index
    %637 = vector.load %arg6[%c0_214, %c0_215, %c32_216] : memref<8x2x64xbf16, #tpu.memory_space<vmem>>, vector<1x2x32xbf16>
    %638 = vector.shape_cast %637 : vector<1x2x32xbf16> to vector<2x32xbf16>
    %639 = vector.shape_cast %636 : vector<2x32xbf16> to vector<1x2x32xbf16>
    tpu.vector_store %arg6[%c0_214, %c0_215, %c32_216], %639 {strides = array<i32>} : memref<8x2x64xbf16, #tpu.memory_space<vmem>>, vector<1x2x32xbf16>,
    return
  }
  func.func @transform_0(%arg0: i32) -> (i32, i32, i32) {
    %c0_i32 = arith.constant 0 : i32
    %c0_i32_0 = arith.constant 0 : i32
    %c0_i32_1 = arith.constant 0 : i32
    return %c0_i32, %arg0, %c0_i32_0 : i32, i32, i32
  }
  func.func @transform_1(%arg0: i32) -> (i32, i32) {
    %c0_i32 = arith.constant 0 : i32
    %c0_i32_0 = arith.constant 0 : i32
    %c0_i32_1 = arith.constant 0 : i32
    return %c0_i32, %c0_i32_0 : i32, i32
  }
  func.func @transform_2(%arg0: i32) -> (i32, i32) {
    %c0_i32 = arith.constant 0 : i32
    %c0_i32_0 = arith.constant 0 : i32
    %c0_i32_1 = arith.constant 0 : i32
    return %c0_i32, %c0_i32_0 : i32, i32
  }
  func.func @transform_3(%arg0: i32) -> (i32, i32) {
    %c0_i32 = arith.constant 0 : i32
    %c0_i32_0 = arith.constant 0 : i32
    %c0_i32_1 = arith.constant 0 : i32
    return %c0_i32, %c0_i32_0 : i32, i32
  }
  func.func @transform_4(%arg0: i32) -> (i32, i32) {
    %c0_i32 = arith.constant 0 : i32
    %c0_i32_0 = arith.constant 0 : i32
    %c0_i32_1 = arith.constant 0 : i32
    return %c0_i32, %c0_i32_0 : i32, i32
  }
  func.func @transform_5(%arg0: i32) -> (i32, i32, i32) {
    %c0_i32 = arith.constant 0 : i32
    %c0_i32_0 = arith.constant 0 : i32
    %c0_i32_1 = arith.constant 0 : i32
    return %c0_i32, %arg0, %c0_i32_0 : i32, i32, i32
  }
}

module attributes {stable_mosaic.version = 11 : i64} {
  func.func @_bilstm_kernel(%arg0: i32, %arg1: memref<8x2x16xbf16, #tpu.memory_space<vmem>>, %arg2: memref<16x256xbf16, #tpu.memory_space<vmem>>, %arg3: memref<32x128xbf16, #tpu.memory_space<vmem>>, %arg4: memref<32x128xbf16, #tpu.memory_space<vmem>>, %arg5: memref<1x256xf32, #tpu.memory_space<vmem>>, %arg6: memref<8x2x64xbf16, #tpu.memory_space<vmem>>, %arg7: memref<8x2x256xbf16, #tpu.memory_space<vmem>>) attributes {dimension_semantics = [#tpu.dimension_semantics<parallel>], iteration_bounds = array<i64: 1>, scalar_prefetch = 0 : i64, scratch_operands = 1 : i64, tpu.core_type = #tpu.core_type<tc>, window_params = [{transform_indices = @transform_0, window_bounds = array<i64: 8, 2, 16>}, {pipeline_mode = #tpu.pipeline_mode<synchronous>, transform_indices = @transform_1, window_bounds = array<i64: 16, 256>}, {pipeline_mode = #tpu.pipeline_mode<synchronous>, transform_indices = @transform_2, window_bounds = array<i64: 32, 128>}, {pipeline_mode = #tpu.pipeline_mode<synchronous>, transform_indices = @transform_3, window_bounds = array<i64: 32, 128>}, {pipeline_mode = #tpu.pipeline_mode<synchronous>, transform_indices = @transform_4, window_bounds = array<i64: 1, 256>}, {transform_indices = @transform_5, window_bounds = array<i64: 8, 2, 64>}]} {
    %c0 = arith.constant 0 : index
    %c0_0 = arith.constant 0 : index
    %0 = vector.load %arg2[%c0, %c0_0] : memref<16x256xbf16, #tpu.memory_space<vmem>>, vector<16x256xbf16>
    %c0_1 = arith.constant 0 : index
    %c0_2 = arith.constant 0 : index
    %1 = vector.load %arg5[%c0_1, %c0_2] : memref<1x256xf32, #tpu.memory_space<vmem>>, vector<1x256xf32>
    %c0_3 = arith.constant 0 : index
    %c0_4 = arith.constant 0 : index
    %c0_5 = arith.constant 0 : index
    %2 = vector.load %arg1[%c0_3, %c0_4, %c0_5] : memref<8x2x16xbf16, #tpu.memory_space<vmem>>, vector<1x2x16xbf16>
    %3 = vector.shape_cast %2 : vector<1x2x16xbf16> to vector<2x16xbf16>
    %cst = arith.constant dense<0.000000e+00> : vector<2x256xf32>
    %4 = tpu.matmul %3, %0, %cst {dimension_numbers = #tpu.dot_dimension_numbers<[1], [0], [0], [1], [0, 0, 1, 1], [], []>} : vector<2x16xbf16>, vector<16x256xbf16>, vector<2x256xf32> -> vector<2x256xf32>
    %5 = vector.broadcast %1 : vector<1x256xf32> to vector<2x256xf32>
    %6 = arith.addf %5, %4 : vector<2x256xf32>
    %7 = arith.truncf %6 : vector<2x256xf32> to vector<2x256xbf16>
    %c0_6 = arith.constant 0 : index
    %c0_7 = arith.constant 0 : index
    %c0_8 = arith.constant 0 : index
    %8 = vector.load %arg7[%c0_6, %c0_7, %c0_8] : memref<8x2x256xbf16, #tpu.memory_space<vmem>>, vector<1x2x256xbf16>
    %9 = vector.shape_cast %8 : vector<1x2x256xbf16> to vector<2x256xbf16>
    %10 = vector.shape_cast %7 : vector<2x256xbf16> to vector<1x2x256xbf16>
    tpu.vector_store %arg7[%c0_6, %c0_7, %c0_8], %10 {strides = array<i32>} : memref<8x2x256xbf16, #tpu.memory_space<vmem>>, vector<1x2x256xbf16>,
    %c1 = arith.constant 1 : index
    %c0_9 = arith.constant 0 : index
    %c0_10 = arith.constant 0 : index
    %11 = vector.load %arg1[%c1, %c0_9, %c0_10] : memref<8x2x16xbf16, #tpu.memory_space<vmem>>, vector<1x2x16xbf16>
    %12 = vector.shape_cast %11 : vector<1x2x16xbf16> to vector<2x16xbf16>
    %cst_11 = arith.constant dense<0.000000e+00> : vector<2x256xf32>
    %13 = tpu.matmul %12, %0, %cst_11 {dimension_numbers = #tpu.dot_dimension_numbers<[1], [0], [0], [1], [0, 0, 1, 1], [], []>} : vector<2x16xbf16>, vector<16x256xbf16>, vector<2x256xf32> -> vector<2x256xf32>
    %14 = vector.broadcast %1 : vector<1x256xf32> to vector<2x256xf32>
    %15 = arith.addf %14, %13 : vector<2x256xf32>
    %16 = arith.truncf %15 : vector<2x256xf32> to vector<2x256xbf16>
    %c1_12 = arith.constant 1 : index
    %c0_13 = arith.constant 0 : index
    %c0_14 = arith.constant 0 : index
    %17 = vector.load %arg7[%c1_12, %c0_13, %c0_14] : memref<8x2x256xbf16, #tpu.memory_space<vmem>>, vector<1x2x256xbf16>
    %18 = vector.shape_cast %17 : vector<1x2x256xbf16> to vector<2x256xbf16>
    %19 = vector.shape_cast %16 : vector<2x256xbf16> to vector<1x2x256xbf16>
    tpu.vector_store %arg7[%c1_12, %c0_13, %c0_14], %19 {strides = array<i32>} : memref<8x2x256xbf16, #tpu.memory_space<vmem>>, vector<1x2x256xbf16>,
    %c2 = arith.constant 2 : index
    %c0_15 = arith.constant 0 : index
    %c0_16 = arith.constant 0 : index
    %20 = vector.load %arg1[%c2, %c0_15, %c0_16] : memref<8x2x16xbf16, #tpu.memory_space<vmem>>, vector<1x2x16xbf16>
    %21 = vector.shape_cast %20 : vector<1x2x16xbf16> to vector<2x16xbf16>
    %cst_17 = arith.constant dense<0.000000e+00> : vector<2x256xf32>
    %22 = tpu.matmul %21, %0, %cst_17 {dimension_numbers = #tpu.dot_dimension_numbers<[1], [0], [0], [1], [0, 0, 1, 1], [], []>} : vector<2x16xbf16>, vector<16x256xbf16>, vector<2x256xf32> -> vector<2x256xf32>
    %23 = vector.broadcast %1 : vector<1x256xf32> to vector<2x256xf32>
    %24 = arith.addf %23, %22 : vector<2x256xf32>
    %25 = arith.truncf %24 : vector<2x256xf32> to vector<2x256xbf16>
    %c2_18 = arith.constant 2 : index
    %c0_19 = arith.constant 0 : index
    %c0_20 = arith.constant 0 : index
    %26 = vector.load %arg7[%c2_18, %c0_19, %c0_20] : memref<8x2x256xbf16, #tpu.memory_space<vmem>>, vector<1x2x256xbf16>
    %27 = vector.shape_cast %26 : vector<1x2x256xbf16> to vector<2x256xbf16>
    %28 = vector.shape_cast %25 : vector<2x256xbf16> to vector<1x2x256xbf16>
    tpu.vector_store %arg7[%c2_18, %c0_19, %c0_20], %28 {strides = array<i32>} : memref<8x2x256xbf16, #tpu.memory_space<vmem>>, vector<1x2x256xbf16>,
    %c3 = arith.constant 3 : index
    %c0_21 = arith.constant 0 : index
    %c0_22 = arith.constant 0 : index
    %29 = vector.load %arg1[%c3, %c0_21, %c0_22] : memref<8x2x16xbf16, #tpu.memory_space<vmem>>, vector<1x2x16xbf16>
    %30 = vector.shape_cast %29 : vector<1x2x16xbf16> to vector<2x16xbf16>
    %cst_23 = arith.constant dense<0.000000e+00> : vector<2x256xf32>
    %31 = tpu.matmul %30, %0, %cst_23 {dimension_numbers = #tpu.dot_dimension_numbers<[1], [0], [0], [1], [0, 0, 1, 1], [], []>} : vector<2x16xbf16>, vector<16x256xbf16>, vector<2x256xf32> -> vector<2x256xf32>
    %32 = vector.broadcast %1 : vector<1x256xf32> to vector<2x256xf32>
    %33 = arith.addf %32, %31 : vector<2x256xf32>
    %34 = arith.truncf %33 : vector<2x256xf32> to vector<2x256xbf16>
    %c3_24 = arith.constant 3 : index
    %c0_25 = arith.constant 0 : index
    %c0_26 = arith.constant 0 : index
    %35 = vector.load %arg7[%c3_24, %c0_25, %c0_26] : memref<8x2x256xbf16, #tpu.memory_space<vmem>>, vector<1x2x256xbf16>
    %36 = vector.shape_cast %35 : vector<1x2x256xbf16> to vector<2x256xbf16>
    %37 = vector.shape_cast %34 : vector<2x256xbf16> to vector<1x2x256xbf16>
    tpu.vector_store %arg7[%c3_24, %c0_25, %c0_26], %37 {strides = array<i32>} : memref<8x2x256xbf16, #tpu.memory_space<vmem>>, vector<1x2x256xbf16>,
    %c4 = arith.constant 4 : index
    %c0_27 = arith.constant 0 : index
    %c0_28 = arith.constant 0 : index
    %38 = vector.load %arg1[%c4, %c0_27, %c0_28] : memref<8x2x16xbf16, #tpu.memory_space<vmem>>, vector<1x2x16xbf16>
    %39 = vector.shape_cast %38 : vector<1x2x16xbf16> to vector<2x16xbf16>
    %cst_29 = arith.constant dense<0.000000e+00> : vector<2x256xf32>
    %40 = tpu.matmul %39, %0, %cst_29 {dimension_numbers = #tpu.dot_dimension_numbers<[1], [0], [0], [1], [0, 0, 1, 1], [], []>} : vector<2x16xbf16>, vector<16x256xbf16>, vector<2x256xf32> -> vector<2x256xf32>
    %41 = vector.broadcast %1 : vector<1x256xf32> to vector<2x256xf32>
    %42 = arith.addf %41, %40 : vector<2x256xf32>
    %43 = arith.truncf %42 : vector<2x256xf32> to vector<2x256xbf16>
    %c4_30 = arith.constant 4 : index
    %c0_31 = arith.constant 0 : index
    %c0_32 = arith.constant 0 : index
    %44 = vector.load %arg7[%c4_30, %c0_31, %c0_32] : memref<8x2x256xbf16, #tpu.memory_space<vmem>>, vector<1x2x256xbf16>
    %45 = vector.shape_cast %44 : vector<1x2x256xbf16> to vector<2x256xbf16>
    %46 = vector.shape_cast %43 : vector<2x256xbf16> to vector<1x2x256xbf16>
    tpu.vector_store %arg7[%c4_30, %c0_31, %c0_32], %46 {strides = array<i32>} : memref<8x2x256xbf16, #tpu.memory_space<vmem>>, vector<1x2x256xbf16>,
    %c5 = arith.constant 5 : index
    %c0_33 = arith.constant 0 : index
    %c0_34 = arith.constant 0 : index
    %47 = vector.load %arg1[%c5, %c0_33, %c0_34] : memref<8x2x16xbf16, #tpu.memory_space<vmem>>, vector<1x2x16xbf16>
    %48 = vector.shape_cast %47 : vector<1x2x16xbf16> to vector<2x16xbf16>
    %cst_35 = arith.constant dense<0.000000e+00> : vector<2x256xf32>
    %49 = tpu.matmul %48, %0, %cst_35 {dimension_numbers = #tpu.dot_dimension_numbers<[1], [0], [0], [1], [0, 0, 1, 1], [], []>} : vector<2x16xbf16>, vector<16x256xbf16>, vector<2x256xf32> -> vector<2x256xf32>
    %50 = vector.broadcast %1 : vector<1x256xf32> to vector<2x256xf32>
    %51 = arith.addf %50, %49 : vector<2x256xf32>
    %52 = arith.truncf %51 : vector<2x256xf32> to vector<2x256xbf16>
    %c5_36 = arith.constant 5 : index
    %c0_37 = arith.constant 0 : index
    %c0_38 = arith.constant 0 : index
    %53 = vector.load %arg7[%c5_36, %c0_37, %c0_38] : memref<8x2x256xbf16, #tpu.memory_space<vmem>>, vector<1x2x256xbf16>
    %54 = vector.shape_cast %53 : vector<1x2x256xbf16> to vector<2x256xbf16>
    %55 = vector.shape_cast %52 : vector<2x256xbf16> to vector<1x2x256xbf16>
    tpu.vector_store %arg7[%c5_36, %c0_37, %c0_38], %55 {strides = array<i32>} : memref<8x2x256xbf16, #tpu.memory_space<vmem>>, vector<1x2x256xbf16>,
    %c6 = arith.constant 6 : index
    %c0_39 = arith.constant 0 : index
    %c0_40 = arith.constant 0 : index
    %56 = vector.load %arg1[%c6, %c0_39, %c0_40] : memref<8x2x16xbf16, #tpu.memory_space<vmem>>, vector<1x2x16xbf16>
    %57 = vector.shape_cast %56 : vector<1x2x16xbf16> to vector<2x16xbf16>
    %cst_41 = arith.constant dense<0.000000e+00> : vector<2x256xf32>
    %58 = tpu.matmul %57, %0, %cst_41 {dimension_numbers = #tpu.dot_dimension_numbers<[1], [0], [0], [1], [0, 0, 1, 1], [], []>} : vector<2x16xbf16>, vector<16x256xbf16>, vector<2x256xf32> -> vector<2x256xf32>
    %59 = vector.broadcast %1 : vector<1x256xf32> to vector<2x256xf32>
    %60 = arith.addf %59, %58 : vector<2x256xf32>
    %61 = arith.truncf %60 : vector<2x256xf32> to vector<2x256xbf16>
    %c6_42 = arith.constant 6 : index
    %c0_43 = arith.constant 0 : index
    %c0_44 = arith.constant 0 : index
    %62 = vector.load %arg7[%c6_42, %c0_43, %c0_44] : memref<8x2x256xbf16, #tpu.memory_space<vmem>>, vector<1x2x256xbf16>
    %63 = vector.shape_cast %62 : vector<1x2x256xbf16> to vector<2x256xbf16>
    %64 = vector.shape_cast %61 : vector<2x256xbf16> to vector<1x2x256xbf16>
    tpu.vector_store %arg7[%c6_42, %c0_43, %c0_44], %64 {strides = array<i32>} : memref<8x2x256xbf16, #tpu.memory_space<vmem>>, vector<1x2x256xbf16>,
    %c7 = arith.constant 7 : index
    %c0_45 = arith.constant 0 : index
    %c0_46 = arith.constant 0 : index
    %65 = vector.load %arg1[%c7, %c0_45, %c0_46] : memref<8x2x16xbf16, #tpu.memory_space<vmem>>, vector<1x2x16xbf16>
    %66 = vector.shape_cast %65 : vector<1x2x16xbf16> to vector<2x16xbf16>
    %cst_47 = arith.constant dense<0.000000e+00> : vector<2x256xf32>
    %67 = tpu.matmul %66, %0, %cst_47 {dimension_numbers = #tpu.dot_dimension_numbers<[1], [0], [0], [1], [0, 0, 1, 1], [], []>} : vector<2x16xbf16>, vector<16x256xbf16>, vector<2x256xf32> -> vector<2x256xf32>
    %68 = vector.broadcast %1 : vector<1x256xf32> to vector<2x256xf32>
    %69 = arith.addf %68, %67 : vector<2x256xf32>
    %70 = arith.truncf %69 : vector<2x256xf32> to vector<2x256xbf16>
    %c7_48 = arith.constant 7 : index
    %c0_49 = arith.constant 0 : index
    %c0_50 = arith.constant 0 : index
    %71 = vector.load %arg7[%c7_48, %c0_49, %c0_50] : memref<8x2x256xbf16, #tpu.memory_space<vmem>>, vector<1x2x256xbf16>
    %72 = vector.shape_cast %71 : vector<1x2x256xbf16> to vector<2x256xbf16>
    %73 = vector.shape_cast %70 : vector<2x256xbf16> to vector<1x2x256xbf16>
    tpu.vector_store %arg7[%c7_48, %c0_49, %c0_50], %73 {strides = array<i32>} : memref<8x2x256xbf16, #tpu.memory_space<vmem>>, vector<1x2x256xbf16>,
    %c0_51 = arith.constant 0 : index
    %c0_52 = arith.constant 0 : index
    %74 = vector.load %arg3[%c0_51, %c0_52] : memref<32x128xbf16, #tpu.memory_space<vmem>>, vector<32x128xbf16>
    %c0_53 = arith.constant 0 : index
    %c0_54 = arith.constant 0 : index
    %75 = vector.load %arg4[%c0_53, %c0_54] : memref<32x128xbf16, #tpu.memory_space<vmem>>, vector<32x128xbf16>
    %cst_55 = arith.constant 0.000000e+00 : f32
    %76 = vector.broadcast %cst_55 : f32 to vector<2x32xf32>
    %cst_56 = arith.constant 0.000000e+00 : f32
    %77 = vector.broadcast %cst_56 : f32 to vector<2x32xf32>
    %cst_57 = arith.constant 0.000000e+00 : f32
    %78 = vector.broadcast %cst_57 : f32 to vector<2x32xf32>
    %cst_58 = arith.constant 0.000000e+00 : f32
    %79 = vector.broadcast %cst_58 : f32 to vector<2x32xf32>
    %c0_59 = arith.constant 0 : index
    %c0_60 = arith.constant 0 : index
    %c0_61 = arith.constant 0 : index
    %80 = vector.load %arg7[%c0_59, %c0_60, %c0_61] : memref<8x2x256xbf16, #tpu.memory_space<vmem>>, vector<1x2x128xbf16>
    %81 = vector.shape_cast %80 : vector<1x2x128xbf16> to vector<2x128xbf16>
    %82 = arith.extf %81 : vector<2x128xbf16> to vector<2x128xf32>
    %83 = arith.truncf %76 : vector<2x32xf32> to vector<2x32xbf16>
    %cst_62 = arith.constant dense<0.000000e+00> : vector<2x128xf32>
    %84 = tpu.matmul %83, %74, %cst_62 {dimension_numbers = #tpu.dot_dimension_numbers<[1], [0], [0], [1], [0, 0, 1, 1], [], []>} : vector<2x32xbf16>, vector<32x128xbf16>, vector<2x128xf32> -> vector<2x128xf32>
    %85 = arith.addf %82, %84 : vector<2x128xf32>
    %c7_63 = arith.constant 7 : index
    %c0_64 = arith.constant 0 : index
    %c128 = arith.constant 128 : index
    %86 = vector.load %arg7[%c7_63, %c0_64, %c128] : memref<8x2x256xbf16, #tpu.memory_space<vmem>>, vector<1x2x128xbf16>
    %87 = vector.shape_cast %86 : vector<1x2x128xbf16> to vector<2x128xbf16>
    %88 = arith.extf %87 : vector<2x128xbf16> to vector<2x128xf32>
    %89 = arith.truncf %78 : vector<2x32xf32> to vector<2x32xbf16>
    %cst_65 = arith.constant dense<0.000000e+00> : vector<2x128xf32>
    %90 = tpu.matmul %89, %75, %cst_65 {dimension_numbers = #tpu.dot_dimension_numbers<[1], [0], [0], [1], [0, 0, 1, 1], [], []>} : vector<2x32xbf16>, vector<32x128xbf16>, vector<2x128xf32> -> vector<2x128xf32>
    %91 = arith.addf %88, %90 : vector<2x128xf32>
    %92 = vector.extract_strided_slice %85 {offsets = [0, 0], sizes = [2, 32], strides = [1, 1]} : vector<2x128xf32> to vector<2x32xf32>
    %93 = arith.negf %92 : vector<2x32xf32>
    %94 = math.exp %93 : vector<2x32xf32>
    %cst_66 = arith.constant 1.000000e+00 : f32
    %95 = vector.broadcast %cst_66 : f32 to vector<2x32xf32>
    %96 = arith.addf %95, %94 : vector<2x32xf32>
    %97 = arith.divf %95, %96 : vector<2x32xf32>
    %98 = vector.extract_strided_slice %85 {offsets = [0, 32], sizes = [2, 32], strides = [1, 1]} : vector<2x128xf32> to vector<2x32xf32>
    %99 = arith.negf %98 : vector<2x32xf32>
    %100 = math.exp %99 : vector<2x32xf32>
    %cst_67 = arith.constant 1.000000e+00 : f32
    %101 = vector.broadcast %cst_67 : f32 to vector<2x32xf32>
    %102 = arith.addf %101, %100 : vector<2x32xf32>
    %103 = arith.divf %101, %102 : vector<2x32xf32>
    %104 = vector.extract_strided_slice %85 {offsets = [0, 64], sizes = [2, 32], strides = [1, 1]} : vector<2x128xf32> to vector<2x32xf32>
    %105 = math.tanh %104 : vector<2x32xf32>
    %106 = vector.extract_strided_slice %85 {offsets = [0, 96], sizes = [2, 32], strides = [1, 1]} : vector<2x128xf32> to vector<2x32xf32>
    %107 = arith.negf %106 : vector<2x32xf32>
    %108 = math.exp %107 : vector<2x32xf32>
    %cst_68 = arith.constant 1.000000e+00 : f32
    %109 = vector.broadcast %cst_68 : f32 to vector<2x32xf32>
    %110 = arith.addf %109, %108 : vector<2x32xf32>
    %111 = arith.divf %109, %110 : vector<2x32xf32>
    %112 = arith.mulf %103, %77 : vector<2x32xf32>
    %113 = arith.mulf %97, %105 : vector<2x32xf32>
    %114 = arith.addf %112, %113 : vector<2x32xf32>
    %115 = math.tanh %114 : vector<2x32xf32>
    %116 = arith.mulf %111, %115 : vector<2x32xf32>
    %117 = vector.extract_strided_slice %91 {offsets = [0, 0], sizes = [2, 32], strides = [1, 1]} : vector<2x128xf32> to vector<2x32xf32>
    %118 = arith.negf %117 : vector<2x32xf32>
    %119 = math.exp %118 : vector<2x32xf32>
    %cst_69 = arith.constant 1.000000e+00 : f32
    %120 = vector.broadcast %cst_69 : f32 to vector<2x32xf32>
    %121 = arith.addf %120, %119 : vector<2x32xf32>
    %122 = arith.divf %120, %121 : vector<2x32xf32>
    %123 = vector.extract_strided_slice %91 {offsets = [0, 32], sizes = [2, 32], strides = [1, 1]} : vector<2x128xf32> to vector<2x32xf32>
    %124 = arith.negf %123 : vector<2x32xf32>
    %125 = math.exp %124 : vector<2x32xf32>
    %cst_70 = arith.constant 1.000000e+00 : f32
    %126 = vector.broadcast %cst_70 : f32 to vector<2x32xf32>
    %127 = arith.addf %126, %125 : vector<2x32xf32>
    %128 = arith.divf %126, %127 : vector<2x32xf32>
    %129 = vector.extract_strided_slice %91 {offsets = [0, 64], sizes = [2, 32], strides = [1, 1]} : vector<2x128xf32> to vector<2x32xf32>
    %130 = math.tanh %129 : vector<2x32xf32>
    %131 = vector.extract_strided_slice %91 {offsets = [0, 96], sizes = [2, 32], strides = [1, 1]} : vector<2x128xf32> to vector<2x32xf32>
    %132 = arith.negf %131 : vector<2x32xf32>
    %133 = math.exp %132 : vector<2x32xf32>
    %cst_71 = arith.constant 1.000000e+00 : f32
    %134 = vector.broadcast %cst_71 : f32 to vector<2x32xf32>
    %135 = arith.addf %134, %133 : vector<2x32xf32>
    %136 = arith.divf %134, %135 : vector<2x32xf32>
    %137 = arith.mulf %128, %79 : vector<2x32xf32>
    %138 = arith.mulf %122, %130 : vector<2x32xf32>
    %139 = arith.addf %137, %138 : vector<2x32xf32>
    %140 = math.tanh %139 : vector<2x32xf32>
    %141 = arith.mulf %136, %140 : vector<2x32xf32>
    %142 = arith.truncf %116 : vector<2x32xf32> to vector<2x32xbf16>
    %c0_72 = arith.constant 0 : index
    %c0_73 = arith.constant 0 : index
    %c0_74 = arith.constant 0 : index
    %143 = vector.load %arg6[%c0_72, %c0_73, %c0_74] : memref<8x2x64xbf16, #tpu.memory_space<vmem>>, vector<1x2x32xbf16>
    %144 = vector.shape_cast %143 : vector<1x2x32xbf16> to vector<2x32xbf16>
    %145 = vector.shape_cast %142 : vector<2x32xbf16> to vector<1x2x32xbf16>
    tpu.vector_store %arg6[%c0_72, %c0_73, %c0_74], %145 {strides = array<i32>} : memref<8x2x64xbf16, #tpu.memory_space<vmem>>, vector<1x2x32xbf16>,
    %146 = arith.truncf %141 : vector<2x32xf32> to vector<2x32xbf16>
    %c7_75 = arith.constant 7 : index
    %c0_76 = arith.constant 0 : index
    %c32 = arith.constant 32 : index
    %147 = vector.load %arg6[%c7_75, %c0_76, %c32] : memref<8x2x64xbf16, #tpu.memory_space<vmem>>, vector<1x2x32xbf16>
    %148 = vector.shape_cast %147 : vector<1x2x32xbf16> to vector<2x32xbf16>
    %149 = vector.shape_cast %146 : vector<2x32xbf16> to vector<1x2x32xbf16>
    tpu.vector_store %arg6[%c7_75, %c0_76, %c32], %149 {strides = array<i32>} : memref<8x2x64xbf16, #tpu.memory_space<vmem>>, vector<1x2x32xbf16>,
    %c1_77 = arith.constant 1 : index
    %c0_78 = arith.constant 0 : index
    %c0_79 = arith.constant 0 : index
    %150 = vector.load %arg7[%c1_77, %c0_78, %c0_79] : memref<8x2x256xbf16, #tpu.memory_space<vmem>>, vector<1x2x128xbf16>
    %151 = vector.shape_cast %150 : vector<1x2x128xbf16> to vector<2x128xbf16>
    %152 = arith.extf %151 : vector<2x128xbf16> to vector<2x128xf32>
    %153 = arith.truncf %116 : vector<2x32xf32> to vector<2x32xbf16>
    %cst_80 = arith.constant dense<0.000000e+00> : vector<2x128xf32>
    %154 = tpu.matmul %153, %74, %cst_80 {dimension_numbers = #tpu.dot_dimension_numbers<[1], [0], [0], [1], [0, 0, 1, 1], [], []>} : vector<2x32xbf16>, vector<32x128xbf16>, vector<2x128xf32> -> vector<2x128xf32>
    %155 = arith.addf %152, %154 : vector<2x128xf32>
    %c6_81 = arith.constant 6 : index
    %c0_82 = arith.constant 0 : index
    %c128_83 = arith.constant 128 : index
    %156 = vector.load %arg7[%c6_81, %c0_82, %c128_83] : memref<8x2x256xbf16, #tpu.memory_space<vmem>>, vector<1x2x128xbf16>
    %157 = vector.shape_cast %156 : vector<1x2x128xbf16> to vector<2x128xbf16>
    %158 = arith.extf %157 : vector<2x128xbf16> to vector<2x128xf32>
    %159 = arith.truncf %141 : vector<2x32xf32> to vector<2x32xbf16>
    %cst_84 = arith.constant dense<0.000000e+00> : vector<2x128xf32>
    %160 = tpu.matmul %159, %75, %cst_84 {dimension_numbers = #tpu.dot_dimension_numbers<[1], [0], [0], [1], [0, 0, 1, 1], [], []>} : vector<2x32xbf16>, vector<32x128xbf16>, vector<2x128xf32> -> vector<2x128xf32>
    %161 = arith.addf %158, %160 : vector<2x128xf32>
    %162 = vector.extract_strided_slice %155 {offsets = [0, 0], sizes = [2, 32], strides = [1, 1]} : vector<2x128xf32> to vector<2x32xf32>
    %163 = arith.negf %162 : vector<2x32xf32>
    %164 = math.exp %163 : vector<2x32xf32>
    %cst_85 = arith.constant 1.000000e+00 : f32
    %165 = vector.broadcast %cst_85 : f32 to vector<2x32xf32>
    %166 = arith.addf %165, %164 : vector<2x32xf32>
    %167 = arith.divf %165, %166 : vector<2x32xf32>
    %168 = vector.extract_strided_slice %155 {offsets = [0, 32], sizes = [2, 32], strides = [1, 1]} : vector<2x128xf32> to vector<2x32xf32>
    %169 = arith.negf %168 : vector<2x32xf32>
    %170 = math.exp %169 : vector<2x32xf32>
    %cst_86 = arith.constant 1.000000e+00 : f32
    %171 = vector.broadcast %cst_86 : f32 to vector<2x32xf32>
    %172 = arith.addf %171, %170 : vector<2x32xf32>
    %173 = arith.divf %171, %172 : vector<2x32xf32>
    %174 = vector.extract_strided_slice %155 {offsets = [0, 64], sizes = [2, 32], strides = [1, 1]} : vector<2x128xf32> to vector<2x32xf32>
    %175 = math.tanh %174 : vector<2x32xf32>
    %176 = vector.extract_strided_slice %155 {offsets = [0, 96], sizes = [2, 32], strides = [1, 1]} : vector<2x128xf32> to vector<2x32xf32>
    %177 = arith.negf %176 : vector<2x32xf32>
    %178 = math.exp %177 : vector<2x32xf32>
    %cst_87 = arith.constant 1.000000e+00 : f32
    %179 = vector.broadcast %cst_87 : f32 to vector<2x32xf32>
    %180 = arith.addf %179, %178 : vector<2x32xf32>
    %181 = arith.divf %179, %180 : vector<2x32xf32>
    %182 = arith.mulf %173, %114 : vector<2x32xf32>
    %183 = arith.mulf %167, %175 : vector<2x32xf32>
    %184 = arith.addf %182, %183 : vector<2x32xf32>
    %185 = math.tanh %184 : vector<2x32xf32>
    %186 = arith.mulf %181, %185 : vector<2x32xf32>
    %187 = vector.extract_strided_slice %161 {offsets = [0, 0], sizes = [2, 32], strides = [1, 1]} : vector<2x128xf32> to vector<2x32xf32>
    %188 = arith.negf %187 : vector<2x32xf32>
    %189 = math.exp %188 : vector<2x32xf32>
    %cst_88 = arith.constant 1.000000e+00 : f32
    %190 = vector.broadcast %cst_88 : f32 to vector<2x32xf32>
    %191 = arith.addf %190, %189 : vector<2x32xf32>
    %192 = arith.divf %190, %191 : vector<2x32xf32>
    %193 = vector.extract_strided_slice %161 {offsets = [0, 32], sizes = [2, 32], strides = [1, 1]} : vector<2x128xf32> to vector<2x32xf32>
    %194 = arith.negf %193 : vector<2x32xf32>
    %195 = math.exp %194 : vector<2x32xf32>
    %cst_89 = arith.constant 1.000000e+00 : f32
    %196 = vector.broadcast %cst_89 : f32 to vector<2x32xf32>
    %197 = arith.addf %196, %195 : vector<2x32xf32>
    %198 = arith.divf %196, %197 : vector<2x32xf32>
    %199 = vector.extract_strided_slice %161 {offsets = [0, 64], sizes = [2, 32], strides = [1, 1]} : vector<2x128xf32> to vector<2x32xf32>
    %200 = math.tanh %199 : vector<2x32xf32>
    %201 = vector.extract_strided_slice %161 {offsets = [0, 96], sizes = [2, 32], strides = [1, 1]} : vector<2x128xf32> to vector<2x32xf32>
    %202 = arith.negf %201 : vector<2x32xf32>
    %203 = math.exp %202 : vector<2x32xf32>
    %cst_90 = arith.constant 1.000000e+00 : f32
    %204 = vector.broadcast %cst_90 : f32 to vector<2x32xf32>
    %205 = arith.addf %204, %203 : vector<2x32xf32>
    %206 = arith.divf %204, %205 : vector<2x32xf32>
    %207 = arith.mulf %198, %139 : vector<2x32xf32>
    %208 = arith.mulf %192, %200 : vector<2x32xf32>
    %209 = arith.addf %207, %208 : vector<2x32xf32>
    %210 = math.tanh %209 : vector<2x32xf32>
    %211 = arith.mulf %206, %210 : vector<2x32xf32>
    %212 = arith.truncf %186 : vector<2x32xf32> to vector<2x32xbf16>
    %c1_91 = arith.constant 1 : index
    %c0_92 = arith.constant 0 : index
    %c0_93 = arith.constant 0 : index
    %213 = vector.load %arg6[%c1_91, %c0_92, %c0_93] : memref<8x2x64xbf16, #tpu.memory_space<vmem>>, vector<1x2x32xbf16>
    %214 = vector.shape_cast %213 : vector<1x2x32xbf16> to vector<2x32xbf16>
    %215 = vector.shape_cast %212 : vector<2x32xbf16> to vector<1x2x32xbf16>
    tpu.vector_store %arg6[%c1_91, %c0_92, %c0_93], %215 {strides = array<i32>} : memref<8x2x64xbf16, #tpu.memory_space<vmem>>, vector<1x2x32xbf16>,
    %216 = arith.truncf %211 : vector<2x32xf32> to vector<2x32xbf16>
    %c6_94 = arith.constant 6 : index
    %c0_95 = arith.constant 0 : index
    %c32_96 = arith.constant 32 : index
    %217 = vector.load %arg6[%c6_94, %c0_95, %c32_96] : memref<8x2x64xbf16, #tpu.memory_space<vmem>>, vector<1x2x32xbf16>
    %218 = vector.shape_cast %217 : vector<1x2x32xbf16> to vector<2x32xbf16>
    %219 = vector.shape_cast %216 : vector<2x32xbf16> to vector<1x2x32xbf16>
    tpu.vector_store %arg6[%c6_94, %c0_95, %c32_96], %219 {strides = array<i32>} : memref<8x2x64xbf16, #tpu.memory_space<vmem>>, vector<1x2x32xbf16>,
    %c2_97 = arith.constant 2 : index
    %c0_98 = arith.constant 0 : index
    %c0_99 = arith.constant 0 : index
    %220 = vector.load %arg7[%c2_97, %c0_98, %c0_99] : memref<8x2x256xbf16, #tpu.memory_space<vmem>>, vector<1x2x128xbf16>
    %221 = vector.shape_cast %220 : vector<1x2x128xbf16> to vector<2x128xbf16>
    %222 = arith.extf %221 : vector<2x128xbf16> to vector<2x128xf32>
    %223 = arith.truncf %186 : vector<2x32xf32> to vector<2x32xbf16>
    %cst_100 = arith.constant dense<0.000000e+00> : vector<2x128xf32>
    %224 = tpu.matmul %223, %74, %cst_100 {dimension_numbers = #tpu.dot_dimension_numbers<[1], [0], [0], [1], [0, 0, 1, 1], [], []>} : vector<2x32xbf16>, vector<32x128xbf16>, vector<2x128xf32> -> vector<2x128xf32>
    %225 = arith.addf %222, %224 : vector<2x128xf32>
    %c5_101 = arith.constant 5 : index
    %c0_102 = arith.constant 0 : index
    %c128_103 = arith.constant 128 : index
    %226 = vector.load %arg7[%c5_101, %c0_102, %c128_103] : memref<8x2x256xbf16, #tpu.memory_space<vmem>>, vector<1x2x128xbf16>
    %227 = vector.shape_cast %226 : vector<1x2x128xbf16> to vector<2x128xbf16>
    %228 = arith.extf %227 : vector<2x128xbf16> to vector<2x128xf32>
    %229 = arith.truncf %211 : vector<2x32xf32> to vector<2x32xbf16>
    %cst_104 = arith.constant dense<0.000000e+00> : vector<2x128xf32>
    %230 = tpu.matmul %229, %75, %cst_104 {dimension_numbers = #tpu.dot_dimension_numbers<[1], [0], [0], [1], [0, 0, 1, 1], [], []>} : vector<2x32xbf16>, vector<32x128xbf16>, vector<2x128xf32> -> vector<2x128xf32>
    %231 = arith.addf %228, %230 : vector<2x128xf32>
    %232 = vector.extract_strided_slice %225 {offsets = [0, 0], sizes = [2, 32], strides = [1, 1]} : vector<2x128xf32> to vector<2x32xf32>
    %233 = arith.negf %232 : vector<2x32xf32>
    %234 = math.exp %233 : vector<2x32xf32>
    %cst_105 = arith.constant 1.000000e+00 : f32
    %235 = vector.broadcast %cst_105 : f32 to vector<2x32xf32>
    %236 = arith.addf %235, %234 : vector<2x32xf32>
    %237 = arith.divf %235, %236 : vector<2x32xf32>
    %238 = vector.extract_strided_slice %225 {offsets = [0, 32], sizes = [2, 32], strides = [1, 1]} : vector<2x128xf32> to vector<2x32xf32>
    %239 = arith.negf %238 : vector<2x32xf32>
    %240 = math.exp %239 : vector<2x32xf32>
    %cst_106 = arith.constant 1.000000e+00 : f32
    %241 = vector.broadcast %cst_106 : f32 to vector<2x32xf32>
    %242 = arith.addf %241, %240 : vector<2x32xf32>
    %243 = arith.divf %241, %242 : vector<2x32xf32>
    %244 = vector.extract_strided_slice %225 {offsets = [0, 64], sizes = [2, 32], strides = [1, 1]} : vector<2x128xf32> to vector<2x32xf32>
    %245 = math.tanh %244 : vector<2x32xf32>
    %246 = vector.extract_strided_slice %225 {offsets = [0, 96], sizes = [2, 32], strides = [1, 1]} : vector<2x128xf32> to vector<2x32xf32>
    %247 = arith.negf %246 : vector<2x32xf32>
    %248 = math.exp %247 : vector<2x32xf32>
    %cst_107 = arith.constant 1.000000e+00 : f32
    %249 = vector.broadcast %cst_107 : f32 to vector<2x32xf32>
    %250 = arith.addf %249, %248 : vector<2x32xf32>
    %251 = arith.divf %249, %250 : vector<2x32xf32>
    %252 = arith.mulf %243, %184 : vector<2x32xf32>
    %253 = arith.mulf %237, %245 : vector<2x32xf32>
    %254 = arith.addf %252, %253 : vector<2x32xf32>
    %255 = math.tanh %254 : vector<2x32xf32>
    %256 = arith.mulf %251, %255 : vector<2x32xf32>
    %257 = vector.extract_strided_slice %231 {offsets = [0, 0], sizes = [2, 32], strides = [1, 1]} : vector<2x128xf32> to vector<2x32xf32>
    %258 = arith.negf %257 : vector<2x32xf32>
    %259 = math.exp %258 : vector<2x32xf32>
    %cst_108 = arith.constant 1.000000e+00 : f32
    %260 = vector.broadcast %cst_108 : f32 to vector<2x32xf32>
    %261 = arith.addf %260, %259 : vector<2x32xf32>
    %262 = arith.divf %260, %261 : vector<2x32xf32>
    %263 = vector.extract_strided_slice %231 {offsets = [0, 32], sizes = [2, 32], strides = [1, 1]} : vector<2x128xf32> to vector<2x32xf32>
    %264 = arith.negf %263 : vector<2x32xf32>
    %265 = math.exp %264 : vector<2x32xf32>
    %cst_109 = arith.constant 1.000000e+00 : f32
    %266 = vector.broadcast %cst_109 : f32 to vector<2x32xf32>
    %267 = arith.addf %266, %265 : vector<2x32xf32>
    %268 = arith.divf %266, %267 : vector<2x32xf32>
    %269 = vector.extract_strided_slice %231 {offsets = [0, 64], sizes = [2, 32], strides = [1, 1]} : vector<2x128xf32> to vector<2x32xf32>
    %270 = math.tanh %269 : vector<2x32xf32>
    %271 = vector.extract_strided_slice %231 {offsets = [0, 96], sizes = [2, 32], strides = [1, 1]} : vector<2x128xf32> to vector<2x32xf32>
    %272 = arith.negf %271 : vector<2x32xf32>
    %273 = math.exp %272 : vector<2x32xf32>
    %cst_110 = arith.constant 1.000000e+00 : f32
    %274 = vector.broadcast %cst_110 : f32 to vector<2x32xf32>
    %275 = arith.addf %274, %273 : vector<2x32xf32>
    %276 = arith.divf %274, %275 : vector<2x32xf32>
    %277 = arith.mulf %268, %209 : vector<2x32xf32>
    %278 = arith.mulf %262, %270 : vector<2x32xf32>
    %279 = arith.addf %277, %278 : vector<2x32xf32>
    %280 = math.tanh %279 : vector<2x32xf32>
    %281 = arith.mulf %276, %280 : vector<2x32xf32>
    %282 = arith.truncf %256 : vector<2x32xf32> to vector<2x32xbf16>
    %c2_111 = arith.constant 2 : index
    %c0_112 = arith.constant 0 : index
    %c0_113 = arith.constant 0 : index
    %283 = vector.load %arg6[%c2_111, %c0_112, %c0_113] : memref<8x2x64xbf16, #tpu.memory_space<vmem>>, vector<1x2x32xbf16>
    %284 = vector.shape_cast %283 : vector<1x2x32xbf16> to vector<2x32xbf16>
    %285 = vector.shape_cast %282 : vector<2x32xbf16> to vector<1x2x32xbf16>
    tpu.vector_store %arg6[%c2_111, %c0_112, %c0_113], %285 {strides = array<i32>} : memref<8x2x64xbf16, #tpu.memory_space<vmem>>, vector<1x2x32xbf16>,
    %286 = arith.truncf %281 : vector<2x32xf32> to vector<2x32xbf16>
    %c5_114 = arith.constant 5 : index
    %c0_115 = arith.constant 0 : index
    %c32_116 = arith.constant 32 : index
    %287 = vector.load %arg6[%c5_114, %c0_115, %c32_116] : memref<8x2x64xbf16, #tpu.memory_space<vmem>>, vector<1x2x32xbf16>
    %288 = vector.shape_cast %287 : vector<1x2x32xbf16> to vector<2x32xbf16>
    %289 = vector.shape_cast %286 : vector<2x32xbf16> to vector<1x2x32xbf16>
    tpu.vector_store %arg6[%c5_114, %c0_115, %c32_116], %289 {strides = array<i32>} : memref<8x2x64xbf16, #tpu.memory_space<vmem>>, vector<1x2x32xbf16>,
    %c3_117 = arith.constant 3 : index
    %c0_118 = arith.constant 0 : index
    %c0_119 = arith.constant 0 : index
    %290 = vector.load %arg7[%c3_117, %c0_118, %c0_119] : memref<8x2x256xbf16, #tpu.memory_space<vmem>>, vector<1x2x128xbf16>
    %291 = vector.shape_cast %290 : vector<1x2x128xbf16> to vector<2x128xbf16>
    %292 = arith.extf %291 : vector<2x128xbf16> to vector<2x128xf32>
    %293 = arith.truncf %256 : vector<2x32xf32> to vector<2x32xbf16>
    %cst_120 = arith.constant dense<0.000000e+00> : vector<2x128xf32>
    %294 = tpu.matmul %293, %74, %cst_120 {dimension_numbers = #tpu.dot_dimension_numbers<[1], [0], [0], [1], [0, 0, 1, 1], [], []>} : vector<2x32xbf16>, vector<32x128xbf16>, vector<2x128xf32> -> vector<2x128xf32>
    %295 = arith.addf %292, %294 : vector<2x128xf32>
    %c4_121 = arith.constant 4 : index
    %c0_122 = arith.constant 0 : index
    %c128_123 = arith.constant 128 : index
    %296 = vector.load %arg7[%c4_121, %c0_122, %c128_123] : memref<8x2x256xbf16, #tpu.memory_space<vmem>>, vector<1x2x128xbf16>
    %297 = vector.shape_cast %296 : vector<1x2x128xbf16> to vector<2x128xbf16>
    %298 = arith.extf %297 : vector<2x128xbf16> to vector<2x128xf32>
    %299 = arith.truncf %281 : vector<2x32xf32> to vector<2x32xbf16>
    %cst_124 = arith.constant dense<0.000000e+00> : vector<2x128xf32>
    %300 = tpu.matmul %299, %75, %cst_124 {dimension_numbers = #tpu.dot_dimension_numbers<[1], [0], [0], [1], [0, 0, 1, 1], [], []>} : vector<2x32xbf16>, vector<32x128xbf16>, vector<2x128xf32> -> vector<2x128xf32>
    %301 = arith.addf %298, %300 : vector<2x128xf32>
    %302 = vector.extract_strided_slice %295 {offsets = [0, 0], sizes = [2, 32], strides = [1, 1]} : vector<2x128xf32> to vector<2x32xf32>
    %303 = arith.negf %302 : vector<2x32xf32>
    %304 = math.exp %303 : vector<2x32xf32>
    %cst_125 = arith.constant 1.000000e+00 : f32
    %305 = vector.broadcast %cst_125 : f32 to vector<2x32xf32>
    %306 = arith.addf %305, %304 : vector<2x32xf32>
    %307 = arith.divf %305, %306 : vector<2x32xf32>
    %308 = vector.extract_strided_slice %295 {offsets = [0, 32], sizes = [2, 32], strides = [1, 1]} : vector<2x128xf32> to vector<2x32xf32>
    %309 = arith.negf %308 : vector<2x32xf32>
    %310 = math.exp %309 : vector<2x32xf32>
    %cst_126 = arith.constant 1.000000e+00 : f32
    %311 = vector.broadcast %cst_126 : f32 to vector<2x32xf32>
    %312 = arith.addf %311, %310 : vector<2x32xf32>
    %313 = arith.divf %311, %312 : vector<2x32xf32>
    %314 = vector.extract_strided_slice %295 {offsets = [0, 64], sizes = [2, 32], strides = [1, 1]} : vector<2x128xf32> to vector<2x32xf32>
    %315 = math.tanh %314 : vector<2x32xf32>
    %316 = vector.extract_strided_slice %295 {offsets = [0, 96], sizes = [2, 32], strides = [1, 1]} : vector<2x128xf32> to vector<2x32xf32>
    %317 = arith.negf %316 : vector<2x32xf32>
    %318 = math.exp %317 : vector<2x32xf32>
    %cst_127 = arith.constant 1.000000e+00 : f32
    %319 = vector.broadcast %cst_127 : f32 to vector<2x32xf32>
    %320 = arith.addf %319, %318 : vector<2x32xf32>
    %321 = arith.divf %319, %320 : vector<2x32xf32>
    %322 = arith.mulf %313, %254 : vector<2x32xf32>
    %323 = arith.mulf %307, %315 : vector<2x32xf32>
    %324 = arith.addf %322, %323 : vector<2x32xf32>
    %325 = math.tanh %324 : vector<2x32xf32>
    %326 = arith.mulf %321, %325 : vector<2x32xf32>
    %327 = vector.extract_strided_slice %301 {offsets = [0, 0], sizes = [2, 32], strides = [1, 1]} : vector<2x128xf32> to vector<2x32xf32>
    %328 = arith.negf %327 : vector<2x32xf32>
    %329 = math.exp %328 : vector<2x32xf32>
    %cst_128 = arith.constant 1.000000e+00 : f32
    %330 = vector.broadcast %cst_128 : f32 to vector<2x32xf32>
    %331 = arith.addf %330, %329 : vector<2x32xf32>
    %332 = arith.divf %330, %331 : vector<2x32xf32>
    %333 = vector.extract_strided_slice %301 {offsets = [0, 32], sizes = [2, 32], strides = [1, 1]} : vector<2x128xf32> to vector<2x32xf32>
    %334 = arith.negf %333 : vector<2x32xf32>
    %335 = math.exp %334 : vector<2x32xf32>
    %cst_129 = arith.constant 1.000000e+00 : f32
    %336 = vector.broadcast %cst_129 : f32 to vector<2x32xf32>
    %337 = arith.addf %336, %335 : vector<2x32xf32>
    %338 = arith.divf %336, %337 : vector<2x32xf32>
    %339 = vector.extract_strided_slice %301 {offsets = [0, 64], sizes = [2, 32], strides = [1, 1]} : vector<2x128xf32> to vector<2x32xf32>
    %340 = math.tanh %339 : vector<2x32xf32>
    %341 = vector.extract_strided_slice %301 {offsets = [0, 96], sizes = [2, 32], strides = [1, 1]} : vector<2x128xf32> to vector<2x32xf32>
    %342 = arith.negf %341 : vector<2x32xf32>
    %343 = math.exp %342 : vector<2x32xf32>
    %cst_130 = arith.constant 1.000000e+00 : f32
    %344 = vector.broadcast %cst_130 : f32 to vector<2x32xf32>
    %345 = arith.addf %344, %343 : vector<2x32xf32>
    %346 = arith.divf %344, %345 : vector<2x32xf32>
    %347 = arith.mulf %338, %279 : vector<2x32xf32>
    %348 = arith.mulf %332, %340 : vector<2x32xf32>
    %349 = arith.addf %347, %348 : vector<2x32xf32>
    %350 = math.tanh %349 : vector<2x32xf32>
    %351 = arith.mulf %346, %350 : vector<2x32xf32>
    %352 = arith.truncf %326 : vector<2x32xf32> to vector<2x32xbf16>
    %c3_131 = arith.constant 3 : index
    %c0_132 = arith.constant 0 : index
    %c0_133 = arith.constant 0 : index
    %353 = vector.load %arg6[%c3_131, %c0_132, %c0_133] : memref<8x2x64xbf16, #tpu.memory_space<vmem>>, vector<1x2x32xbf16>
    %354 = vector.shape_cast %353 : vector<1x2x32xbf16> to vector<2x32xbf16>
    %355 = vector.shape_cast %352 : vector<2x32xbf16> to vector<1x2x32xbf16>
    tpu.vector_store %arg6[%c3_131, %c0_132, %c0_133], %355 {strides = array<i32>} : memref<8x2x64xbf16, #tpu.memory_space<vmem>>, vector<1x2x32xbf16>,
    %356 = arith.truncf %351 : vector<2x32xf32> to vector<2x32xbf16>
    %c4_134 = arith.constant 4 : index
    %c0_135 = arith.constant 0 : index
    %c32_136 = arith.constant 32 : index
    %357 = vector.load %arg6[%c4_134, %c0_135, %c32_136] : memref<8x2x64xbf16, #tpu.memory_space<vmem>>, vector<1x2x32xbf16>
    %358 = vector.shape_cast %357 : vector<1x2x32xbf16> to vector<2x32xbf16>
    %359 = vector.shape_cast %356 : vector<2x32xbf16> to vector<1x2x32xbf16>
    tpu.vector_store %arg6[%c4_134, %c0_135, %c32_136], %359 {strides = array<i32>} : memref<8x2x64xbf16, #tpu.memory_space<vmem>>, vector<1x2x32xbf16>,
    %c4_137 = arith.constant 4 : index
    %c0_138 = arith.constant 0 : index
    %c0_139 = arith.constant 0 : index
    %360 = vector.load %arg7[%c4_137, %c0_138, %c0_139] : memref<8x2x256xbf16, #tpu.memory_space<vmem>>, vector<1x2x128xbf16>
    %361 = vector.shape_cast %360 : vector<1x2x128xbf16> to vector<2x128xbf16>
    %362 = arith.extf %361 : vector<2x128xbf16> to vector<2x128xf32>
    %363 = arith.truncf %326 : vector<2x32xf32> to vector<2x32xbf16>
    %cst_140 = arith.constant dense<0.000000e+00> : vector<2x128xf32>
    %364 = tpu.matmul %363, %74, %cst_140 {dimension_numbers = #tpu.dot_dimension_numbers<[1], [0], [0], [1], [0, 0, 1, 1], [], []>} : vector<2x32xbf16>, vector<32x128xbf16>, vector<2x128xf32> -> vector<2x128xf32>
    %365 = arith.addf %362, %364 : vector<2x128xf32>
    %c3_141 = arith.constant 3 : index
    %c0_142 = arith.constant 0 : index
    %c128_143 = arith.constant 128 : index
    %366 = vector.load %arg7[%c3_141, %c0_142, %c128_143] : memref<8x2x256xbf16, #tpu.memory_space<vmem>>, vector<1x2x128xbf16>
    %367 = vector.shape_cast %366 : vector<1x2x128xbf16> to vector<2x128xbf16>
    %368 = arith.extf %367 : vector<2x128xbf16> to vector<2x128xf32>
    %369 = arith.truncf %351 : vector<2x32xf32> to vector<2x32xbf16>
    %cst_144 = arith.constant dense<0.000000e+00> : vector<2x128xf32>
    %370 = tpu.matmul %369, %75, %cst_144 {dimension_numbers = #tpu.dot_dimension_numbers<[1], [0], [0], [1], [0, 0, 1, 1], [], []>} : vector<2x32xbf16>, vector<32x128xbf16>, vector<2x128xf32> -> vector<2x128xf32>
    %371 = arith.addf %368, %370 : vector<2x128xf32>
    %372 = vector.extract_strided_slice %365 {offsets = [0, 0], sizes = [2, 32], strides = [1, 1]} : vector<2x128xf32> to vector<2x32xf32>
    %373 = arith.negf %372 : vector<2x32xf32>
    %374 = math.exp %373 : vector<2x32xf32>
    %cst_145 = arith.constant 1.000000e+00 : f32
    %375 = vector.broadcast %cst_145 : f32 to vector<2x32xf32>
    %376 = arith.addf %375, %374 : vector<2x32xf32>
    %377 = arith.divf %375, %376 : vector<2x32xf32>
    %378 = vector.extract_strided_slice %365 {offsets = [0, 32], sizes = [2, 32], strides = [1, 1]} : vector<2x128xf32> to vector<2x32xf32>
    %379 = arith.negf %378 : vector<2x32xf32>
    %380 = math.exp %379 : vector<2x32xf32>
    %cst_146 = arith.constant 1.000000e+00 : f32
    %381 = vector.broadcast %cst_146 : f32 to vector<2x32xf32>
    %382 = arith.addf %381, %380 : vector<2x32xf32>
    %383 = arith.divf %381, %382 : vector<2x32xf32>
    %384 = vector.extract_strided_slice %365 {offsets = [0, 64], sizes = [2, 32], strides = [1, 1]} : vector<2x128xf32> to vector<2x32xf32>
    %385 = math.tanh %384 : vector<2x32xf32>
    %386 = vector.extract_strided_slice %365 {offsets = [0, 96], sizes = [2, 32], strides = [1, 1]} : vector<2x128xf32> to vector<2x32xf32>
    %387 = arith.negf %386 : vector<2x32xf32>
    %388 = math.exp %387 : vector<2x32xf32>
    %cst_147 = arith.constant 1.000000e+00 : f32
    %389 = vector.broadcast %cst_147 : f32 to vector<2x32xf32>
    %390 = arith.addf %389, %388 : vector<2x32xf32>
    %391 = arith.divf %389, %390 : vector<2x32xf32>
    %392 = arith.mulf %383, %324 : vector<2x32xf32>
    %393 = arith.mulf %377, %385 : vector<2x32xf32>
    %394 = arith.addf %392, %393 : vector<2x32xf32>
    %395 = math.tanh %394 : vector<2x32xf32>
    %396 = arith.mulf %391, %395 : vector<2x32xf32>
    %397 = vector.extract_strided_slice %371 {offsets = [0, 0], sizes = [2, 32], strides = [1, 1]} : vector<2x128xf32> to vector<2x32xf32>
    %398 = arith.negf %397 : vector<2x32xf32>
    %399 = math.exp %398 : vector<2x32xf32>
    %cst_148 = arith.constant 1.000000e+00 : f32
    %400 = vector.broadcast %cst_148 : f32 to vector<2x32xf32>
    %401 = arith.addf %400, %399 : vector<2x32xf32>
    %402 = arith.divf %400, %401 : vector<2x32xf32>
    %403 = vector.extract_strided_slice %371 {offsets = [0, 32], sizes = [2, 32], strides = [1, 1]} : vector<2x128xf32> to vector<2x32xf32>
    %404 = arith.negf %403 : vector<2x32xf32>
    %405 = math.exp %404 : vector<2x32xf32>
    %cst_149 = arith.constant 1.000000e+00 : f32
    %406 = vector.broadcast %cst_149 : f32 to vector<2x32xf32>
    %407 = arith.addf %406, %405 : vector<2x32xf32>
    %408 = arith.divf %406, %407 : vector<2x32xf32>
    %409 = vector.extract_strided_slice %371 {offsets = [0, 64], sizes = [2, 32], strides = [1, 1]} : vector<2x128xf32> to vector<2x32xf32>
    %410 = math.tanh %409 : vector<2x32xf32>
    %411 = vector.extract_strided_slice %371 {offsets = [0, 96], sizes = [2, 32], strides = [1, 1]} : vector<2x128xf32> to vector<2x32xf32>
    %412 = arith.negf %411 : vector<2x32xf32>
    %413 = math.exp %412 : vector<2x32xf32>
    %cst_150 = arith.constant 1.000000e+00 : f32
    %414 = vector.broadcast %cst_150 : f32 to vector<2x32xf32>
    %415 = arith.addf %414, %413 : vector<2x32xf32>
    %416 = arith.divf %414, %415 : vector<2x32xf32>
    %417 = arith.mulf %408, %349 : vector<2x32xf32>
    %418 = arith.mulf %402, %410 : vector<2x32xf32>
    %419 = arith.addf %417, %418 : vector<2x32xf32>
    %420 = math.tanh %419 : vector<2x32xf32>
    %421 = arith.mulf %416, %420 : vector<2x32xf32>
    %422 = arith.truncf %396 : vector<2x32xf32> to vector<2x32xbf16>
    %c4_151 = arith.constant 4 : index
    %c0_152 = arith.constant 0 : index
    %c0_153 = arith.constant 0 : index
    %423 = vector.load %arg6[%c4_151, %c0_152, %c0_153] : memref<8x2x64xbf16, #tpu.memory_space<vmem>>, vector<1x2x32xbf16>
    %424 = vector.shape_cast %423 : vector<1x2x32xbf16> to vector<2x32xbf16>
    %425 = vector.shape_cast %422 : vector<2x32xbf16> to vector<1x2x32xbf16>
    tpu.vector_store %arg6[%c4_151, %c0_152, %c0_153], %425 {strides = array<i32>} : memref<8x2x64xbf16, #tpu.memory_space<vmem>>, vector<1x2x32xbf16>,
    %426 = arith.truncf %421 : vector<2x32xf32> to vector<2x32xbf16>
    %c3_154 = arith.constant 3 : index
    %c0_155 = arith.constant 0 : index
    %c32_156 = arith.constant 32 : index
    %427 = vector.load %arg6[%c3_154, %c0_155, %c32_156] : memref<8x2x64xbf16, #tpu.memory_space<vmem>>, vector<1x2x32xbf16>
    %428 = vector.shape_cast %427 : vector<1x2x32xbf16> to vector<2x32xbf16>
    %429 = vector.shape_cast %426 : vector<2x32xbf16> to vector<1x2x32xbf16>
    tpu.vector_store %arg6[%c3_154, %c0_155, %c32_156], %429 {strides = array<i32>} : memref<8x2x64xbf16, #tpu.memory_space<vmem>>, vector<1x2x32xbf16>,
    %c5_157 = arith.constant 5 : index
    %c0_158 = arith.constant 0 : index
    %c0_159 = arith.constant 0 : index
    %430 = vector.load %arg7[%c5_157, %c0_158, %c0_159] : memref<8x2x256xbf16, #tpu.memory_space<vmem>>, vector<1x2x128xbf16>
    %431 = vector.shape_cast %430 : vector<1x2x128xbf16> to vector<2x128xbf16>
    %432 = arith.extf %431 : vector<2x128xbf16> to vector<2x128xf32>
    %433 = arith.truncf %396 : vector<2x32xf32> to vector<2x32xbf16>
    %cst_160 = arith.constant dense<0.000000e+00> : vector<2x128xf32>
    %434 = tpu.matmul %433, %74, %cst_160 {dimension_numbers = #tpu.dot_dimension_numbers<[1], [0], [0], [1], [0, 0, 1, 1], [], []>} : vector<2x32xbf16>, vector<32x128xbf16>, vector<2x128xf32> -> vector<2x128xf32>
    %435 = arith.addf %432, %434 : vector<2x128xf32>
    %c2_161 = arith.constant 2 : index
    %c0_162 = arith.constant 0 : index
    %c128_163 = arith.constant 128 : index
    %436 = vector.load %arg7[%c2_161, %c0_162, %c128_163] : memref<8x2x256xbf16, #tpu.memory_space<vmem>>, vector<1x2x128xbf16>
    %437 = vector.shape_cast %436 : vector<1x2x128xbf16> to vector<2x128xbf16>
    %438 = arith.extf %437 : vector<2x128xbf16> to vector<2x128xf32>
    %439 = arith.truncf %421 : vector<2x32xf32> to vector<2x32xbf16>
    %cst_164 = arith.constant dense<0.000000e+00> : vector<2x128xf32>
    %440 = tpu.matmul %439, %75, %cst_164 {dimension_numbers = #tpu.dot_dimension_numbers<[1], [0], [0], [1], [0, 0, 1, 1], [], []>} : vector<2x32xbf16>, vector<32x128xbf16>, vector<2x128xf32> -> vector<2x128xf32>
    %441 = arith.addf %438, %440 : vector<2x128xf32>
    %442 = vector.extract_strided_slice %435 {offsets = [0, 0], sizes = [2, 32], strides = [1, 1]} : vector<2x128xf32> to vector<2x32xf32>
    %443 = arith.negf %442 : vector<2x32xf32>
    %444 = math.exp %443 : vector<2x32xf32>
    %cst_165 = arith.constant 1.000000e+00 : f32
    %445 = vector.broadcast %cst_165 : f32 to vector<2x32xf32>
    %446 = arith.addf %445, %444 : vector<2x32xf32>
    %447 = arith.divf %445, %446 : vector<2x32xf32>
    %448 = vector.extract_strided_slice %435 {offsets = [0, 32], sizes = [2, 32], strides = [1, 1]} : vector<2x128xf32> to vector<2x32xf32>
    %449 = arith.negf %448 : vector<2x32xf32>
    %450 = math.exp %449 : vector<2x32xf32>
    %cst_166 = arith.constant 1.000000e+00 : f32
    %451 = vector.broadcast %cst_166 : f32 to vector<2x32xf32>
    %452 = arith.addf %451, %450 : vector<2x32xf32>
    %453 = arith.divf %451, %452 : vector<2x32xf32>
    %454 = vector.extract_strided_slice %435 {offsets = [0, 64], sizes = [2, 32], strides = [1, 1]} : vector<2x128xf32> to vector<2x32xf32>
    %455 = math.tanh %454 : vector<2x32xf32>
    %456 = vector.extract_strided_slice %435 {offsets = [0, 96], sizes = [2, 32], strides = [1, 1]} : vector<2x128xf32> to vector<2x32xf32>
    %457 = arith.negf %456 : vector<2x32xf32>
    %458 = math.exp %457 : vector<2x32xf32>
    %cst_167 = arith.constant 1.000000e+00 : f32
    %459 = vector.broadcast %cst_167 : f32 to vector<2x32xf32>
    %460 = arith.addf %459, %458 : vector<2x32xf32>
    %461 = arith.divf %459, %460 : vector<2x32xf32>
    %462 = arith.mulf %453, %394 : vector<2x32xf32>
    %463 = arith.mulf %447, %455 : vector<2x32xf32>
    %464 = arith.addf %462, %463 : vector<2x32xf32>
    %465 = math.tanh %464 : vector<2x32xf32>
    %466 = arith.mulf %461, %465 : vector<2x32xf32>
    %467 = vector.extract_strided_slice %441 {offsets = [0, 0], sizes = [2, 32], strides = [1, 1]} : vector<2x128xf32> to vector<2x32xf32>
    %468 = arith.negf %467 : vector<2x32xf32>
    %469 = math.exp %468 : vector<2x32xf32>
    %cst_168 = arith.constant 1.000000e+00 : f32
    %470 = vector.broadcast %cst_168 : f32 to vector<2x32xf32>
    %471 = arith.addf %470, %469 : vector<2x32xf32>
    %472 = arith.divf %470, %471 : vector<2x32xf32>
    %473 = vector.extract_strided_slice %441 {offsets = [0, 32], sizes = [2, 32], strides = [1, 1]} : vector<2x128xf32> to vector<2x32xf32>
    %474 = arith.negf %473 : vector<2x32xf32>
    %475 = math.exp %474 : vector<2x32xf32>
    %cst_169 = arith.constant 1.000000e+00 : f32
    %476 = vector.broadcast %cst_169 : f32 to vector<2x32xf32>
    %477 = arith.addf %476, %475 : vector<2x32xf32>
    %478 = arith.divf %476, %477 : vector<2x32xf32>
    %479 = vector.extract_strided_slice %441 {offsets = [0, 64], sizes = [2, 32], strides = [1, 1]} : vector<2x128xf32> to vector<2x32xf32>
    %480 = math.tanh %479 : vector<2x32xf32>
    %481 = vector.extract_strided_slice %441 {offsets = [0, 96], sizes = [2, 32], strides = [1, 1]} : vector<2x128xf32> to vector<2x32xf32>
    %482 = arith.negf %481 : vector<2x32xf32>
    %483 = math.exp %482 : vector<2x32xf32>
    %cst_170 = arith.constant 1.000000e+00 : f32
    %484 = vector.broadcast %cst_170 : f32 to vector<2x32xf32>
    %485 = arith.addf %484, %483 : vector<2x32xf32>
    %486 = arith.divf %484, %485 : vector<2x32xf32>
    %487 = arith.mulf %478, %419 : vector<2x32xf32>
    %488 = arith.mulf %472, %480 : vector<2x32xf32>
    %489 = arith.addf %487, %488 : vector<2x32xf32>
    %490 = math.tanh %489 : vector<2x32xf32>
    %491 = arith.mulf %486, %490 : vector<2x32xf32>
    %492 = arith.truncf %466 : vector<2x32xf32> to vector<2x32xbf16>
    %c5_171 = arith.constant 5 : index
    %c0_172 = arith.constant 0 : index
    %c0_173 = arith.constant 0 : index
    %493 = vector.load %arg6[%c5_171, %c0_172, %c0_173] : memref<8x2x64xbf16, #tpu.memory_space<vmem>>, vector<1x2x32xbf16>
    %494 = vector.shape_cast %493 : vector<1x2x32xbf16> to vector<2x32xbf16>
    %495 = vector.shape_cast %492 : vector<2x32xbf16> to vector<1x2x32xbf16>
    tpu.vector_store %arg6[%c5_171, %c0_172, %c0_173], %495 {strides = array<i32>} : memref<8x2x64xbf16, #tpu.memory_space<vmem>>, vector<1x2x32xbf16>,
    %496 = arith.truncf %491 : vector<2x32xf32> to vector<2x32xbf16>
    %c2_174 = arith.constant 2 : index
    %c0_175 = arith.constant 0 : index
    %c32_176 = arith.constant 32 : index
    %497 = vector.load %arg6[%c2_174, %c0_175, %c32_176] : memref<8x2x64xbf16, #tpu.memory_space<vmem>>, vector<1x2x32xbf16>
    %498 = vector.shape_cast %497 : vector<1x2x32xbf16> to vector<2x32xbf16>
    %499 = vector.shape_cast %496 : vector<2x32xbf16> to vector<1x2x32xbf16>
    tpu.vector_store %arg6[%c2_174, %c0_175, %c32_176], %499 {strides = array<i32>} : memref<8x2x64xbf16, #tpu.memory_space<vmem>>, vector<1x2x32xbf16>,
    %c6_177 = arith.constant 6 : index
    %c0_178 = arith.constant 0 : index
    %c0_179 = arith.constant 0 : index
    %500 = vector.load %arg7[%c6_177, %c0_178, %c0_179] : memref<8x2x256xbf16, #tpu.memory_space<vmem>>, vector<1x2x128xbf16>
    %501 = vector.shape_cast %500 : vector<1x2x128xbf16> to vector<2x128xbf16>
    %502 = arith.extf %501 : vector<2x128xbf16> to vector<2x128xf32>
    %503 = arith.truncf %466 : vector<2x32xf32> to vector<2x32xbf16>
    %cst_180 = arith.constant dense<0.000000e+00> : vector<2x128xf32>
    %504 = tpu.matmul %503, %74, %cst_180 {dimension_numbers = #tpu.dot_dimension_numbers<[1], [0], [0], [1], [0, 0, 1, 1], [], []>} : vector<2x32xbf16>, vector<32x128xbf16>, vector<2x128xf32> -> vector<2x128xf32>
    %505 = arith.addf %502, %504 : vector<2x128xf32>
    %c1_181 = arith.constant 1 : index
    %c0_182 = arith.constant 0 : index
    %c128_183 = arith.constant 128 : index
    %506 = vector.load %arg7[%c1_181, %c0_182, %c128_183] : memref<8x2x256xbf16, #tpu.memory_space<vmem>>, vector<1x2x128xbf16>
    %507 = vector.shape_cast %506 : vector<1x2x128xbf16> to vector<2x128xbf16>
    %508 = arith.extf %507 : vector<2x128xbf16> to vector<2x128xf32>
    %509 = arith.truncf %491 : vector<2x32xf32> to vector<2x32xbf16>
    %cst_184 = arith.constant dense<0.000000e+00> : vector<2x128xf32>
    %510 = tpu.matmul %509, %75, %cst_184 {dimension_numbers = #tpu.dot_dimension_numbers<[1], [0], [0], [1], [0, 0, 1, 1], [], []>} : vector<2x32xbf16>, vector<32x128xbf16>, vector<2x128xf32> -> vector<2x128xf32>
    %511 = arith.addf %508, %510 : vector<2x128xf32>
    %512 = vector.extract_strided_slice %505 {offsets = [0, 0], sizes = [2, 32], strides = [1, 1]} : vector<2x128xf32> to vector<2x32xf32>
    %513 = arith.negf %512 : vector<2x32xf32>
    %514 = math.exp %513 : vector<2x32xf32>
    %cst_185 = arith.constant 1.000000e+00 : f32
    %515 = vector.broadcast %cst_185 : f32 to vector<2x32xf32>
    %516 = arith.addf %515, %514 : vector<2x32xf32>
    %517 = arith.divf %515, %516 : vector<2x32xf32>
    %518 = vector.extract_strided_slice %505 {offsets = [0, 32], sizes = [2, 32], strides = [1, 1]} : vector<2x128xf32> to vector<2x32xf32>
    %519 = arith.negf %518 : vector<2x32xf32>
    %520 = math.exp %519 : vector<2x32xf32>
    %cst_186 = arith.constant 1.000000e+00 : f32
    %521 = vector.broadcast %cst_186 : f32 to vector<2x32xf32>
    %522 = arith.addf %521, %520 : vector<2x32xf32>
    %523 = arith.divf %521, %522 : vector<2x32xf32>
    %524 = vector.extract_strided_slice %505 {offsets = [0, 64], sizes = [2, 32], strides = [1, 1]} : vector<2x128xf32> to vector<2x32xf32>
    %525 = math.tanh %524 : vector<2x32xf32>
    %526 = vector.extract_strided_slice %505 {offsets = [0, 96], sizes = [2, 32], strides = [1, 1]} : vector<2x128xf32> to vector<2x32xf32>
    %527 = arith.negf %526 : vector<2x32xf32>
    %528 = math.exp %527 : vector<2x32xf32>
    %cst_187 = arith.constant 1.000000e+00 : f32
    %529 = vector.broadcast %cst_187 : f32 to vector<2x32xf32>
    %530 = arith.addf %529, %528 : vector<2x32xf32>
    %531 = arith.divf %529, %530 : vector<2x32xf32>
    %532 = arith.mulf %523, %464 : vector<2x32xf32>
    %533 = arith.mulf %517, %525 : vector<2x32xf32>
    %534 = arith.addf %532, %533 : vector<2x32xf32>
    %535 = math.tanh %534 : vector<2x32xf32>
    %536 = arith.mulf %531, %535 : vector<2x32xf32>
    %537 = vector.extract_strided_slice %511 {offsets = [0, 0], sizes = [2, 32], strides = [1, 1]} : vector<2x128xf32> to vector<2x32xf32>
    %538 = arith.negf %537 : vector<2x32xf32>
    %539 = math.exp %538 : vector<2x32xf32>
    %cst_188 = arith.constant 1.000000e+00 : f32
    %540 = vector.broadcast %cst_188 : f32 to vector<2x32xf32>
    %541 = arith.addf %540, %539 : vector<2x32xf32>
    %542 = arith.divf %540, %541 : vector<2x32xf32>
    %543 = vector.extract_strided_slice %511 {offsets = [0, 32], sizes = [2, 32], strides = [1, 1]} : vector<2x128xf32> to vector<2x32xf32>
    %544 = arith.negf %543 : vector<2x32xf32>
    %545 = math.exp %544 : vector<2x32xf32>
    %cst_189 = arith.constant 1.000000e+00 : f32
    %546 = vector.broadcast %cst_189 : f32 to vector<2x32xf32>
    %547 = arith.addf %546, %545 : vector<2x32xf32>
    %548 = arith.divf %546, %547 : vector<2x32xf32>
    %549 = vector.extract_strided_slice %511 {offsets = [0, 64], sizes = [2, 32], strides = [1, 1]} : vector<2x128xf32> to vector<2x32xf32>
    %550 = math.tanh %549 : vector<2x32xf32>
    %551 = vector.extract_strided_slice %511 {offsets = [0, 96], sizes = [2, 32], strides = [1, 1]} : vector<2x128xf32> to vector<2x32xf32>
    %552 = arith.negf %551 : vector<2x32xf32>
    %553 = math.exp %552 : vector<2x32xf32>
    %cst_190 = arith.constant 1.000000e+00 : f32
    %554 = vector.broadcast %cst_190 : f32 to vector<2x32xf32>
    %555 = arith.addf %554, %553 : vector<2x32xf32>
    %556 = arith.divf %554, %555 : vector<2x32xf32>
    %557 = arith.mulf %548, %489 : vector<2x32xf32>
    %558 = arith.mulf %542, %550 : vector<2x32xf32>
    %559 = arith.addf %557, %558 : vector<2x32xf32>
    %560 = math.tanh %559 : vector<2x32xf32>
    %561 = arith.mulf %556, %560 : vector<2x32xf32>
    %562 = arith.truncf %536 : vector<2x32xf32> to vector<2x32xbf16>
    %c6_191 = arith.constant 6 : index
    %c0_192 = arith.constant 0 : index
    %c0_193 = arith.constant 0 : index
    %563 = vector.load %arg6[%c6_191, %c0_192, %c0_193] : memref<8x2x64xbf16, #tpu.memory_space<vmem>>, vector<1x2x32xbf16>
    %564 = vector.shape_cast %563 : vector<1x2x32xbf16> to vector<2x32xbf16>
    %565 = vector.shape_cast %562 : vector<2x32xbf16> to vector<1x2x32xbf16>
    tpu.vector_store %arg6[%c6_191, %c0_192, %c0_193], %565 {strides = array<i32>} : memref<8x2x64xbf16, #tpu.memory_space<vmem>>, vector<1x2x32xbf16>,
    %566 = arith.truncf %561 : vector<2x32xf32> to vector<2x32xbf16>
    %c1_194 = arith.constant 1 : index
    %c0_195 = arith.constant 0 : index
    %c32_196 = arith.constant 32 : index
    %567 = vector.load %arg6[%c1_194, %c0_195, %c32_196] : memref<8x2x64xbf16, #tpu.memory_space<vmem>>, vector<1x2x32xbf16>
    %568 = vector.shape_cast %567 : vector<1x2x32xbf16> to vector<2x32xbf16>
    %569 = vector.shape_cast %566 : vector<2x32xbf16> to vector<1x2x32xbf16>
    tpu.vector_store %arg6[%c1_194, %c0_195, %c32_196], %569 {strides = array<i32>} : memref<8x2x64xbf16, #tpu.memory_space<vmem>>, vector<1x2x32xbf16>,
    %c7_197 = arith.constant 7 : index
    %c0_198 = arith.constant 0 : index
    %c0_199 = arith.constant 0 : index
    %570 = vector.load %arg7[%c7_197, %c0_198, %c0_199] : memref<8x2x256xbf16, #tpu.memory_space<vmem>>, vector<1x2x128xbf16>
    %571 = vector.shape_cast %570 : vector<1x2x128xbf16> to vector<2x128xbf16>
    %572 = arith.extf %571 : vector<2x128xbf16> to vector<2x128xf32>
    %573 = arith.truncf %536 : vector<2x32xf32> to vector<2x32xbf16>
    %cst_200 = arith.constant dense<0.000000e+00> : vector<2x128xf32>
    %574 = tpu.matmul %573, %74, %cst_200 {dimension_numbers = #tpu.dot_dimension_numbers<[1], [0], [0], [1], [0, 0, 1, 1], [], []>} : vector<2x32xbf16>, vector<32x128xbf16>, vector<2x128xf32> -> vector<2x128xf32>
    %575 = arith.addf %572, %574 : vector<2x128xf32>
    %c0_201 = arith.constant 0 : index
    %c0_202 = arith.constant 0 : index
    %c128_203 = arith.constant 128 : index
    %576 = vector.load %arg7[%c0_201, %c0_202, %c128_203] : memref<8x2x256xbf16, #tpu.memory_space<vmem>>, vector<1x2x128xbf16>
    %577 = vector.shape_cast %576 : vector<1x2x128xbf16> to vector<2x128xbf16>
    %578 = arith.extf %577 : vector<2x128xbf16> to vector<2x128xf32>
    %579 = arith.truncf %561 : vector<2x32xf32> to vector<2x32xbf16>
    %cst_204 = arith.constant dense<0.000000e+00> : vector<2x128xf32>
    %580 = tpu.matmul %579, %75, %cst_204 {dimension_numbers = #tpu.dot_dimension_numbers<[1], [0], [0], [1], [0, 0, 1, 1], [], []>} : vector<2x32xbf16>, vector<32x128xbf16>, vector<2x128xf32> -> vector<2x128xf32>
    %581 = arith.addf %578, %580 : vector<2x128xf32>
    %582 = vector.extract_strided_slice %575 {offsets = [0, 0], sizes = [2, 32], strides = [1, 1]} : vector<2x128xf32> to vector<2x32xf32>
    %583 = arith.negf %582 : vector<2x32xf32>
    %584 = math.exp %583 : vector<2x32xf32>
    %cst_205 = arith.constant 1.000000e+00 : f32
    %585 = vector.broadcast %cst_205 : f32 to vector<2x32xf32>
    %586 = arith.addf %585, %584 : vector<2x32xf32>
    %587 = arith.divf %585, %586 : vector<2x32xf32>
    %588 = vector.extract_strided_slice %575 {offsets = [0, 32], sizes = [2, 32], strides = [1, 1]} : vector<2x128xf32> to vector<2x32xf32>
    %589 = arith.negf %588 : vector<2x32xf32>
    %590 = math.exp %589 : vector<2x32xf32>
    %cst_206 = arith.constant 1.000000e+00 : f32
    %591 = vector.broadcast %cst_206 : f32 to vector<2x32xf32>
    %592 = arith.addf %591, %590 : vector<2x32xf32>
    %593 = arith.divf %591, %592 : vector<2x32xf32>
    %594 = vector.extract_strided_slice %575 {offsets = [0, 64], sizes = [2, 32], strides = [1, 1]} : vector<2x128xf32> to vector<2x32xf32>
    %595 = math.tanh %594 : vector<2x32xf32>
    %596 = vector.extract_strided_slice %575 {offsets = [0, 96], sizes = [2, 32], strides = [1, 1]} : vector<2x128xf32> to vector<2x32xf32>
    %597 = arith.negf %596 : vector<2x32xf32>
    %598 = math.exp %597 : vector<2x32xf32>
    %cst_207 = arith.constant 1.000000e+00 : f32
    %599 = vector.broadcast %cst_207 : f32 to vector<2x32xf32>
    %600 = arith.addf %599, %598 : vector<2x32xf32>
    %601 = arith.divf %599, %600 : vector<2x32xf32>
    %602 = arith.mulf %593, %534 : vector<2x32xf32>
    %603 = arith.mulf %587, %595 : vector<2x32xf32>
    %604 = arith.addf %602, %603 : vector<2x32xf32>
    %605 = math.tanh %604 : vector<2x32xf32>
    %606 = arith.mulf %601, %605 : vector<2x32xf32>
    %607 = vector.extract_strided_slice %581 {offsets = [0, 0], sizes = [2, 32], strides = [1, 1]} : vector<2x128xf32> to vector<2x32xf32>
    %608 = arith.negf %607 : vector<2x32xf32>
    %609 = math.exp %608 : vector<2x32xf32>
    %cst_208 = arith.constant 1.000000e+00 : f32
    %610 = vector.broadcast %cst_208 : f32 to vector<2x32xf32>
    %611 = arith.addf %610, %609 : vector<2x32xf32>
    %612 = arith.divf %610, %611 : vector<2x32xf32>
    %613 = vector.extract_strided_slice %581 {offsets = [0, 32], sizes = [2, 32], strides = [1, 1]} : vector<2x128xf32> to vector<2x32xf32>
    %614 = arith.negf %613 : vector<2x32xf32>
    %615 = math.exp %614 : vector<2x32xf32>
    %cst_209 = arith.constant 1.000000e+00 : f32
    %616 = vector.broadcast %cst_209 : f32 to vector<2x32xf32>
    %617 = arith.addf %616, %615 : vector<2x32xf32>
    %618 = arith.divf %616, %617 : vector<2x32xf32>
    %619 = vector.extract_strided_slice %581 {offsets = [0, 64], sizes = [2, 32], strides = [1, 1]} : vector<2x128xf32> to vector<2x32xf32>
    %620 = math.tanh %619 : vector<2x32xf32>
    %621 = vector.extract_strided_slice %581 {offsets = [0, 96], sizes = [2, 32], strides = [1, 1]} : vector<2x128xf32> to vector<2x32xf32>
    %622 = arith.negf %621 : vector<2x32xf32>
    %623 = math.exp %622 : vector<2x32xf32>
    %cst_210 = arith.constant 1.000000e+00 : f32
    %624 = vector.broadcast %cst_210 : f32 to vector<2x32xf32>
    %625 = arith.addf %624, %623 : vector<2x32xf32>
    %626 = arith.divf %624, %625 : vector<2x32xf32>
    %627 = arith.mulf %618, %559 : vector<2x32xf32>
    %628 = arith.mulf %612, %620 : vector<2x32xf32>
    %629 = arith.addf %627, %628 : vector<2x32xf32>
    %630 = math.tanh %629 : vector<2x32xf32>
    %631 = arith.mulf %626, %630 : vector<2x32xf32>
    %632 = arith.truncf %606 : vector<2x32xf32> to vector<2x32xbf16>
    %c7_211 = arith.constant 7 : index
    %c0_212 = arith.constant 0 : index
    %c0_213 = arith.constant 0 : index
    %633 = vector.load %arg6[%c7_211, %c0_212, %c0_213] : memref<8x2x64xbf16, #tpu.memory_space<vmem>>, vector<1x2x32xbf16>
    %634 = vector.shape_cast %633 : vector<1x2x32xbf16> to vector<2x32xbf16>
    %635 = vector.shape_cast %632 : vector<2x32xbf16> to vector<1x2x32xbf16>
    tpu.vector_store %arg6[%c7_211, %c0_212, %c0_213], %635 {strides = array<i32>} : memref<8x2x64xbf16, #tpu.memory_space<vmem>>, vector<1x2x32xbf16>,
    %636 = arith.truncf %631 : vector<2x32xf32> to vector<2x32xbf16>
    %c0_214 = arith.constant 0 : index
    %c0_215 = arith.constant 0 : index
    %c32_216 = arith.constant 32 : index
    %637 = vector.load %arg6[%c0_214, %c0_215, %c32_216] : memref<8x2x64xbf16, #tpu.memory_space<vmem>>, vector<1x2x32xbf16>
    %638 = vector.shape_cast %637 : vector<1x2x32xbf16> to vector<2x32xbf16>
    %639 = vector.shape_cast %636 : vector<2x32xbf16> to vector<1x2x32xbf16>
    tpu.vector_store %arg6[%c0_214, %c0_215, %c32_216], %639 {strides = array<i32>} : memref<8x2x64xbf16, #tpu.memory_space<vmem>>, vector<1x2x32xbf16>,
    return
  }
  func.func @transform_0(%arg0: i32) -> (i32, i32, i32) {
    %c0_i32 = arith.constant 0 : i32
    %c0_i32_0 = arith.constant 0 : i32
    %c0_i32_1 = arith.constant 0 : i32
    return %c0_i32, %arg0, %c0_i32_0 : i32, i32, i32
  }
  func.func @transform_1(%arg0: i32) -> (i32, i32) {
    %c0_i32 = arith.constant 0 : i32
    %c0_i32_0 = arith.constant 0 : i32
    %c0_i32_1 = arith.constant 0 : i32
    return %c0_i32, %c0_i32_0 : i32, i32
  }
  func.func @transform_2(%arg0: i32) -> (i32, i32) {
    %c0_i32 = arith.constant 0 : i32
    %c0_i32_0 = arith.constant 0 : i32
    %c0_i32_1 = arith.constant 0 : i32
    return %c0_i32, %c0_i32_0 : i32, i32
  }
  func.func @transform_3(%arg0: i32) -> (i32, i32) {
    %c0_i32 = arith.constant 0 : i32
    %c0_i32_0 = arith.constant 0 : i32
    %c0_i32_1 = arith.constant 0 : i32
    return %c0_i32, %c0_i32_0 : i32, i32
  }
  func.func @transform_4(%arg0: i32) -> (i32, i32) {
    %c0_i32 = arith.constant 0 : i32
    %c0_i32_0 = arith.constant 0 : i32
    %c0_i32_1 = arith.constant 0 : i32
    return %c0_i32, %c0_i32_0 : i32, i32
  }
  func.func @transform_5(%arg0: i32) -> (i32, i32, i32) {
    %c0_i32 = arith.constant 0 : i32
    %c0_i32_0 = arith.constant 0 : i32
    %c0_i32_1 = arith.constant 0 : i32
    return %c0_i32, %arg0, %c0_i32_0 : i32, i32, i32
  }
}

module attributes {stable_mosaic.version = 11 : i64} {
  func.func @_single_head_kernel(%arg0: i32, %arg1: memref<8x2x64xbf16, #tpu.memory_space<vmem>>, %arg2: memref<64x512xbf16, #tpu.memory_space<vmem>>, %arg3: memref<1x512xf32, #tpu.memory_space<vmem>>, %arg4: memref<512x2xbf16, #tpu.memory_space<vmem>>, %arg5: memref<1x2xf32, #tpu.memory_space<vmem>>, %arg6: memref<2x2xf32, #tpu.memory_space<vmem>>) attributes {dimension_semantics = [#tpu.dimension_semantics<parallel>], iteration_bounds = array<i64: 1>, scalar_prefetch = 0 : i64, scratch_operands = 0 : i64, tpu.core_type = #tpu.core_type<tc>, window_params = [{transform_indices = @transform_0, window_bounds = array<i64: 8, 2, 64>}, {pipeline_mode = #tpu.pipeline_mode<synchronous>, transform_indices = @transform_1, window_bounds = array<i64: 64, 512>}, {pipeline_mode = #tpu.pipeline_mode<synchronous>, transform_indices = @transform_2, window_bounds = array<i64: 1, 512>}, {pipeline_mode = #tpu.pipeline_mode<synchronous>, transform_indices = @transform_3, window_bounds = array<i64: 512, 2>}, {pipeline_mode = #tpu.pipeline_mode<synchronous>, transform_indices = @transform_4, window_bounds = array<i64: 1, 2>}, {transform_indices = @transform_5, window_bounds = array<i64: 2, 2>}]} {
    %c0 = arith.constant 0 : index
    %c0_0 = arith.constant 0 : index
    %c0_1 = arith.constant 0 : index
    %0 = vector.load %arg1[%c0, %c0_0, %c0_1] : memref<8x2x64xbf16, #tpu.memory_space<vmem>>, vector<8x2x64xbf16>
    %cst = arith.constant dense<0xFF80> : vector<2x64xbf16>
    %1 = vector.multi_reduction <maximumf>, %0, %cst [0] : vector<8x2x64xbf16> to vector<2x64xbf16>
    %c0_2 = arith.constant 0 : index
    %c0_3 = arith.constant 0 : index
    %2 = vector.load %arg2[%c0_2, %c0_3] : memref<64x512xbf16, #tpu.memory_space<vmem>>, vector<64x512xbf16>
    %cst_4 = arith.constant dense<0.000000e+00> : vector<2x512xf32>
    %3 = tpu.matmul %1, %2, %cst_4 {dimension_numbers = #tpu.dot_dimension_numbers<[1], [0], [0], [1], [0, 0, 1, 1], [], []>} : vector<2x64xbf16>, vector<64x512xbf16>, vector<2x512xf32> -> vector<2x512xf32>
    %c0_5 = arith.constant 0 : index
    %c0_6 = arith.constant 0 : index
    %4 = vector.load %arg3[%c0_5, %c0_6] : memref<1x512xf32, #tpu.memory_space<vmem>>, vector<1x512xf32>
    %5 = vector.broadcast %4 : vector<1x512xf32> to vector<2x512xf32>
    %6 = arith.addf %3, %5 : vector<2x512xf32>
    %7 = math.tanh %6 : vector<2x512xf32>
    %8 = arith.truncf %7 : vector<2x512xf32> to vector<2x512xbf16>
    %c0_7 = arith.constant 0 : index
    %c0_8 = arith.constant 0 : index
    %9 = vector.load %arg4[%c0_7, %c0_8] : memref<512x2xbf16, #tpu.memory_space<vmem>>, vector<512x2xbf16>
    %cst_9 = arith.constant dense<0.000000e+00> : vector<2x2xf32>
    %10 = tpu.matmul %8, %9, %cst_9 {dimension_numbers = #tpu.dot_dimension_numbers<[1], [0], [0], [1], [0, 0, 1, 1], [], []>} : vector<2x512xbf16>, vector<512x2xbf16>, vector<2x2xf32> -> vector<2x2xf32>
    %c0_10 = arith.constant 0 : index
    %c0_11 = arith.constant 0 : index
    %11 = vector.load %arg5[%c0_10, %c0_11] : memref<1x2xf32, #tpu.memory_space<vmem>>, vector<1x2xf32>
    %12 = vector.broadcast %11 : vector<1x2xf32> to vector<2x2xf32>
    %13 = arith.addf %10, %12 : vector<2x2xf32>
    %c0_12 = arith.constant 0 : index
    %c0_13 = arith.constant 0 : index
    %14 = vector.load %arg6[%c0_12, %c0_13] : memref<2x2xf32, #tpu.memory_space<vmem>>, vector<2x2xf32>
    tpu.vector_store %arg6[%c0_12, %c0_13], %13 {strides = array<i32>} : memref<2x2xf32, #tpu.memory_space<vmem>>, vector<2x2xf32>,
    return
  }
  func.func @transform_0(%arg0: i32) -> (i32, i32, i32) {
    %c0_i32 = arith.constant 0 : i32
    %c0_i32_0 = arith.constant 0 : i32
    %c0_i32_1 = arith.constant 0 : i32
    return %c0_i32, %arg0, %c0_i32_0 : i32, i32, i32
  }
  func.func @transform_1(%arg0: i32) -> (i32, i32) {
    %c0_i32 = arith.constant 0 : i32
    %c0_i32_0 = arith.constant 0 : i32
    %c0_i32_1 = arith.constant 0 : i32
    return %c0_i32, %c0_i32_0 : i32, i32
  }
  func.func @transform_2(%arg0: i32) -> (i32, i32) {
    %c0_i32 = arith.constant 0 : i32
    %c0_i32_0 = arith.constant 0 : i32
    %c0_i32_1 = arith.constant 0 : i32
    return %c0_i32, %c0_i32_0 : i32, i32
  }
  func.func @transform_3(%arg0: i32) -> (i32, i32) {
    %c0_i32 = arith.constant 0 : i32
    %c0_i32_0 = arith.constant 0 : i32
    %c0_i32_1 = arith.constant 0 : i32
    return %c0_i32, %c0_i32_0 : i32, i32
  }
  func.func @transform_4(%arg0: i32) -> (i32, i32) {
    %c0_i32 = arith.constant 0 : i32
    %c0_i32_0 = arith.constant 0 : i32
    %c0_i32_1 = arith.constant 0 : i32
    return %c0_i32, %c0_i32_0 : i32, i32
  }
  func.func @transform_5(%arg0: i32) -> (i32, i32) {
    %c0_i32 = arith.constant 0 : i32
    %c0_i32_0 = arith.constant 0 : i32
    return %arg0, %c0_i32 : i32, i32
  }
}

</mosaic_0001>

<bundles_post_ra>
// kernel: forward.5
= control target key start
LH: loop header
LB: loop body
LE: loop exit
PB: predicated region body
PF: predicated region fallthrough
CT: control target
= control target key end

     0   :  { %v820_v2 = vmov 0   ;;  %vm31_vm0 = vcmask 516096   ;;  %vm182_vm1 = vcmask 523264   ;;  %s1046_s0 = inlined_call_operand.vmem [shape: bf16[8,2,64], index: 0, kind: input, shape index: {}]   ;;  %s1047_s1 = inlined_call_operand.vmem [shape: bf16[64,512], index: 1, kind: input, shape index: {}]   ;;  %s1048_s2 = inlined_call_operand.vmem [shape: f32[1,512], index: 2, kind: input, shape index: {}]   ;;  %s1049_s3 = inlined_call_operand.vmem [shape: bf16[512,2], index: 3, kind: input, shape index: {}]   ;;  %s1050_s4 = inlined_call_operand.vmem [shape: f32[1,2], index: 4, kind: input, shape index: {}]   ;;  %s1051_s5 = inlined_call_operand.hbm [shape: f32[2,2], index: 5, kind: output, shape index: {}]  }
   0x1   :  { %v732_v0 = vld [vmem:[%s1047_s1 + $0x4] ss:$16 sps:$4 sm:$0xff]   ;;  %v734_v1 = vld [vmem:[%s1047_s1 + $0xc] ss:$16 sps:$4 sm:$0xff]   ;;  %218 = vmatprep.mubr.bf16.mxu0 %v820_v2  ;;  %259 = vmatprep.mubr.bf16.mxu1 %v820_v2  ;;  %v736_v3 = vld [vmem:[%s1047_s1] ss:$16 sps:$4 sm:$0xff]  }
   0x2   :  { %186 = vmatprep.subr.bf16.mxu0 %v732_v0  ;;  %v737_v4 = vld [vmem:[%s1047_s1 + $0x8] ss:$16 sps:$4 sm:$0xff]   ;;  %227 = vmatprep.subr.bf16.mxu1 %v734_v1  ;;  %v738_v5 = vld [vmem:[%s1047_s1 + $0x24] ss:$16 sps:$4 sm:$0xff]   ;;  %v740_v6 = vld [vmem:[%s1047_s1 + $0x2c] ss:$16 sps:$4 sm:$0xff]  }
   0x3   :  { %187 = vmatpush1.bf16.msra.mxu0 %v736_v3  ;;  %228 = vmatpush1.bf16.msra.mxu1 %v737_v4  ;;  %v742_v7 = vld [vmem:[%s1047_s1 + $0x20] ss:$16 sps:$4 sm:$0xff]   ;;  %v743_v8 = vld [vmem:[%s1047_s1 + $0x28] ss:$16 sps:$4 sm:$0xff]   ;;  %v744_v9 = vld [vmem:[%s1047_s1 + $0x44] ss:$16 sps:$4 sm:$0xff]  }
   0x4   :  { %188 = vmatprep.subr.bf16.mxu0 %v738_v5  ;;  %229 = vmatprep.subr.bf16.mxu1 %v740_v6  ;;  %v746_v10 = vld [vmem:[%s1047_s1 + $0x4c] ss:$16 sps:$4 sm:$0xff]   ;;  %v748_v11 = vld [vmem:[%s1047_s1 + $0x40] ss:$16 sps:$4 sm:$0xff]   ;;  %v749_v12 = vld [vmem:[%s1047_s1 + $0x48] ss:$16 sps:$4 sm:$0xff]  }
   0x5   :  { %v750_v13 = vld [vmem:[%s1047_s1 + $0x64] ss:$16 sps:$4 sm:$0xff]   ;;  %v752_v14 = vld [vmem:[%s1047_s1 + $0x6c] ss:$16 sps:$4 sm:$0xff]   ;;  %v754_v15 = vld [vmem:[%s1047_s1 + $0x60] ss:$16 sps:$4 sm:$0xff]  }
   0x6   :  { %v755_v16 = vld [vmem:[%s1047_s1 + $0x68] ss:$16 sps:$4 sm:$0xff]   ;;  %v23_v17 = vld [vmem:[%s1046_s0] sm:$0x1]  ;;  %v24_v18 = vld [vmem:[%s1046_s0 + $0x1] sm:$0x1] }
   0x7   :  { %189 = vmatpush1.bf16.msra.mxu0 %v742_v7  ;;  %230 = vmatpush1.bf16.msra.mxu1 %v743_v8  ;;  %v25_v19 = vld [vmem:[%s1046_s0 + $0x2] sm:$0x1]  ;;  %v26_v20 = vld [vmem:[%s1046_s0 + $0x3] sm:$0x1]  ;;  %v27_v21 = vld [vmem:[%s1046_s0 + $0x4] sm:$0x1] }
   0x8   :  { %190 = vmatprep.subr.bf16.mxu0 %v744_v9  ;;  %231 = vmatprep.subr.bf16.mxu1 %v746_v10  ;;  %v28_v22 = vld [vmem:[%s1046_s0 + $0x5] sm:$0x1]  ;;  %v29_v23 = vld [vmem:[%s1046_s0 + $0x6] sm:$0x1]  ;;  %v30_v24 = vld [vmem:[%s1046_s0 + $0x7] sm:$0x1] }
   0x9   :  { %v34_v25 = vsel %vm31_vm0, %v23_v17, 4286644096  ;;  %v37_v26 = vsel %vm31_vm0, %v24_v18, 4286644096  ;;  %v40_v27 = vsel %vm31_vm0, %v25_v19, 4286644096 }
   0xa   :  { %v43_v28 = vsel %vm31_vm0, %v26_v20, 4286644096  ;;  %v46_v29 = vsel %vm31_vm0, %v27_v21, 4286644096  ;;  %v50_v31 = vsel %vm31_vm0, %v28_v22, 4286644096 }
   0xb   :  { %191 = vmatpush1.bf16.msra.mxu0 %v748_v11  ;;  %232 = vmatpush1.bf16.msra.mxu1 %v749_v12  ;;  %v48_v30 = vmax.bf16 %v46_v29, %v34_v25  ;;  %v54_v32 = vsel %vm31_vm0, %v29_v23, 4286644096  ;;  %v58_v33 = vsel %vm31_vm0, %v30_v24, 4286644096  ;;  %v52_v34 = vmax.bf16 %v50_v31, %v37_v26  ;;  %v756_v37 = vld [vmem:[%s1049_s3 + $0x40] sm:$0xff]   ;;  %v760_v44 = vld [vmem:[%s1049_s3 + $0x48] sm:$0xff]  }
   0xc   :  { %192 = vmatprep.subr.bf16.mxu0 %v750_v13  ;;  %233 = vmatprep.subr.bf16.mxu1 %v752_v14  ;;  %v56_v35 = vmax.bf16 %v54_v32, %v40_v27  ;;  %v60_v36 = vmax.bf16 %v58_v33, %v43_v28  ;;  %v757_v38 = vld [vmem:[%s1049_s3 + $0xc0] sm:$0xff]   ;;  %v761_v45 = vld [vmem:[%s1049_s3 + $0xc8] sm:$0xff]   ;;  %v764_v48 = vld [vmem:[%s1049_s3 + $0x50] sm:$0xff]  }
   0xd   :  { %v61_v39 = vmax.bf16 %v52_v34, %v48_v30  ;;  %v758_v41 = vld [vmem:[%s1049_s3] sm:$0xff]   ;;  %v762_v46 = vld [vmem:[%s1049_s3 + $0x8] sm:$0xff]   ;;  %v765_v49 = vld [vmem:[%s1049_s3 + $0xd0] sm:$0xff]  }
   0xe   :  { %v62_v40 = vmax.bf16 %v60_v36, %v56_v35  ;;  %v759_v42 = vld [vmem:[%s1049_s3 + $0x80] sm:$0xff]   ;;  %v763_v47 = vld [vmem:[%s1049_s3 + $0x88] sm:$0xff]   ;;  %v766_v50 = vld [vmem:[%s1049_s3 + $0x10] sm:$0xff]  }
   0xf   :  { %193 = vmatpush1.bf16.msra.mxu0 %v754_v15  ;;  %234 = vmatpush1.bf16.msra.mxu1 %v755_v16  ;;  %v767_v51 = vld [vmem:[%s1049_s3 + $0x90] sm:$0xff]   ;;  %v768_v52 = vld [vmem:[%s1049_s3 + $0x58] sm:$0xff]  }
  0x10   :  { %686 = vmatprep.subr.bf16.mxu0 %v756_v37  ;;  %708 = vmatprep.subr.bf16.mxu1 %v757_v38  ;;  %v63_v43 = vmax.bf16 %v62_v40, %v61_v39  ;;  %v769_v53 = vld [vmem:[%s1049_s3 + $0xd8] sm:$0xff]  }
  0x11   :  { %v770_v54 = vld [vmem:[%s1049_s3 + $0x18] sm:$0xff]  }
  0x12   :  { %651 = vmatmul.mubr.msk.bf16.vlgmr.msra.gmra.mrb[0].mxu0 %vm182_vm1, %v63_v43  ;;  %652 = vmatmul.mubr.msk.bf16.vlgmr.msra.gmra.mrb[0].mxu1 %vm182_vm1, %v63_v43  ;;  %v771_v55 = vld [vmem:[%s1049_s3 + $0x98] sm:$0xff]  }
  0x13   :  { %687 = vmatpush3.bf16.msra.mxu0 %v758_v41  ;;  %709 = vmatpush3.bf16.msra.mxu1 %v759_v42 }
  0x14   :  { %688 = vmatprep.subr.bf16.mxu0 %v760_v44  ;;  %710 = vmatprep.subr.bf16.mxu1 %v761_v45 }
  0x17   :  { %689 = vmatpush3.bf16.msra.mxu0 %v762_v46  ;;  %711 = vmatpush3.bf16.msra.mxu1 %v763_v47 }
  0x18   :  { %690 = vmatprep.subr.bf16.mxu0 %v764_v48  ;;  %712 = vmatprep.subr.bf16.mxu1 %v765_v49 }
  0x1b   :  { %691 = vmatpush3.bf16.msra.mxu0 %v766_v50  ;;  %713 = vmatpush3.bf16.msra.mxu1 %v767_v51 }
  0x1c   :  { %692 = vmatprep.subr.bf16.mxu0 %v768_v52  ;;  %714 = vmatprep.subr.bf16.mxu1 %v769_v53 }
  0x1f   :  { %693 = vmatpush3.bf16.msra.mxu0 %v770_v54  ;;  %715 = vmatpush3.bf16.msra.mxu1 %v771_v55 }
  0x20   :  { %10 = vsyncpa [#allocation3], 0  ;;  %v772_v56 = vld [vmem:[%s1049_s3 + $0x60] sm:$0xff]   ;;  %v776_v60 = vld [vmem:[%s1049_s3 + $0x68] sm:$0xff]   ;;  %v82_v8 = vlaneseq  ;;  %s821_s26 = smov [#allocation2]   ;;  %vm619_vm2 = vcmask 9216  }
  0x21   :  { %v773_v57 = vld [vmem:[%s1049_s3 + $0xe0] sm:$0xff]   ;;  %694 = vmatprep.subr.bf16.mxu0 %v772_v56  ;;  %v777_v61 = vld [vmem:[%s1049_s3 + $0xe8] sm:$0xff]   ;;  %v780_v0 = vld [vmem:[%s1049_s3 + $0x70] sm:$0xff]   ;;  %s627_s27 = sshll.u32 %s821_s26, 4  ;;  %s628_s27 = int_to_ptr.vmem [resolvable:$true] %s627_s27 }
  0x22   :  { %v774_v58 = vld [vmem:[%s1049_s3 + $0x20] sm:$0xff]   ;;  %716 = vmatprep.subr.bf16.mxu1 %v773_v57  ;;  %v778_v62 = vld [vmem:[%s1049_s3 + $0x28] sm:$0xff]   ;;  %v781_v1 = vld [vmem:[%s1049_s3 + $0xf0] sm:$0xff]   ;;  %v83_v9 = vshrl.u32 %v82_v8, 7  ;;  %s796_s28 = scalar_lea.vmem %s628_s27, 32  ;;  %p801_p1 = scmp.lt.s32.totalorder %s628_s27, %s628_s27 }
  0x23   :  { %v775_v59 = vld [vmem:[%s1049_s3 + $0xa0] sm:$0xff]   ;;  %695 = vmatpush3.bf16.msra.mxu0 %v774_v58  ;;  %v779_v63 = vld [vmem:[%s1049_s3 + $0xa8] sm:$0xff]   ;;  %v782_v2 = vld [vmem:[%s1049_s3 + $0x30] sm:$0xff]   ;;  %p797_p0 = scmp.ne.s32.totalorder %s628_s27, %s796_s28  ;;  %p802_p2 = scmp.lt.s32.totalorder %s796_s28, %s796_s28 }
  0x24   :  { %717 = vmatpush3.bf16.msra.mxu1 %v775_v59  ;;  %696 = vmatprep.subr.bf16.mxu0 %v776_v60  ;;  %v783_v3 = vld [vmem:[%s1049_s3 + $0xb0] sm:$0xff]   ;;  %v784_v4 = vld [vmem:[%s1049_s3 + $0x78] sm:$0xff]   ;;  %v84_v10 = vsub.s32 0, %v83_v9  ;;  %v92_v11 = vsub.s32 2, %v83_v9  ;;  %v80_v12 = vld [vmem:[%s1048_s2] sm:$0xf] }
  0x25   :  { %718 = vmatprep.subr.bf16.mxu1 %v777_v61  ;;  %v785_v5 = vld [vmem:[%s1049_s3 + $0xf8] sm:$0xff]   ;;  %v88_v13 = vsub.s32 1, %v83_v9  ;;  %v96_v14 = vsub.s32 3, %v83_v9  ;;  %v653_v41 = vld [vmem:[%s1050_s4] ss:$0 sm:$0xff]  ;;  %p803_p3 = por %p802_p2, %p801_p1 }
  0x26   :  { %v786_v6 = vld [vmem:[%s1049_s3 + $0x38] sm:$0xff]   ;;  %v85_v15 = vrot.slane %v80_v12, %v84_v10  ;;  %v93_v16 = vrot.slane %v80_v12, %v92_v11 }
  0x27   :  { %697 = vmatpush3.bf16.msra.mxu0 %v778_v62  ;;  %v787_v7 = vld [vmem:[%s1049_s3 + $0xb8] sm:$0xff]   ;;  %v89_v17 = vrot.slane %v80_v12, %v88_v13  ;;  %v97_v18 = vrot.slane %v80_v12, %v96_v14  ;;  %p804_p4 = pnand %p803_p3, %p797_p0 }
  0x28   :  { %719 = vmatpush3.bf16.msra.mxu1 %v779_v63  ;;  %698 = vmatprep.subr.bf16.mxu0 %v780_v0 }
  0x29   :  { %720 = vmatprep.subr.bf16.mxu1 %v781_v1 }
  0x2b   :  { %699 = vmatpush3.bf16.msra.mxu0 %v782_v2 }
  0x2c   :  { %721 = vmatpush3.bf16.msra.mxu1 %v783_v3  ;;  %700 = vmatprep.subr.bf16.mxu0 %v784_v4 }
  0x2d   :  { %722 = vmatprep.subr.bf16.mxu1 %v785_v5 }
  0x2f   :  { %701 = vmatpush3.bf16.msra.mxu0 %v786_v6 }
  0x30   :  { %723 = vmatpush3.bf16.msra.mxu1 %v787_v7 }
  0xe5   :  { %v220_v19 = vpop.f32.mrb[0].mxu0  ;;  %v261_v20 = vpop.f32.mrb[0].mxu1 }
  0xe6   :  { %v221_v21 = vadd.f32 %v220_v19, %v85_v15  ;;  %v262_v22 = vadd.f32 %v261_v20, %v93_v16  ;;  %v222_v23 = vpop.f32.mrb[1].mxu0  ;;  %v263_v24 = vpop.f32.mrb[1].mxu1 }
  0xe7   :  { %v223_v25 = vadd.f32 %v222_v23, %v89_v17  ;;  %v264_v26 = vadd.f32 %v263_v24, %v97_v18  ;;  %v224_v27 = vpop.f32.mrb[2].mxu0  ;;  %v265_v28 = vpop.f32.mrb[2].mxu1 }
  0xe8   :  { %788 = vtanh.f32 %v221_v21  ;;  %v225_v29 = vpop.f32.mrb[3].mxu0  ;;  %v266_v30 = vpop.f32.mrb[3].mxu1 }
  0xe9   :  { %790 = vtanh.f32 %v262_v22 }
  0xea   :  { %792 = vtanh.f32 %v223_v25 }
  0xeb   :  { %794 = vtanh.f32 %v264_v26 }
  0xf2   :  { %v789_v31 = vpop.eup %788 }
  0xf3   :  { %v791_v32 = vpop.eup %790  ;;  %v272_v37 = vpack.c.bf16 %v789_v31, %v789_v31 }
  0xf4   :  { %v793_v33 = vpop.eup %792  ;;  %v274_v35 = vpack.c.bf16 %v791_v32, %v791_v32 }
  0xf5   :  { %v795_v34 = vpop.eup %794  ;;  %v273_v36 = vpack.c.bf16 %v793_v33, %v793_v33 }
  0xf6   :  { %v275_v38 = vpack.c.bf16 %v795_v34, %v795_v34 }
  0xf7   :  { %571 = vmatprep.mubr.bf16.mxu0 %v273_v36 }
  0xf8   :  { %611 = vmatprep.mubr.bf16.mxu1 %v275_v38  ;;  %572 = vmatmul.mubr.bf16.vlgmr.msra.gmra.mrb[4].mxu0 %v272_v37 }
  0xf9   :  { %612 = vmatmul.mubr.bf16.vlgmr.msra.gmra.mrb[4].mxu1 %v274_v35 }
 0x1cb   :  { %v702_v39 = vpop.f32.mrb[4].mxu0 }
 0x1cc   :  { %v724_v40 = vpop.f32.mrb[4].mxu1  ;;  %v703_v42 = vpop.f32.mrb[5].mxu0 }
 0x1cd   :  { %v704_v43 = vadd.f32 %v703_v42, %v702_v39  ;;  %v725_v44 = vpop.f32.mrb[5].mxu1  ;;  %v705_v45 = vpop.f32.mrb[6].mxu0 }
 0x1ce   :  { %v726_v46 = vadd.f32 %v725_v44, %v724_v40  ;;  %v727_v47 = vpop.f32.mrb[6].mxu1  ;;  %v706_v48 = vpop.f32.mrb[7].mxu0 }
 0x1cf   :  { %v574_v49 = vadd.f32 %v704_v43, %v653_v41  ;;  %v728_v50 = vpop.f32.mrb[7].mxu1 }
 0x1d1   :  { %v614_v51 = vadd.f32 %v726_v46, %v574_v49 }
 0x1d3   :  { %620 = vst.msk [vmem:[#allocation2] sm:$0x3] %vm619_vm2, %v614_v51 }
 0x1d4   :  { %807 = shalt.err (!%p804_p4)
}
 0x1d5   :  { %s808_s30 = scalar_lea.hbm %s1051_s5, 32 }
 0x1d6   :  { %p809_p5 = scmp.ne.s32.totalorder %s1051_s5, %s808_s30  ;;  %p812_p6 = scmp.lt.u32.totalorder %s808_s30, %s1051_s5 }
 0x1d8   :  { %p814_p7 = pnand %p812_p6, %p809_p5 }
 0x1da   :  { %817 = shalt.err (!%p814_p7)
}
 0x1db   :  { %630 = dma.vmem_to_hbm [thread:$0]  %s628_s27, 32, %s1051_s5, [#allocation3]  }
 0x1dc   :  { %818 = dma.done.wait [#allocation3], 32  }
 0x1dd   :  { %819 = vsyncadd [#allocation3], 4294967264 }
 0x1de   :  { %634 = vsyncpa [#allocation3], 1 }

// kernel: forward.4
= control target key start
LH: loop header
LB: loop body
LE: loop exit
PB: predicated region body
PF: predicated region fallthrough
CT: control target
= control target key end

     0   :  { %v2568_v1 = vmov 0   ;;  %vm71_vm0 = vcmask 523264   ;;  %v2569_v18 = vmov 0.0   ;;  %vm2570_vm1 = vmmov 0   ;;  %s2573_s8 = smov 32   ;;  %s3199_s1 = inlined_call_operand.vmem [shape: bf16[64,256], index: 1, kind: input, shape index: {}]   ;;  %s3200_s2 = inlined_call_operand.vmem [shape: bf16[32,128], index: 2, kind: input, shape index: {}]   ;;  %s3201_s3 = inlined_call_operand.vmem [shape: bf16[32,128], index: 3, kind: input, shape index: {}]   ;;  %s3202_s0 = inlined_call_operand.vmem [shape: bf16[8,2,64], index: 0, kind: input, shape index: {}]   ;;  %s3203_s4 = inlined_call_operand.vmem [shape: f32[1,256], index: 4, kind: input, shape index: {}]   ;;  %s3204_s5 = inlined_call_operand.vmem [shape: bf16[8,2,64], index: 5, kind: output, shape index: {}]  }
   0x1   :  { %v2607_v0 = vld [vmem:[%s3199_s1 + $0x4] ss:$8 sps:$4 sm:$0xff]   ;;  %187 = vmatprep.mubr.bf16.mxu1 %v2568_v1  ;;  %107 = vmatprep.mubr.bf16.mxu0 %v2568_v1  ;;  %v2614_v2 = vld [vmem:[%s3199_s1] ss:$8 sps:$4 sm:$0xff]   ;;  %v2621_v3 = vld [vmem:[%s3199_s1 + $0x14] ss:$8 sps:$4 sm:$0xff]   ;;  %v117_v22 = vlaneseq }
   0x2   :  { %75 = vmatprep.subr.bf16.mxu0 %v2607_v0  ;;  %155 = vmatprep.subr.bf16.mxu1 %v2607_v0  ;;  %v2628_v4 = vld [vmem:[%s3199_s1 + $0x10] ss:$8 sps:$4 sm:$0xff]   ;;  %v2635_v5 = vld [vmem:[%s3199_s1 + $0x24] ss:$8 sps:$4 sm:$0xff]   ;;  %v2642_v6 = vld [vmem:[%s3199_s1 + $0x20] ss:$8 sps:$4 sm:$0xff]  }
   0x3   :  { %76 = vmatpush1.bf16.msra.mxu0 %v2614_v2  ;;  %156 = vmatpush1.bf16.msra.mxu1 %v2614_v2  ;;  %v2649_v7 = vld [vmem:[%s3199_s1 + $0x34] ss:$8 sps:$4 sm:$0xff]   ;;  %v2656_v8 = vld [vmem:[%s3199_s1 + $0x30] ss:$8 sps:$4 sm:$0xff]   ;;  %v2162_v9 = vld [vmem:[%s3202_s0 + $0x1] sm:$0x1] }
   0x4   :  { %77 = vmatprep.subr.bf16.mxu0 %v2621_v3  ;;  %157 = vmatprep.subr.bf16.mxu1 %v2621_v3  ;;  %v30_v10 = vld [vmem:[%s3202_s0] sm:$0x1]  ;;  %v2170_v11 = vld [vmem:[%s3202_s0 + $0x3] sm:$0x1]  ;;  %v2166_v12 = vld [vmem:[%s3202_s0 + $0x2] sm:$0x1] }
   0x5   :  { %v2178_v13 = vld [vmem:[%s3202_s0 + $0x5] sm:$0x1]  ;;  %v2174_v14 = vld [vmem:[%s3202_s0 + $0x4] sm:$0x1]  ;;  %v2182_v15 = vld [vmem:[%s3202_s0 + $0x6] sm:$0x1] }
   0x6   :  { %v2186_v16 = vld [vmem:[%s3202_s0 + $0x7] sm:$0x1]  ;;  %v2764_v20 = vld [vmem:[%s3200_s2 + $0x8] sm:$0xff]   ;;  %v118_v23 = vshrl.u32 %v117_v22, 7  ;;  %v29_v25 = vld [vmem:[%s3203_s4] sm:$0x3] }
   0x7   :  { %78 = vmatpush1.bf16.msra.mxu0 %v2628_v4  ;;  %158 = vmatpush1.bf16.msra.mxu1 %v2628_v4  ;;  %v2749_v17 = vld [vmem:[%s3200_s2] sm:$0xff]   ;;  %v2773_v21 = vld [vmem:[%s3201_s3 + $0x8] sm:$0xff]   ;;  %v2571_v26 = vmov 1966171168   ;;  %s2572_s4 = smov 64   ;;  %vm662_vm2 = vcmask 261120  }
   0x8   :  { %79 = vmatprep.subr.bf16.mxu0 %v2635_v5  ;;  %159 = vmatprep.subr.bf16.mxu1 %v2635_v5  ;;  %v2756_v19 = vld [vmem:[%s3201_s3] sm:$0xff]   ;;  %v119_v24 = vsub.s32 0, %v118_v23  ;;  %v135_v27 = vunpack.c.l.s4 %v2571_v26  ;;  %v123_v28 = vsub.s32 1, %v118_v23  ;;  %vm829_vm3 = vcmask 253952  }
   0x9   :  { %vm851_vm4 = vcmask 516352  }
   0xa   :  { %v120_v29 = vrot.slane %v29_v25, %v119_v24  ;;  %v136_v30 = vunpack.c.0.s8 %v135_v27  ;;  %v2799_v31 = vrot.slane %v29_v25, %v123_v28 }
   0xb   :  { %80 = vmatpush1.bf16.msra.mxu0 %v2642_v6  ;;  %160 = vmatpush1.bf16.msra.mxu1 %v2642_v6 }
   0xc   :  { %81 = vmatprep.subr.bf16.mxu0 %v2649_v7  ;;  %161 = vmatprep.subr.bf16.mxu1 %v2649_v7  ;;  %v2801_v38 = vsub.s32 %v136_v30, %v118_v23 }
   0xf   :  { %82 = vmatpush1.bf16.msra.mxu0 %v2656_v8  ;;  %162 = vmatpush1.bf16.msra.mxu1 %v2656_v8 }
  0x10   :  { %225 = vmatprep.subr.bf16.mxu0 %v2607_v0  ;;  %295 = vmatprep.subr.bf16.mxu1 %v2607_v0 }
  0x12   :  { %2163 = vmatmul.mubr.msk.bf16.vlgmr.msra.gmra.mrb[0].mxu1 %vm71_vm0, %v2162_v9  ;;  %2159 = vmatmul.mubr.msk.bf16.vlgmr.msra.gmra.mrb[0].mxu0 %vm71_vm0, %v30_v10 }
  0x13   :  { %226 = vmatpush1.bf16.msra.mxu0 %v2614_v2  ;;  %296 = vmatpush1.bf16.msra.mxu1 %v2614_v2 }
  0x14   :  { %227 = vmatprep.subr.bf16.mxu0 %v2621_v3  ;;  %297 = vmatprep.subr.bf16.mxu1 %v2621_v3 }
  0x15   :  { %327 = vmatprep.mubr.bf16.mxu1 %v2568_v1  ;;  %257 = vmatprep.mubr.bf16.mxu0 %v2568_v1 }
  0x17   :  { %228 = vmatpush1.bf16.msra.mxu0 %v2628_v4  ;;  %298 = vmatpush1.bf16.msra.mxu1 %v2628_v4 }
  0x18   :  { %229 = vmatprep.subr.bf16.mxu0 %v2635_v5  ;;  %299 = vmatprep.subr.bf16.mxu1 %v2635_v5 }
  0x1b   :  { %230 = vmatpush1.bf16.msra.mxu0 %v2642_v6  ;;  %300 = vmatpush1.bf16.msra.mxu1 %v2642_v6 }
  0x1c   :  { %231 = vmatprep.subr.bf16.mxu0 %v2649_v7  ;;  %301 = vmatprep.subr.bf16.mxu1 %v2649_v7 }
  0x1f   :  { %232 = vmatpush1.bf16.msra.mxu0 %v2656_v8  ;;  %302 = vmatpush1.bf16.msra.mxu1 %v2656_v8 }
  0x20   :  { %365 = vmatprep.subr.bf16.mxu0 %v2607_v0  ;;  %435 = vmatprep.subr.bf16.mxu1 %v2607_v0 }
  0x22   :  { %2171 = vmatmul.mubr.msk.bf16.vlgmr.msra.gmra.mrb[4].mxu1 %vm71_vm0, %v2170_v11  ;;  %2167 = vmatmul.mubr.msk.bf16.vlgmr.msra.gmra.mrb[4].mxu0 %vm71_vm0, %v2166_v12 }
  0x23   :  { %366 = vmatpush1.bf16.msra.mxu0 %v2614_v2  ;;  %436 = vmatpush1.bf16.msra.mxu1 %v2614_v2 }
  0x24   :  { %367 = vmatprep.subr.bf16.mxu0 %v2621_v3  ;;  %437 = vmatprep.subr.bf16.mxu1 %v2621_v3 }
  0x25   :  { %467 = vmatprep.mubr.bf16.mxu1 %v2568_v1  ;;  %397 = vmatprep.mubr.bf16.mxu0 %v2568_v1 }
  0x27   :  { %368 = vmatpush1.bf16.msra.mxu0 %v2628_v4  ;;  %438 = vmatpush1.bf16.msra.mxu1 %v2628_v4 }
  0x28   :  { %369 = vmatprep.subr.bf16.mxu0 %v2635_v5  ;;  %439 = vmatprep.subr.bf16.mxu1 %v2635_v5 }
  0x2b   :  { %370 = vmatpush1.bf16.msra.mxu0 %v2642_v6  ;;  %440 = vmatpush1.bf16.msra.mxu1 %v2642_v6 }
  0x2c   :  { %371 = vmatprep.subr.bf16.mxu0 %v2649_v7  ;;  %441 = vmatprep.subr.bf16.mxu1 %v2649_v7 }
  0x2f   :  { %372 = vmatpush1.bf16.msra.mxu0 %v2656_v8  ;;  %442 = vmatpush1.bf16.msra.mxu1 %v2656_v8 }
  0x30   :  { %505 = vmatprep.subr.bf16.mxu0 %v2607_v0  ;;  %575 = vmatprep.subr.bf16.mxu1 %v2607_v0 }
  0x32   :  { %2179 = vmatmul.mubr.msk.bf16.vlgmr.msra.gmra.mrb[8].mxu1 %vm71_vm0, %v2178_v13  ;;  %2175 = vmatmul.mubr.msk.bf16.vlgmr.msra.gmra.mrb[8].mxu0 %vm71_vm0, %v2174_v14 }
  0x33   :  { %506 = vmatpush1.bf16.msra.mxu0 %v2614_v2  ;;  %576 = vmatpush1.bf16.msra.mxu1 %v2614_v2 }
  0x34   :  { %507 = vmatprep.subr.bf16.mxu0 %v2621_v3  ;;  %577 = vmatprep.subr.bf16.mxu1 %v2621_v3 }
  0x35   :  { %537 = vmatprep.mubr.bf16.mxu0 %v2568_v1  ;;  %607 = vmatprep.mubr.bf16.mxu1 %v2568_v1 }
  0x37   :  { %508 = vmatpush1.bf16.msra.mxu0 %v2628_v4  ;;  %578 = vmatpush1.bf16.msra.mxu1 %v2628_v4 }
  0x38   :  { %509 = vmatprep.subr.bf16.mxu0 %v2635_v5  ;;  %579 = vmatprep.subr.bf16.mxu1 %v2635_v5 }
  0x3b   :  { %510 = vmatpush1.bf16.msra.mxu0 %v2642_v6  ;;  %580 = vmatpush1.bf16.msra.mxu1 %v2642_v6 }
  0x3c   :  { %511 = vmatprep.subr.bf16.mxu0 %v2649_v7  ;;  %581 = vmatprep.subr.bf16.mxu1 %v2649_v7 }
  0x3f   :  { %512 = vmatpush1.bf16.msra.mxu0 %v2656_v8  ;;  %582 = vmatpush1.bf16.msra.mxu1 %v2656_v8 }
  0x40   :  { %2286 = vmatprep.subr.bf16.mxu0 %v2569_v18  ;;  %2294 = vmatprep.subr.bf16.mxu1 %v2569_v18 }
  0x42   :  { %2183 = vmatmul.mubr.msk.bf16.vlgmr.msra.gmra.mrb[12].mxu0 %vm71_vm0, %v2182_v15  ;;  %2187 = vmatmul.mubr.msk.bf16.vlgmr.msra.gmra.mrb[12].mxu1 %vm71_vm0, %v2186_v16 }
  0x43   :  { %2287 = vmatpush3.bf16.msra.mxu0 %v2749_v17  ;;  %2290 = vmatprep.mubr.msk.bf16.mxu0 %vm2570_vm1, %v2569_v18 }
  0x44   :  { %2288 = vmatprep.subr.bf16.mxu0 %v2569_v18  ;;  %2295 = vmatpush3.bf16.msra.mxu1 %v2756_v19 }
  0x45   :  { %2296 = vmatprep.subr.bf16.mxu1 %v2569_v18  ;;  %2298 = vmatprep.mubr.msk.bf16.mxu1 %vm2570_vm1, %v2569_v18 }
  0x47   :  { %2289 = vmatpush3.bf16.msra.mxu0 %v2764_v20 }
  0x48   :  { %2297 = vmatpush3.bf16.msra.mxu1 %v2773_v21  ;;  %2302 = vmatprep.subr.bf16.mxu0 %v2569_v18 }
  0x49   :  { %2310 = vmatprep.subr.bf16.mxu1 %v2569_v18 }
  0x4a   :  { %2291 = vmatmul.mubr.bf16.vlgmr.msra.gmra.mrb[16].mxu0 %v2568_v1 }
  0x4b   :  { %2299 = vmatmul.mubr.bf16.vlgmr.msra.gmra.mrb[16].mxu1 %v2568_v1  ;;  %2303 = vmatpush3.bf16.msra.mxu0 %v2749_v17 }
  0x4c   :  { %2304 = vmatprep.subr.bf16.mxu0 %v2569_v18  ;;  %2306 = vmatprep.mubr.msk.bf16.mxu0 %vm2570_vm1, %v2569_v18 }
  0x4d   :  { %2311 = vmatpush3.bf16.msra.mxu1 %v2756_v19  ;;  %2314 = vmatprep.mubr.msk.bf16.mxu1 %vm2570_vm1, %v2569_v18 }
  0x4e   :  { %2312 = vmatprep.subr.bf16.mxu1 %v2569_v18 }
  0x4f   :  { %2305 = vmatpush3.bf16.msra.mxu0 %v2764_v20 }
  0x50   :  { %2318 = vmatprep.subr.bf16.mxu0 %v2569_v18 }
  0x51   :  { %2313 = vmatpush3.bf16.msra.mxu1 %v2773_v21 }
  0x52   :  { %2326 = vmatprep.subr.bf16.mxu1 %v2569_v18 }
  0xe5   :  { %v189_v32 = vpop.f32.mrb[0].mxu1  ;;  %v109_v33 = vpop.f32.mrb[0].mxu0 }
  0xe6   :  { %v196_v34 = vadd.f32 %v189_v32, %v120_v29  ;;  %v191_v35 = vpop.f32.mrb[1].mxu1  ;;  %v127_v36 = vadd.f32 %v120_v29, %v109_v33  ;;  %v111_v37 = vpop.f32.mrb[1].mxu0 }
  0xe7   :  { %v197_v39 = vadd.f32 %v191_v35, %v2799_v31  ;;  %v193_v40 = vpop.f32.mrb[2].mxu1  ;;  %v128_v41 = vadd.f32 %v2799_v31, %v111_v37  ;;  %v113_v42 = vpop.f32.mrb[2].mxu0 }
  0xe8   :  { %v194_v43 = vpop.f32.mrb[3].mxu1  ;;  %v114_v44 = vpop.f32.mrb[3].mxu0 }
  0xe9   :  { %v2164_v45 = vpack.c.bf16 %v197_v39, %v196_v34  ;;  %v2160_v46 = vpack.c.bf16 %v128_v41, %v127_v36 }
  0xeb   :  { %v209_v47 = vrot.slane %v2164_v45, %v2801_v38  ;;  %v140_v48 = vrot.slane %v2160_v46, %v2801_v38 }
  0xed   :  { %2165 = vst.sshfl [vmem:[#allocation2 + $0x2] sm:$0x5 pattern:$0x73625140] %v209_v47 }
  0xee   :  { %2161 = vst.sshfl [vmem:[#allocation2] sm:$0x5 pattern:$0x73625140] %v140_v48 }
  0xf5   :  { %v329_v49 = vpop.f32.mrb[4].mxu1  ;;  %v259_v50 = vpop.f32.mrb[4].mxu0  ;;  %v648_v39 = vld [vmem:[#allocation2] sm:$0x1] }
  0xf6   :  { %v336_v51 = vadd.f32 %v329_v49, %v120_v29  ;;  %v331_v52 = vpop.f32.mrb[5].mxu1  ;;  %v266_v53 = vadd.f32 %v259_v50, %v120_v29  ;;  %v261_v54 = vpop.f32.mrb[5].mxu0  ;;  %v649_v42 = vunpack.c.l.bf16 %v648_v39 }
  0xf7   :  { %v337_v55 = vadd.f32 %v331_v52, %v2799_v31  ;;  %v333_v56 = vpop.f32.mrb[6].mxu1  ;;  %v267_v57 = vadd.f32 %v261_v54, %v2799_v31  ;;  %v263_v58 = vpop.f32.mrb[6].mxu0 }
  0xf8   :  { %v334_v59 = vpop.f32.mrb[7].mxu1  ;;  %v264_v60 = vpop.f32.mrb[7].mxu0 }
  0xf9   :  { %v2172_v61 = vpack.c.bf16 %v337_v55, %v336_v51  ;;  %v2168_v62 = vpack.c.bf16 %v267_v57, %v266_v53 }
  0xfb   :  { %v349_v63 = vrot.slane %v2172_v61, %v2801_v38  ;;  %v279_v0 = vrot.slane %v2168_v62, %v2801_v38 }
  0xfd   :  { %2173 = vst.sshfl [vmem:[#allocation2 + $0x6] sm:$0x5 pattern:$0x73625140] %v349_v63 }
  0xfe   :  { %2169 = vst.sshfl [vmem:[#allocation2 + $0x4] sm:$0x5 pattern:$0x73625140] %v279_v0 }
 0x105   :  { %v469_v1 = vpop.f32.mrb[8].mxu1  ;;  %v399_v2 = vpop.f32.mrb[8].mxu0 }
 0x106   :  { %v476_v3 = vadd.f32 %v469_v1, %v120_v29  ;;  %v471_v4 = vpop.f32.mrb[9].mxu1  ;;  %v406_v5 = vadd.f32 %v399_v2, %v120_v29  ;;  %v401_v6 = vpop.f32.mrb[9].mxu0 }
 0x107   :  { %v477_v7 = vadd.f32 %v471_v4, %v2799_v31  ;;  %v473_v8 = vpop.f32.mrb[10].mxu1  ;;  %v407_v9 = vadd.f32 %v401_v6, %v2799_v31  ;;  %v403_v10 = vpop.f32.mrb[10].mxu0 }
 0x108   :  { %v474_v11 = vpop.f32.mrb[11].mxu1  ;;  %v404_v12 = vpop.f32.mrb[11].mxu0 }
 0x109   :  { %v2180_v13 = vpack.c.bf16 %v477_v7, %v476_v3  ;;  %v2176_v14 = vpack.c.bf16 %v407_v9, %v406_v5 }
 0x10b   :  { %v489_v15 = vrot.slane %v2180_v13, %v2801_v38  ;;  %v419_v16 = vrot.slane %v2176_v14, %v2801_v38 }
 0x10d   :  { %2181 = vst.sshfl [vmem:[#allocation2 + $0xa] sm:$0x5 pattern:$0x73625140] %v489_v15 }
 0x10e   :  { %2177 = vst.sshfl [vmem:[#allocation2 + $0x8] sm:$0x5 pattern:$0x73625140] %v419_v16 }
 0x115   :  { %v609_v22 = vpop.f32.mrb[12].mxu1  ;;  %v539_v23 = vpop.f32.mrb[12].mxu0 }
 0x116   :  { %v616_v24 = vadd.f32 %v609_v22, %v120_v29  ;;  %v611_v25 = vpop.f32.mrb[13].mxu1  ;;  %v546_v26 = vadd.f32 %v539_v23, %v120_v29  ;;  %v541_v27 = vpop.f32.mrb[13].mxu0 }
 0x117   :  { %v617_v28 = vadd.f32 %v611_v25, %v2799_v31  ;;  %v613_v30 = vpop.f32.mrb[14].mxu1  ;;  %v547_v32 = vadd.f32 %v541_v27, %v2799_v31  ;;  %v543_v33 = vpop.f32.mrb[14].mxu0 }
 0x118   :  { %v614_v34 = vpop.f32.mrb[15].mxu1  ;;  %v544_v35 = vpop.f32.mrb[15].mxu0 }
 0x119   :  { %v2188_v36 = vpack.c.bf16 %v617_v28, %v616_v24  ;;  %v2184_v37 = vpack.c.bf16 %v547_v32, %v546_v26  ;;  %v853_v24 = vld [vmem:[#allocation2 + $0x2] sm:$0x1] }
 0x11a   :  { %v854_v25 = vunpack.c.l.bf16 %v853_v24 }
 0x11b   :  { %v629_v40 = vrot.slane %v2188_v36, %v2801_v38  ;;  %v559_v41 = vrot.slane %v2184_v37, %v2801_v38 }
 0x11d   :  { %2189 = vst.sshfl [vmem:[#allocation2 + $0xe] sm:$0x5 pattern:$0x73625140] %v629_v40  ;;  %v700_v29 = vpop.f32.mrb[16].mxu0 }
 0x11e   :  { %2185 = vst.sshfl [vmem:[#allocation2 + $0xc] sm:$0x5 pattern:$0x73625140] %v559_v41  ;;  %v706_v43 = vadd.f32 %v700_v29, %v649_v42  ;;  %v2292_v44 = vpop.f32.mrb[17].mxu0  ;;  %v755_v45 = vpop.f32.mrb[16].mxu1 }
 0x11f   :  { %v703_v46 = vpop.f32.mrb[18].mxu0  ;;  %v2300_v47 = vpop.f32.mrb[17].mxu1 }
 0x120   :  { %2436 = vtanh.f32 %v706_v43  ;;  %v2293_v31 = vpop.f32.mrb[19].mxu0  ;;  %v758_v48 = vpop.f32.mrb[18].mxu1  ;;  %v2194_v55 = vmul.f32 -1.442695, %v706_v43 }
 0x121   :  { %v2301_v49 = vpop.f32.mrb[19].mxu1 }
 0x124   :  { %v707_v50 = vld [vmem:[#allocation2 + $0xf] sm:$0x1] }
 0x125   :  { %v708_v51 = vunpack.c.l.bf16 %v707_v50  ;;  %v901_v33 = vld [vmem:[#allocation2 + $0xd] sm:$0x1] }
 0x126   :  { %v902_v34 = vunpack.c.l.bf16 %v901_v33 }
 0x127   :  { %v761_v52 = vadd.f32 %v755_v45, %v708_v51 }
 0x129   :  { %2438 = vtanh.f32 %v761_v52  ;;  %v2195_v56 = vmul.f32 -1.442695, %v761_v52 }
 0x12a   :  { %v2437_v53 = vpop.eup %2436  ;;  %2440 = vpow2.f32 %v2194_v55 }
 0x12b   :  { %771 = vrot.lane.b32.xlu0 %v2437_v53, %s2572_s4  ;;  %2442 = vpow2.f32 %v2195_v56 }
 0x133   :  { %v2439_v54 = vpop.eup %2438 }
 0x134   :  { %795 = vrot.lane.b32.xlu0 %v2439_v54, %s2572_s4  ;;  %v2441_v57 = vpop.eup %2440 }
 0x135   :  { %v765_v58 = vadd.f32 1.0, %v2441_v57  ;;  %v2443_v59 = vpop.eup %2442 }
 0x136   :  { %v789_v60 = vadd.f32 1.0, %v2443_v59 }
 0x137   :  { %2444 = vrcp.f32 %v765_v58 }
 0x138   :  { %2446 = vrcp.f32 %v789_v60 }
 0x141   :  { %v2445_v61 = vpop.eup %2444 }
 0x142   :  { %v2447_v0 = vpop.eup %2446  ;;  %v769_v3 = vmul.f32 0.0, %v2445_v61 }
 0x143   :  { %v793_v6 = vmul.f32 0.0, %v2447_v0 }
 0x19d   :  { %v772_v62 = vpop.permute.xlu0 %771 }
 0x19e   :  { %v774_v63 = vmul.f32 %v2445_v61, %v772_v62 }
 0x1a0   :  { %776 = vrot.lane.b32.xlu1 %v774_v63, %s2573_s8 }
 0x1a6   :  { %v796_v1 = vpop.permute.xlu0 %795 }
 0x1a7   :  { %v798_v2 = vmul.f32 %v2447_v0, %v796_v1 }
 0x1a9   :  { %800 = vrot.lane.b32.xlu1 %v798_v2, %s2573_s8 }
 0x212   :  { %v777_v4 = vpop.permute.xlu1 %776 }
 0x213   :  { %v2823_v5 = vadd.f32 %v777_v4, %v769_v3 }
 0x215   :  { %2448 = vtanh.f32 %v2823_v5 }
 0x21b   :  { %v801_v7 = vpop.permute.xlu1 %800 }
 0x21c   :  { %v2826_v8 = vadd.f32 %v801_v7, %v793_v6 }
 0x21e   :  { %2450 = vtanh.f32 %v2826_v8 }
 0x21f   :  { %v2449_v9 = vpop.eup %2448 }
 0x220   :  { %782 = vrot.lane.b32.xlu0 %v2449_v9, %s2572_s4 }
 0x228   :  { %v2451_v10 = vpop.eup %2450 }
 0x229   :  { %806 = vrot.lane.b32.xlu1 %v2451_v10, %s2572_s4 }
 0x292   :  { %v783_v11 = vpop.permute.xlu0 %782 }
 0x293   :  { %v785_v12 = vmul.f32 %v2445_v61, %v783_v11 }
 0x295   :  { %v2831_v13 = vpack.c.bf16 %v785_v12, %v785_v12  ;;  %v1087_v12 = vld [vmem:[#allocation2 + $0xb] sm:$0x1] }
 0x297   :  { %855 = vrot.lane.b32.xlu0 %v2831_v13, %s2573_s8 }
 0x29b   :  { %v807_v14 = vpop.permute.xlu1 %806 }
 0x29c   :  { %v809_v15 = vmul.f32 %v2447_v0, %v807_v14  ;;  %v1088_v14 = vunpack.c.l.bf16 %v1087_v12 }
 0x29e   :  { %v2835_v16 = vpack.c.bf16 %v809_v15, %v809_v15 }
 0x2a0   :  { %903 = vrot.lane.b32.xlu1 %v2835_v16, %s2573_s8 }
 0x309   :  { %v856_v22 = vpop.permute.xlu0 %855 }
 0x30a   :  { %2307 = vmatmul.mubr.msk.bf16.vlgmr.msra.gmra.mrb[20].mxu0 %vm662_vm2, %v856_v22 }
 0x30b   :  { %2319 = vmatpush3.bf16.msra.mxu0 %v2749_v17  ;;  %2322 = vmatprep.mubr.msk.bf16.mxu0 %vm2570_vm1, %v2569_v18 }
 0x30c   :  { %2320 = vmatprep.subr.bf16.mxu0 %v2569_v18 }
 0x30f   :  { %2321 = vmatpush3.bf16.msra.mxu0 %v2764_v20 }
 0x310   :  { %2334 = vmatprep.subr.bf16.mxu0 %v2569_v18 }
 0x312   :  { %v904_v23 = vpop.permute.xlu1 %903 }
 0x313   :  { %2315 = vmatmul.mubr.msk.bf16.vlgmr.msra.gmra.mrb[20].mxu1 %vm662_vm2, %v904_v23 }
 0x314   :  { %2327 = vmatpush3.bf16.msra.mxu1 %v2756_v19  ;;  %2330 = vmatprep.mubr.msk.bf16.mxu1 %vm2570_vm1, %v2569_v18 }
 0x315   :  { %2328 = vmatprep.subr.bf16.mxu1 %v2569_v18 }
 0x318   :  { %2329 = vmatpush3.bf16.msra.mxu1 %v2773_v21 }
 0x319   :  { %2342 = vmatprep.subr.bf16.mxu1 %v2569_v18 }
 0x3dd   :  { %v894_v26 = vpop.f32.mrb[20].mxu0 }
 0x3de   :  { %v900_v27 = vadd.f32 %v894_v26, %v854_v25  ;;  %v2308_v28 = vpop.f32.mrb[21].mxu0 }
 0x3df   :  { %v897_v30 = vpop.f32.mrb[22].mxu0 }
 0x3e0   :  { %2452 = vtanh.f32 %v900_v27  ;;  %v2309_v32 = vpop.f32.mrb[23].mxu0  ;;  %v2199_v29 = vmul.f32 -1.442695, %v900_v27 }
 0x3e6   :  { %v942_v35 = vpop.f32.mrb[20].mxu1 }
 0x3e7   :  { %v948_v36 = vadd.f32 %v942_v35, %v902_v34  ;;  %v2316_v37 = vpop.f32.mrb[21].mxu1 }
 0x3e8   :  { %v945_v39 = vpop.f32.mrb[22].mxu1 }
 0x3e9   :  { %2454 = vtanh.f32 %v948_v36  ;;  %v2317_v40 = vpop.f32.mrb[23].mxu1  ;;  %v2200_v43 = vmul.f32 -1.442695, %v948_v36 }
 0x3ea   :  { %v2453_v41 = vpop.eup %2452  ;;  %2456 = vpow2.f32 %v2199_v29 }
 0x3eb   :  { %958 = vrot.lane.b32.xlu0 %v2453_v41, %s2572_s4  ;;  %2458 = vpow2.f32 %v2200_v43 }
 0x3f3   :  { %v2455_v42 = vpop.eup %2454 }
 0x3f4   :  { %982 = vrot.lane.b32.xlu1 %v2455_v42, %s2572_s4  ;;  %v2457_v44 = vpop.eup %2456 }
 0x3f5   :  { %v952_v45 = vadd.f32 1.0, %v2457_v44  ;;  %v2459_v46 = vpop.eup %2458 }
 0x3f6   :  { %v976_v47 = vadd.f32 1.0, %v2459_v46 }
 0x3f7   :  { %2460 = vrcp.f32 %v952_v45 }
 0x3f8   :  { %2462 = vrcp.f32 %v976_v47 }
 0x401   :  { %v2461_v31 = vpop.eup %2460 }
 0x402   :  { %v2463_v50 = vpop.eup %2462  ;;  %v956_v53 = vmul.f32 %v2461_v31, %v2823_v5  ;;  %v1039_v5 = vld [vmem:[#allocation2 + $0x4] sm:$0x1] }
 0x403   :  { %v980_v56 = vmul.f32 %v2463_v50, %v2826_v8  ;;  %v1040_v6 = vunpack.c.l.bf16 %v1039_v5 }
 0x45d   :  { %v959_v48 = vpop.permute.xlu0 %958 }
 0x45e   :  { %v961_v49 = vmul.f32 %v2461_v31, %v959_v48 }
 0x460   :  { %963 = vrot.lane.b32.xlu0 %v961_v49, %s2573_s8 }
 0x466   :  { %v983_v51 = vpop.permute.xlu1 %982 }
 0x467   :  { %v985_v52 = vmul.f32 %v2463_v50, %v983_v51 }
 0x469   :  { %987 = vrot.lane.b32.xlu1 %v985_v52, %s2573_s8 }
 0x4d2   :  { %v964_v54 = vpop.permute.xlu0 %963 }
 0x4d3   :  { %v2858_v55 = vadd.f32 %v964_v54, %v956_v53 }
 0x4d5   :  { %2464 = vtanh.f32 %v2858_v55 }
 0x4db   :  { %v988_v57 = vpop.permute.xlu1 %987 }
 0x4dc   :  { %v2862_v58 = vadd.f32 %v988_v57, %v980_v56  ;;  %v1225_v57 = vld [vmem:[#allocation2 + $0x6] sm:$0x1] }
 0x4de   :  { %2466 = vtanh.f32 %v2862_v58 }
 0x4df   :  { %v2465_v59 = vpop.eup %2464 }
 0x4e0   :  { %969 = vrot.lane.b32.xlu0 %v2465_v59, %s2572_s4 }
 0x4e8   :  { %v2467_v60 = vpop.eup %2466 }
 0x4e9   :  { %993 = vrot.lane.b32.xlu1 %v2467_v60, %s2572_s4 }
 0x552   :  { %v970_v61 = vpop.permute.xlu0 %969 }
 0x553   :  { %v972_v62 = vmul.f32 %v2461_v31, %v970_v61 }
 0x555   :  { %v2867_v63 = vpack.c.bf16 %v972_v62, %v972_v62 }
 0x557   :  { %1041 = vrot.lane.b32.xlu0 %v2867_v63, %s2573_s8 }
 0x55b   :  { %v994_v0 = vpop.permute.xlu1 %993 }
 0x55c   :  { %v996_v1 = vmul.f32 %v2463_v50, %v994_v0 }
 0x55e   :  { %v2871_v2 = vpack.c.bf16 %v996_v1, %v996_v1  ;;  %v1273_v1 = vld [vmem:[#allocation2 + $0x9] sm:$0x1] }
 0x560   :  { %1089 = vrot.lane.b32.xlu1 %v2871_v2, %s2573_s8 }
 0x5c9   :  { %v1042_v3 = vpop.permute.xlu0 %1041 }
 0x5ca   :  { %2323 = vmatmul.mubr.msk.bf16.vlgmr.msra.gmra.mrb[24].mxu0 %vm662_vm2, %v1042_v3  ;;  %v1274_v3 = vunpack.c.l.bf16 %v1273_v1 }
 0x5cb   :  { %2335 = vmatpush3.bf16.msra.mxu0 %v2749_v17  ;;  %2338 = vmatprep.mubr.msk.bf16.mxu0 %vm2570_vm1, %v2569_v18 }
 0x5cc   :  { %2336 = vmatprep.subr.bf16.mxu0 %v2569_v18 }
 0x5cf   :  { %2337 = vmatpush3.bf16.msra.mxu0 %v2764_v20 }
 0x5d0   :  { %2350 = vmatprep.subr.bf16.mxu0 %v2569_v18 }
 0x5d2   :  { %v1090_v4 = vpop.permute.xlu1 %1089 }
 0x5d3   :  { %2331 = vmatmul.mubr.msk.bf16.vlgmr.msra.gmra.mrb[24].mxu1 %vm662_vm2, %v1090_v4 }
 0x5d4   :  { %2343 = vmatpush3.bf16.msra.mxu1 %v2756_v19  ;;  %2346 = vmatprep.mubr.msk.bf16.mxu1 %vm2570_vm1, %v2569_v18 }
 0x5d5   :  { %2344 = vmatprep.subr.bf16.mxu1 %v2569_v18 }
 0x5d8   :  { %2345 = vmatpush3.bf16.msra.mxu1 %v2773_v21 }
 0x5d9   :  { %2358 = vmatprep.subr.bf16.mxu1 %v2569_v18 }
 0x69d   :  { %v1080_v7 = vpop.f32.mrb[24].mxu0 }
 0x69e   :  { %v1086_v8 = vadd.f32 %v1080_v7, %v1040_v6  ;;  %v2324_v9 = vpop.f32.mrb[25].mxu0 }
 0x69f   :  { %v1083_v10 = vpop.f32.mrb[26].mxu0 }
 0x6a0   :  { %2468 = vtanh.f32 %v1086_v8  ;;  %v2325_v11 = vpop.f32.mrb[27].mxu0  ;;  %v2205_v28 = vmul.f32 -1.442695, %v1086_v8 }
 0x6a6   :  { %v1128_v15 = vpop.f32.mrb[24].mxu1 }
 0x6a7   :  { %v1134_v22 = vadd.f32 %v1128_v15, %v1088_v14  ;;  %v2332_v23 = vpop.f32.mrb[25].mxu1 }
 0x6a8   :  { %v1131_v24 = vpop.f32.mrb[26].mxu1 }
 0x6a9   :  { %2470 = vtanh.f32 %v1134_v22  ;;  %v2333_v25 = vpop.f32.mrb[27].mxu1  ;;  %v2206_v30 = vmul.f32 -1.442695, %v1134_v22 }
 0x6aa   :  { %v2469_v26 = vpop.eup %2468  ;;  %2472 = vpow2.f32 %v2205_v28 }
 0x6ab   :  { %1144 = vrot.lane.b32.xlu0 %v2469_v26, %s2572_s4  ;;  %2474 = vpow2.f32 %v2206_v30 }
 0x6b3   :  { %v2471_v27 = vpop.eup %2470 }
 0x6b4   :  { %1168 = vrot.lane.b32.xlu1 %v2471_v27, %s2572_s4  ;;  %v2473_v32 = vpop.eup %2472 }
 0x6b5   :  { %v1138_v33 = vadd.f32 1.0, %v2473_v32  ;;  %v2475_v34 = vpop.eup %2474 }
 0x6b6   :  { %v1162_v35 = vadd.f32 1.0, %v2475_v34 }
 0x6b7   :  { %2476 = vrcp.f32 %v1138_v33 }
 0x6b8   :  { %2478 = vrcp.f32 %v1162_v35 }
 0x6c1   :  { %v2477_v36 = vpop.eup %2476 }
 0x6c2   :  { %v2479_v40 = vpop.eup %2478  ;;  %v1142_v29 = vmul.f32 %v2477_v36, %v2858_v55 }
 0x6c3   :  { %v1166_v45 = vmul.f32 %v2479_v40, %v2862_v58  ;;  %v1226_v58 = vunpack.c.l.bf16 %v1225_v57 }
 0x71d   :  { %v1145_v37 = vpop.permute.xlu0 %1144 }
 0x71e   :  { %v1147_v39 = vmul.f32 %v2477_v36, %v1145_v37 }
 0x720   :  { %1149 = vrot.lane.b32.xlu0 %v1147_v39, %s2573_s8 }
 0x726   :  { %v1169_v41 = vpop.permute.xlu1 %1168 }
 0x727   :  { %v1171_v42 = vmul.f32 %v2479_v40, %v1169_v41 }
 0x729   :  { %1173 = vrot.lane.b32.xlu1 %v1171_v42, %s2573_s8 }
 0x792   :  { %v1150_v43 = vpop.permute.xlu0 %1149 }
 0x793   :  { %v2894_v44 = vadd.f32 %v1150_v43, %v1142_v29 }
 0x795   :  { %2480 = vtanh.f32 %v2894_v44 }
 0x79b   :  { %v1174_v46 = vpop.permute.xlu1 %1173 }
 0x79c   :  { %v2898_v47 = vadd.f32 %v1174_v46, %v1166_v45 }
 0x79e   :  { %2482 = vtanh.f32 %v2898_v47 }
 0x79f   :  { %v2481_v31 = vpop.eup %2480 }
 0x7a0   :  { %1155 = vrot.lane.b32.xlu0 %v2481_v31, %s2572_s4  ;;  %v1411_v31 = vld [vmem:[#allocation2 + $0x8] sm:$0x1] }
 0x7a8   :  { %v2483_v48 = vpop.eup %2482 }
 0x7a9   :  { %1179 = vrot.lane.b32.xlu1 %v2483_v48, %s2572_s4  ;;  %v1412_v48 = vunpack.c.l.bf16 %v1411_v31 }
 0x812   :  { %v1156_v49 = vpop.permute.xlu0 %1155 }
 0x813   :  { %v1158_v50 = vmul.f32 %v2477_v36, %v1156_v49 }
 0x815   :  { %v2903_v51 = vpack.c.bf16 %v1158_v50, %v1158_v50 }
 0x817   :  { %1227 = vrot.lane.b32.xlu0 %v2903_v51, %s2573_s8 }
 0x81b   :  { %v1180_v52 = vpop.permute.xlu1 %1179 }
 0x81c   :  { %v1182_v53 = vmul.f32 %v2479_v40, %v1180_v52 }
 0x81e   :  { %v2907_v54 = vpack.c.bf16 %v1182_v53, %v1182_v53 }
 0x820   :  { %1275 = vrot.lane.b32.xlu1 %v2907_v54, %s2573_s8 }
 0x889   :  { %v1228_v55 = vpop.permute.xlu0 %1227 }
 0x88a   :  { %2339 = vmatmul.mubr.msk.bf16.vlgmr.msra.gmra.mrb[28].mxu0 %vm662_vm2, %v1228_v55 }
 0x88b   :  { %2351 = vmatpush3.bf16.msra.mxu0 %v2749_v17  ;;  %2354 = vmatprep.mubr.msk.bf16.mxu0 %vm2570_vm1, %v2569_v18 }
 0x88c   :  { %2352 = vmatprep.subr.bf16.mxu0 %v2569_v18 }
 0x88f   :  { %2353 = vmatpush3.bf16.msra.mxu0 %v2764_v20 }
 0x890   :  { %2366 = vmatprep.subr.bf16.mxu0 %v2569_v18 }
 0x892   :  { %v1276_v56 = vpop.permute.xlu1 %1275 }
 0x893   :  { %2347 = vmatmul.mubr.msk.bf16.vlgmr.msra.gmra.mrb[28].mxu1 %vm662_vm2, %v1276_v56  ;;  %v1459_v56 = vld [vmem:[#allocation2 + $0x7] sm:$0x1] }
 0x894   :  { %2359 = vmatpush3.bf16.msra.mxu1 %v2756_v19  ;;  %2362 = vmatprep.mubr.msk.bf16.mxu1 %vm2570_vm1, %v2569_v18  ;;  %v1460_v57 = vunpack.c.l.bf16 %v1459_v56 }
 0x895   :  { %2360 = vmatprep.subr.bf16.mxu1 %v2569_v18 }
 0x898   :  { %2361 = vmatpush3.bf16.msra.mxu1 %v2773_v21 }
 0x899   :  { %2374 = vmatprep.subr.bf16.mxu1 %v2569_v18 }
 0x95d   :  { %v1266_v59 = vpop.f32.mrb[28].mxu0 }
 0x95e   :  { %v1272_v60 = vadd.f32 %v1266_v59, %v1226_v58  ;;  %v2340_v61 = vpop.f32.mrb[29].mxu0 }
 0x95f   :  { %v1269_v62 = vpop.f32.mrb[30].mxu0 }
 0x960   :  { %2484 = vtanh.f32 %v1272_v60  ;;  %v2341_v0 = vpop.f32.mrb[31].mxu0  ;;  %v2211_v11 = vmul.f32 -1.442695, %v1272_v60 }
 0x966   :  { %v1314_v4 = vpop.f32.mrb[28].mxu1 }
 0x967   :  { %v1320_v5 = vadd.f32 %v1314_v4, %v1274_v3  ;;  %v2348_v6 = vpop.f32.mrb[29].mxu1 }
 0x968   :  { %v1317_v7 = vpop.f32.mrb[30].mxu1 }
 0x969   :  { %2486 = vtanh.f32 %v1320_v5  ;;  %v2349_v8 = vpop.f32.mrb[31].mxu1  ;;  %v2212_v12 = vmul.f32 -1.442695, %v1320_v5 }
 0x96a   :  { %v2485_v9 = vpop.eup %2484  ;;  %2488 = vpow2.f32 %v2211_v11 }
 0x96b   :  { %1330 = vrot.lane.b32.xlu0 %v2485_v9, %s2572_s4  ;;  %2490 = vpow2.f32 %v2212_v12 }
 0x973   :  { %v2487_v10 = vpop.eup %2486 }
 0x974   :  { %1354 = vrot.lane.b32.xlu1 %v2487_v10, %s2572_s4  ;;  %v2489_v14 = vpop.eup %2488 }
 0x975   :  { %v1324_v15 = vadd.f32 1.0, %v2489_v14  ;;  %v2491_v22 = vpop.eup %2490 }
 0x976   :  { %v1348_v23 = vadd.f32 1.0, %v2491_v22 }
 0x977   :  { %2492 = vrcp.f32 %v1324_v15 }
 0x978   :  { %2494 = vrcp.f32 %v1348_v23 }
 0x981   :  { %v2493_v24 = vpop.eup %2492 }
 0x982   :  { %v2495_v27 = vpop.eup %2494  ;;  %v1328_v32 = vmul.f32 %v2493_v24, %v2894_v44 }
 0x983   :  { %v1352_v35 = vmul.f32 %v2495_v27, %v2898_v47 }
 0x9dd   :  { %v1331_v25 = vpop.permute.xlu0 %1330 }
 0x9de   :  { %v1333_v26 = vmul.f32 %v2493_v24, %v1331_v25 }
 0x9e0   :  { %1335 = vrot.lane.b32.xlu0 %v1333_v26, %s2573_s8 }
 0x9e6   :  { %v1355_v28 = vpop.permute.xlu1 %1354 }
 0x9e7   :  { %v1357_v30 = vmul.f32 %v2495_v27, %v1355_v28 }
 0x9e9   :  { %1359 = vrot.lane.b32.xlu1 %v1357_v30, %s2573_s8 }
 0xa52   :  { %v1336_v33 = vpop.permute.xlu0 %1335 }
 0xa53   :  { %v2930_v34 = vadd.f32 %v1336_v33, %v1328_v32 }
 0xa55   :  { %2496 = vtanh.f32 %v2930_v34 }
 0xa5b   :  { %v1360_v36 = vpop.permute.xlu1 %1359 }
 0xa5c   :  { %v2934_v37 = vadd.f32 %v1360_v36, %v1352_v35 }
 0xa5e   :  { %2498 = vtanh.f32 %v2934_v37 }
 0xa5f   :  { %v2497_v39 = vpop.eup %2496 }
 0xa60   :  { %1341 = vrot.lane.b32.xlu0 %v2497_v39, %s2572_s4 }
 0xa68   :  { %v2499_v40 = vpop.eup %2498 }
 0xa69   :  { %1365 = vrot.lane.b32.xlu1 %v2499_v40, %s2572_s4 }
 0xad2   :  { %v1342_v41 = vpop.permute.xlu0 %1341 }
 0xad3   :  { %v1344_v42 = vmul.f32 %v2493_v24, %v1342_v41 }
 0xad5   :  { %v2939_v29 = vpack.c.bf16 %v1344_v42, %v1344_v42 }
 0xad7   :  { %1413 = vrot.lane.b32.xlu0 %v2939_v29, %s2573_s8 }
 0xadb   :  { %v1366_v43 = vpop.permute.xlu1 %1365 }
 0xadc   :  { %v1368_v44 = vmul.f32 %v2495_v27, %v1366_v43 }
 0xade   :  { %v2943_v45 = vpack.c.bf16 %v1368_v44, %v1368_v44 }
 0xae0   :  { %1461 = vrot.lane.b32.xlu1 %v2943_v45, %s2573_s8 }
 0xb49   :  { %v1414_v46 = vpop.permute.xlu0 %1413 }
 0xb4a   :  { %2355 = vmatmul.mubr.msk.bf16.vlgmr.msra.gmra.mrb[32].mxu0 %vm662_vm2, %v1414_v46 }
 0xb4b   :  { %2367 = vmatpush3.bf16.msra.mxu0 %v2749_v17  ;;  %2370 = vmatprep.mubr.msk.bf16.mxu0 %vm2570_vm1, %v2569_v18 }
 0xb4c   :  { %2368 = vmatprep.subr.bf16.mxu0 %v2569_v18 }
 0xb4f   :  { %2369 = vmatpush3.bf16.msra.mxu0 %v2764_v20 }
 0xb50   :  { %2382 = vmatprep.subr.bf16.mxu0 %v2569_v18 }
 0xb52   :  { %v1462_v47 = vpop.permute.xlu1 %1461 }
 0xb53   :  { %2363 = vmatmul.mubr.msk.bf16.vlgmr.msra.gmra.mrb[32].mxu1 %vm662_vm2, %v1462_v47  ;;  %v1643_v47 = vld [vmem:[#allocation2 + $0x5] sm:$0x1] }
 0xb54   :  { %2375 = vmatpush3.bf16.msra.mxu1 %v2756_v19  ;;  %2378 = vmatprep.mubr.msk.bf16.mxu1 %vm2570_vm1, %v2569_v18  ;;  %v1644_v31 = vunpack.c.l.bf16 %v1643_v47 }
 0xb55   :  { %2376 = vmatprep.subr.bf16.mxu1 %v2569_v18 }
 0xb58   :  { %2377 = vmatpush3.bf16.msra.mxu1 %v2773_v21 }
 0xb59   :  { %2390 = vmatprep.subr.bf16.mxu1 %v2569_v18 }
 0xc1d   :  { %v1452_v49 = vpop.f32.mrb[32].mxu0 }
 0xc1e   :  { %v1458_v50 = vadd.f32 %v1452_v49, %v1412_v48  ;;  %v2356_v52 = vpop.f32.mrb[33].mxu0 }
 0xc1f   :  { %v1455_v53 = vpop.f32.mrb[34].mxu0 }
 0xc20   :  { %2500 = vtanh.f32 %v1458_v50  ;;  %v2357_v55 = vpop.f32.mrb[35].mxu0  ;;  %v2217_v3 = vmul.f32 -1.442695, %v1458_v50 }
 0xc26   :  { %v1500_v58 = vpop.f32.mrb[32].mxu1 }
 0xc27   :  { %v1506_v59 = vadd.f32 %v1500_v58, %v1460_v57  ;;  %v2364_v60 = vpop.f32.mrb[33].mxu1 }
 0xc28   :  { %v1503_v61 = vpop.f32.mrb[34].mxu1 }
 0xc29   :  { %2502 = vtanh.f32 %v1506_v59  ;;  %v2365_v62 = vpop.f32.mrb[35].mxu1  ;;  %v2218_v4 = vmul.f32 -1.442695, %v1506_v59 }
 0xc2a   :  { %v2501_v0 = vpop.eup %2500  ;;  %2504 = vpow2.f32 %v2217_v3 }
 0xc2b   :  { %1516 = vrot.lane.b32.xlu0 %v2501_v0, %s2572_s4  ;;  %2506 = vpow2.f32 %v2218_v4 }
 0xc33   :  { %v2503_v1 = vpop.eup %2502 }
 0xc34   :  { %1540 = vrot.lane.b32.xlu1 %v2503_v1, %s2572_s4  ;;  %v2505_v5 = vpop.eup %2504 }
 0xc35   :  { %v1510_v6 = vadd.f32 1.0, %v2505_v5  ;;  %v2507_v7 = vpop.eup %2506 }
 0xc36   :  { %v1534_v8 = vadd.f32 1.0, %v2507_v7 }
 0xc37   :  { %2508 = vrcp.f32 %v1510_v6 }
 0xc38   :  { %2510 = vrcp.f32 %v1534_v8 }
 0xc41   :  { %v2509_v9 = vpop.eup %2508 }
 0xc42   :  { %v2511_v12 = vpop.eup %2510  ;;  %v1514_v22 = vmul.f32 %v2509_v9, %v2930_v34 }
 0xc43   :  { %v1538_v25 = vmul.f32 %v2511_v12, %v2934_v37 }
 0xc9d   :  { %v1517_v10 = vpop.permute.xlu0 %1516 }
 0xc9e   :  { %v1519_v11 = vmul.f32 %v2509_v9, %v1517_v10 }
 0xca0   :  { %1521 = vrot.lane.b32.xlu0 %v1519_v11, %s2573_s8 }
 0xca6   :  { %v1541_v14 = vpop.permute.xlu1 %1540 }
 0xca7   :  { %v1543_v15 = vmul.f32 %v2511_v12, %v1541_v14 }
 0xca9   :  { %1545 = vrot.lane.b32.xlu1 %v1543_v15, %s2573_s8 }
 0xd12   :  { %v1522_v23 = vpop.permute.xlu0 %1521 }
 0xd13   :  { %v2966_v24 = vadd.f32 %v1522_v23, %v1514_v22 }
 0xd15   :  { %2512 = vtanh.f32 %v2966_v24 }
 0xd1b   :  { %v1546_v26 = vpop.permute.xlu1 %1545 }
 0xd1c   :  { %v2970_v27 = vadd.f32 %v1546_v26, %v1538_v25 }
 0xd1e   :  { %2514 = vtanh.f32 %v2970_v27 }
 0xd1f   :  { %v2513_v28 = vpop.eup %2512 }
 0xd20   :  { %1527 = vrot.lane.b32.xlu0 %v2513_v28, %s2572_s4  ;;  %v2565_v28 = vld [vmem:[%s3200_s2 + $0x8] sm:$0xff]  }
 0xd28   :  { %v2515_v30 = vpop.eup %2514 }
 0xd29   :  { %1551 = vrot.lane.b32.xlu1 %v2515_v30, %s2572_s4 }
 0xd92   :  { %v1528_v32 = vpop.permute.xlu0 %1527 }
 0xd93   :  { %v1530_v33 = vmul.f32 %v2509_v9, %v1528_v32  ;;  %v2566_v32 = vld [vmem:[%s3201_s3] sm:$0xff]  }
 0xd95   :  { %v2975_v34 = vpack.c.bf16 %v1530_v33, %v1530_v33  ;;  %v2567_v33 = vld [vmem:[%s3201_s3 + $0x8] sm:$0xff]  }
 0xd97   :  { %1597 = vrot.lane.b32.xlu0 %v2975_v34, %s2573_s8 }
 0xd9b   :  { %v1552_v35 = vpop.permute.xlu1 %1551 }
 0xd9c   :  { %v1554_v36 = vmul.f32 %v2511_v12, %v1552_v35  ;;  %v1779_v35 = vld [vmem:[#allocation2 + $0xc] sm:$0x1] }
 0xd9e   :  { %v2979_v37 = vpack.c.bf16 %v1554_v36, %v1554_v36  ;;  %v1780_v36 = vunpack.c.l.bf16 %v1779_v35  ;;  %v2011_v35 = vld [vmem:[#allocation2 + $0x1] sm:$0x1] }
 0xda0   :  { %1645 = vrot.lane.b32.xlu1 %v2979_v37, %s2573_s8 }
 0xe09   :  { %v1598_v39 = vpop.permute.xlu0 %1597 }
 0xe0a   :  { %2371 = vmatmul.mubr.msk.bf16.vlgmr.msra.gmra.mrb[36].mxu0 %vm662_vm2, %v1598_v39 }
 0xe0b   :  { %2383 = vmatpush3.bf16.msra.mxu0 %v2749_v17  ;;  %2386 = vmatprep.mubr.msk.bf16.mxu0 %vm2570_vm1, %v2569_v18  ;;  %v1595_v17 = vld [vmem:[#allocation2 + $0xa] sm:$0x1] }
 0xe0c   :  { %2384 = vmatprep.subr.bf16.mxu0 %v2569_v18  ;;  %v1596_v41 = vunpack.c.l.bf16 %v1595_v17 }
 0xe0f   :  { %2385 = vmatpush3.bf16.msra.mxu0 %v2764_v20 }
 0xe10   :  { %2398 = vmatprep.subr.bf16.mxu0 %v2569_v18 }
 0xe12   :  { %v1646_v40 = vpop.permute.xlu1 %1645 }
 0xe13   :  { %2379 = vmatmul.mubr.msk.bf16.vlgmr.msra.gmra.mrb[36].mxu1 %vm662_vm2, %v1646_v40 }
 0xe14   :  { %2391 = vmatpush3.bf16.msra.mxu1 %v2756_v19  ;;  %2394 = vmatprep.mubr.msk.bf16.mxu1 %vm2570_vm1, %v2569_v18 }
 0xe15   :  { %2392 = vmatprep.subr.bf16.mxu1 %v2569_v18 }
 0xe18   :  { %2393 = vmatpush3.bf16.msra.mxu1 %v2773_v21 }
 0xe19   :  { %2406 = vmatprep.subr.bf16.mxu1 %v2569_v18 }
 0xedd   :  { %v1636_v42 = vpop.f32.mrb[36].mxu0 }
 0xede   :  { %v1642_v20 = vadd.f32 %v1636_v42, %v1596_v41  ;;  %v2372_v43 = vpop.f32.mrb[37].mxu0 }
 0xedf   :  { %v1639_v44 = vpop.f32.mrb[38].mxu0 }
 0xee0   :  { %2516 = vtanh.f32 %v1642_v20  ;;  %v2373_v46 = vpop.f32.mrb[39].mxu0  ;;  %v2223_v55 = vmul.f32 -1.442695, %v1642_v20  ;;  %v1827_v20 = vld [vmem:[#allocation2 + $0x3] sm:$0x1] }
 0xee1   :  { %v1828_v43 = vunpack.c.l.bf16 %v1827_v20 }
 0xee6   :  { %v1684_v19 = vpop.f32.mrb[36].mxu1 }
 0xee7   :  { %v1690_v48 = vadd.f32 %v1684_v19, %v1644_v31  ;;  %v2380_v49 = vpop.f32.mrb[37].mxu1 }
 0xee8   :  { %v1687_v50 = vpop.f32.mrb[38].mxu1 }
 0xee9   :  { %2518 = vtanh.f32 %v1690_v48  ;;  %v2381_v52 = vpop.f32.mrb[39].mxu1  ;;  %v2224_v56 = vmul.f32 -1.442695, %v1690_v48 }
 0xeea   :  { %v2517_v53 = vpop.eup %2516  ;;  %2520 = vpow2.f32 %v2223_v55 }
 0xeeb   :  { %1700 = vrot.lane.b32.xlu0 %v2517_v53, %s2572_s4  ;;  %2522 = vpow2.f32 %v2224_v56 }
 0xef3   :  { %v2519_v21 = vpop.eup %2518 }
 0xef4   :  { %1724 = vrot.lane.b32.xlu1 %v2519_v21, %s2572_s4  ;;  %v2521_v57 = vpop.eup %2520 }
 0xef5   :  { %v1694_v58 = vadd.f32 1.0, %v2521_v57  ;;  %v2523_v59 = vpop.eup %2522 }
 0xef6   :  { %v1718_v60 = vadd.f32 1.0, %v2523_v59 }
 0xef7   :  { %2524 = vrcp.f32 %v1694_v58 }
 0xef8   :  { %2526 = vrcp.f32 %v1718_v60 }
 0xf01   :  { %v2525_v61 = vpop.eup %2524 }
 0xf02   :  { %v2527_v1 = vpop.eup %2526  ;;  %v1698_v5 = vmul.f32 %v2525_v61, %v2966_v24 }
 0xf03   :  { %v1722_v8 = vmul.f32 %v2527_v1, %v2970_v27  ;;  %v2564_v27 = vld [vmem:[%s3200_s2] sm:$0xff]  }
 0xf5d   :  { %v1701_v62 = vpop.permute.xlu0 %1700 }
 0xf5e   :  { %v1703_v0 = vmul.f32 %v2525_v61, %v1701_v62 }
 0xf60   :  { %1705 = vrot.lane.b32.xlu0 %v1703_v0, %s2573_s8 }
 0xf66   :  { %v1725_v3 = vpop.permute.xlu1 %1724 }
 0xf67   :  { %v1727_v4 = vmul.f32 %v2527_v1, %v1725_v3 }
 0xf69   :  { %1729 = vrot.lane.b32.xlu1 %v1727_v4, %s2573_s8 }
 0xfd2   :  { %v1706_v6 = vpop.permute.xlu0 %1705 }
 0xfd3   :  { %v3002_v7 = vadd.f32 %v1706_v6, %v1698_v5 }
 0xfd5   :  { %2528 = vtanh.f32 %v3002_v7 }
 0xfdb   :  { %v1730_v9 = vpop.permute.xlu1 %1729 }
 0xfdc   :  { %v3006_v10 = vadd.f32 %v1730_v9, %v1722_v8 }
 0xfde   :  { %2530 = vtanh.f32 %v3006_v10 }
 0xfdf   :  { %v2529_v11 = vpop.eup %2528 }
 0xfe0   :  { %1711 = vrot.lane.b32.xlu0 %v2529_v11, %s2572_s4 }
 0xfe8   :  { %v2531_v12 = vpop.eup %2530 }
 0xfe9   :  { %1735 = vrot.lane.b32.xlu1 %v2531_v12, %s2572_s4 }
0x1052   :  { %v1712_v14 = vpop.permute.xlu0 %1711 }
0x1053   :  { %v1714_v15 = vmul.f32 %v2525_v61, %v1712_v14 }
0x1055   :  { %v3011_v22 = vpack.c.bf16 %v1714_v15, %v1714_v15 }
0x1057   :  { %1781 = vrot.lane.b32.xlu0 %v3011_v22, %s2573_s8 }
0x105b   :  { %v1736_v23 = vpop.permute.xlu1 %1735 }
0x105c   :  { %v1738_v24 = vmul.f32 %v2527_v1, %v1736_v23 }
0x105e   :  { %v3015_v25 = vpack.c.bf16 %v1738_v24, %v1738_v24  ;;  %v1963_v24 = vld [vmem:[#allocation2 + $0xe] sm:$0x1] }
0x1060   :  { %1829 = vrot.lane.b32.xlu1 %v3015_v25, %s2573_s8 }
0x10c9   :  { %v1782_v26 = vpop.permute.xlu0 %1781 }
0x10ca   :  { %2387 = vmatmul.mubr.msk.bf16.vlgmr.msra.gmra.mrb[40].mxu0 %vm662_vm2, %v1782_v26  ;;  %v1964_v26 = vunpack.c.l.bf16 %v1963_v24  ;;  %v1767_v24 = vrot.slane %v3015_v25, %v2801_v38 }
0x10cb   :  { %2399 = vmatpush3.bf16.msra.mxu0 %v2564_v27  ;;  %2402 = vmatprep.mubr.msk.bf16.mxu0 %vm2570_vm1, %v2569_v18 }
0x10cc   :  { %2400 = vmatprep.subr.bf16.mxu0 %v2569_v18 }
0x10cf   :  { %2401 = vmatpush3.bf16.msra.mxu0 %v2565_v28 }
0x10d2   :  { %v1830_v30 = vpop.permute.xlu1 %1829 }
0x10d3   :  { %2395 = vmatmul.mubr.msk.bf16.vlgmr.msra.gmra.mrb[40].mxu1 %vm662_vm2, %v1830_v30 }
0x10d4   :  { %2407 = vmatpush3.bf16.msra.mxu1 %v2566_v32  ;;  %2410 = vmatprep.mubr.msk.bf16.mxu1 %vm2570_vm1, %v2569_v18 }
0x10d5   :  { %2408 = vmatprep.subr.bf16.mxu1 %v2569_v18 }
0x10d8   :  { %2409 = vmatpush3.bf16.msra.mxu1 %v2567_v33 }
0x119d   :  { %v1820_v39 = vpop.f32.mrb[40].mxu0 }
0x119e   :  { %v1826_v40 = vadd.f32 %v1820_v39, %v1780_v36  ;;  %v2388_v17 = vpop.f32.mrb[41].mxu0  ;;  %v2012_v36 = vunpack.c.l.bf16 %v2011_v35 }
0x119f   :  { %v1823_v41 = vpop.f32.mrb[42].mxu0 }
0x11a0   :  { %2532 = vtanh.f32 %v1826_v40  ;;  %v2389_v42 = vpop.f32.mrb[43].mxu0  ;;  %v2229_v49 = vmul.f32 -1.442695, %v1826_v40 }
0x11a6   :  { %v1868_v44 = vpop.f32.mrb[40].mxu1 }
0x11a7   :  { %v1874_v46 = vadd.f32 %v1868_v44, %v1828_v43  ;;  %v2396_v47 = vpop.f32.mrb[41].mxu1 }
0x11a8   :  { %v1871_v31 = vpop.f32.mrb[42].mxu1 }
0x11a9   :  { %2534 = vtanh.f32 %v1874_v46  ;;  %v2397_v18 = vpop.f32.mrb[43].mxu1  ;;  %v2230_v50 = vmul.f32 -1.442695, %v1874_v46 }
0x11aa   :  { %v2533_v19 = vpop.eup %2532  ;;  %2536 = vpow2.f32 %v2229_v49 }
0x11ab   :  { %1884 = vrot.lane.b32.xlu0 %v2533_v19, %s2572_s4  ;;  %2538 = vpow2.f32 %v2230_v50 }
0x11b3   :  { %v2535_v48 = vpop.eup %2534 }
0x11b4   :  { %1908 = vrot.lane.b32.xlu1 %v2535_v48, %s2572_s4  ;;  %v2537_v52 = vpop.eup %2536 }
0x11b5   :  { %v1878_v53 = vadd.f32 1.0, %v2537_v52  ;;  %v2539_v21 = vpop.eup %2538 }
0x11b6   :  { %v1902_v55 = vadd.f32 1.0, %v2539_v21 }
0x11b7   :  { %2540 = vrcp.f32 %v1878_v53 }
0x11b8   :  { %2542 = vrcp.f32 %v1902_v55 }
0x11c1   :  { %v2541_v56 = vpop.eup %2540 }
0x11c2   :  { %v2543_v59 = vpop.eup %2542  ;;  %v1882_v62 = vmul.f32 %v2541_v56, %v3002_v7 }
0x11c3   :  { %v1906_v3 = vmul.f32 %v2543_v59, %v3006_v10 }
0x121d   :  { %v1885_v57 = vpop.permute.xlu0 %1884 }
0x121e   :  { %v1887_v58 = vmul.f32 %v2541_v56, %v1885_v57 }
0x1220   :  { %1889 = vrot.lane.b32.xlu0 %v1887_v58, %s2573_s8 }
0x1226   :  { %v1909_v60 = vpop.permute.xlu1 %1908 }
0x1227   :  { %v1911_v61 = vmul.f32 %v2543_v59, %v1909_v60 }
0x1229   :  { %1913 = vrot.lane.b32.xlu1 %v1911_v61, %s2573_s8  ;;  %v818_v61 = vrot.slane %v2831_v13, %v2801_v38 }
0x1292   :  { %v1890_v0 = vpop.permute.xlu0 %1889 }
0x1293   :  { %v1892_v1 = vadd.f32 %v1890_v0, %v1882_v62  ;;  %v1005_v0 = vrot.slane %v2867_v63, %v2801_v38  ;;  %v1377_v63 = vrot.slane %v2939_v29, %v2801_v38 }
0x1295   :  { %2544 = vtanh.f32 %v1892_v1 }
0x129b   :  { %v1914_v4 = vpop.permute.xlu1 %1913 }
0x129c   :  { %v1916_v5 = vadd.f32 %v1914_v4, %v1906_v3  ;;  %v825_v3 = vrot.slane %v818_v61, %v2801_v38  ;;  %v1012_v4 = vrot.slane %v1005_v0, %v2801_v38 }
0x129e   :  { %2546 = vtanh.f32 %v1916_v5 }
0x129f   :  { %v2545_v6 = vpop.eup %2544 }
0x12a0   :  { %1895 = vrot.lane.b32.xlu0 %v2545_v6, %s2572_s4 }
0x12a8   :  { %v2547_v8 = vpop.eup %2546 }
0x12a9   :  { %1919 = vrot.lane.b32.xlu1 %v2547_v8, %s2572_s4  ;;  %v1026_v8 = vrot.slane %v2871_v2, %v2801_v38  ;;  %v1747_v2 = vrot.slane %v3011_v22, %v2801_v38 }
0x12ab   :  { %v1033_v29 = vrot.slane %v1026_v8, %v2801_v38 }
0x1312   :  { %v1896_v9 = vpop.permute.xlu0 %1895 }
0x1313   :  { %v1898_v11 = vmul.f32 %v2541_v56, %v1896_v9  ;;  %v1384_v9 = vrot.slane %v1377_v63, %v2801_v38 }
0x1315   :  { %v3047_v12 = vpack.c.bf16 %v1898_v11, %v1898_v11  ;;  %v1212_v11 = vrot.slane %v2907_v54, %v2801_v38 }
0x1317   :  { %1965 = vrot.lane.b32.xlu0 %v3047_v12, %s2573_s8  ;;  %v1931_v54 = vrot.slane %v3047_v12, %v2801_v38  ;;  %v1774_v12 = vrot.slane %v1767_v24, %v2801_v38 }
0x131b   :  { %v1920_v7 = vpop.permute.xlu1 %1919 }
0x131c   :  { %v1922_v14 = vmul.f32 %v2543_v59, %v1920_v7 }
0x131e   :  { %v3051_v15 = vpack.c.bf16 %v1922_v14, %v1922_v14  ;;  %v1398_v14 = vrot.slane %v2943_v45, %v2801_v38  ;;  %v1938_v45 = vrot.slane %v1931_v54, %v2801_v38 }
0x1320   :  { %2013 = vrot.lane.b32.xlu1 %v3051_v15, %s2573_s8  ;;  %v1405_v22 = vrot.slane %v1398_v14, %v2801_v38 }
0x1389   :  { %v1966_v10 = vpop.permute.xlu0 %1965 }
0x138a   :  { %2403 = vmatmul.mubr.msk.bf16.vlgmr.msra.gmra.mrb[44].mxu0 %vm662_vm2, %v1966_v10  ;;  %v1754_v10 = vrot.slane %v1747_v2, %v2801_v38 }
0x1392   :  { %v2014_v23 = vpop.permute.xlu1 %2013 }
0x1393   :  { %2411 = vmatmul.mubr.msk.bf16.vlgmr.msra.gmra.mrb[44].mxu1 %vm662_vm2, %v2014_v23  ;;  %v1583_v23 = vrot.slane %v2979_v37, %v2801_v38  ;;  %v1951_v37 = vrot.slane %v3051_v15, %v2801_v38 }
0x145d   :  { %v2004_v27 = vpop.f32.mrb[44].mxu0 }
0x145e   :  { %v2010_v28 = vadd.f32 %v2004_v27, %v1964_v26  ;;  %v2404_v30 = vpop.f32.mrb[45].mxu0  ;;  %v1590_v26 = vrot.slane %v1583_v23, %v2801_v38  ;;  %v1958_v27 = vrot.slane %v1951_v37, %v2801_v38 }
0x145f   :  { %v2007_v32 = vpop.f32.mrb[46].mxu0 }
0x1460   :  { %2548 = vtanh.f32 %v2010_v28  ;;  %v2405_v33 = vpop.f32.mrb[47].mxu0  ;;  %v2235_v44 = vmul.f32 -1.442695, %v2010_v28 }
0x1466   :  { %v2052_v39 = vpop.f32.mrb[44].mxu1 }
0x1467   :  { %v2058_v40 = vadd.f32 %v2052_v39, %v2012_v36  ;;  %v2412_v17 = vpop.f32.mrb[45].mxu1 }
0x1468   :  { %v2055_v41 = vpop.f32.mrb[46].mxu1 }
0x1469   :  { %2550 = vtanh.f32 %v2058_v40  ;;  %v2413_v42 = vpop.f32.mrb[47].mxu1  ;;  %v2236_v46 = vmul.f32 -1.442695, %v2058_v40 }
0x146a   :  { %v2549_v20 = vpop.eup %2548  ;;  %2552 = vpow2.f32 %v2235_v44 }
0x146b   :  { %2068 = vrot.lane.b32.xlu0 %v2549_v20, %s2572_s4  ;;  %2554 = vpow2.f32 %v2236_v46 }
0x1473   :  { %v2551_v43 = vpop.eup %2550 }
0x1474   :  { %2092 = vrot.lane.b32.xlu1 %v2551_v43, %s2572_s4  ;;  %v2553_v47 = vpop.eup %2552 }
0x1475   :  { %v2062_v31 = vadd.f32 1.0, %v2553_v47  ;;  %v2555_v18 = vpop.eup %2554 }
0x1476   :  { %v2086_v19 = vadd.f32 1.0, %v2555_v18 }
0x1477   :  { %2556 = vrcp.f32 %v2062_v31 }
0x1478   :  { %2558 = vrcp.f32 %v2086_v19 }
0x1481   :  { %v3059_v48 = vpop.eup %2556 }
0x1482   :  { %v3063_v52 = vpop.eup %2558  ;;  %v2066_v55 = vmul.f32 %v3059_v48, %v1892_v1  ;;  %v1191_v1 = vrot.slane %v2903_v51, %v2801_v38 }
0x1483   :  { %v2090_v58 = vmul.f32 %v3063_v52, %v1916_v5  ;;  %v839_v5 = vrot.slane %v2835_v16, %v2801_v38  ;;  %v1563_v16 = vrot.slane %v2975_v34, %v2801_v38  ;;  %v1219_v34 = vrot.slane %v1212_v11, %v2801_v38 }
0x1484   :  { %v1198_v6 = vrot.slane %v1191_v1, %v2801_v38 }
0x1485   :  { %v846_v51 = vrot.slane %v839_v5, %v2801_v38  ;;  %v1570_v7 = vrot.slane %v1563_v16, %v2801_v38 }
0x14dd   :  { %v2069_v49 = vpop.permute.xlu0 %2068 }
0x14de   :  { %v2071_v50 = vmul.f32 %v3059_v48, %v2069_v49 }
0x14e0   :  { %2073 = vrot.lane.b32.xlu0 %v2071_v50, %s2573_s8 }
0x14e6   :  { %v2093_v53 = vpop.permute.xlu1 %2092 }
0x14e7   :  { %v2095_v21 = vmul.f32 %v3063_v52, %v2093_v53 }
0x14e9   :  { %2097 = vrot.lane.b32.xlu1 %v2095_v21, %s2573_s8 }
0x1552   :  { %v2074_v56 = vpop.permute.xlu0 %2073 }
0x1553   :  { %v2076_v57 = vadd.f32 %v2074_v56, %v2066_v55 }
0x1555   :  { %2560 = vtanh.f32 %v2076_v57 }
0x155b   :  { %v2098_v59 = vpop.permute.xlu1 %2097 }
0x155c   :  { %v2100_v60 = vadd.f32 %v2098_v59, %v2090_v58 }
0x155e   :  { %2562 = vtanh.f32 %v2100_v60 }
0x155f   :  { %v2561_v62 = vpop.eup %2560 }
0x1560   :  { %2079 = vrot.lane.b32.xlu0 %v2561_v62, %s2572_s4 }
0x1564   :  { %826 = vrot.lane.b32.xlu0 %v825_v3, %s2573_s8 }
0x1568   :  { %v2563_v13 = vpop.eup %2562  ;;  %1013 = vrot.lane.b32.xlu0 %v1012_v4, %s2573_s8 }
0x1569   :  { %2103 = vrot.lane.b32.xlu1 %v2563_v13, %s2572_s4 }
0x156c   :  { %1199 = vrot.lane.b32.xlu0 %v1198_v6, %s2573_s8 }
0x156d   :  { %847 = vrot.lane.b32.xlu1 %v846_v51, %s2572_s4 }
0x1570   :  { %1385 = vrot.lane.b32.xlu0 %v1384_v9, %s2573_s8 }
0x1571   :  { %1034 = vrot.lane.b32.xlu1 %v1033_v29, %s2572_s4 }
0x1574   :  { %1571 = vrot.lane.b32.xlu0 %v1570_v7, %s2573_s8 }
0x1575   :  { %1220 = vrot.lane.b32.xlu1 %v1219_v34, %s2572_s4 }
0x1578   :  { %1755 = vrot.lane.b32.xlu0 %v1754_v10, %s2573_s8 }
0x1579   :  { %1406 = vrot.lane.b32.xlu1 %v1405_v22, %s2572_s4 }
0x157c   :  { %1939 = vrot.lane.b32.xlu0 %v1938_v45, %s2573_s8 }
0x157d   :  { %1591 = vrot.lane.b32.xlu1 %v1590_v26, %s2572_s4 }
0x1581   :  { %1775 = vrot.lane.b32.xlu1 %v1774_v12, %s2572_s4 }
0x1585   :  { %1959 = vrot.lane.b32.xlu1 %v1958_v27, %s2572_s4 }
0x15d2   :  { %v2080_v28 = vpop.permute.xlu0 %2079 }
0x15d3   :  { %v2082_v25 = vmul.f32 %v3059_v48, %v2080_v28 }
0x15d5   :  { %v2107_v30 = vpack.c.bf16 %v2082_v25, %v2082_v25 }
0x15d6   :  { %v827_v32 = vpop.permute.xlu0 %826 }
0x15d7   :  { %v2115_v33 = vrot.slane %v2107_v30, %v2801_v38  ;;  %830 = vst.msk [vmem:[%s3204_s5] sm:$0x1] %vm829_vm3, %v827_v32 }
0x15d9   :  { %v2122_v15 = vrot.slane %v2115_v33, %v2801_v38 }
0x15da   :  { %v1014_v35 = vpop.permute.xlu0 %1013 }
0x15db   :  { %2201 = vst.msk [vmem:[%s3204_s5 + $0x1] sm:$0x1] %vm829_vm3, %v1014_v35  ;;  %v2104_v36 = vpop.permute.xlu1 %2103  ;;  %2123 = vrot.lane.b32.xlu0 %v2122_v15, %s2573_s8 }
0x15dc   :  { %v2106_v39 = vmul.f32 %v3063_v52, %v2104_v36 }
0x15de   :  { %v2127_v40 = vpack.c.bf16 %v2106_v39, %v2106_v39  ;;  %v1200_v17 = vpop.permute.xlu0 %1199 }
0x15df   :  { %2207 = vst.msk [vmem:[%s3204_s5 + $0x2] sm:$0x1] %vm829_vm3, %v1200_v17  ;;  %v848_v41 = vpop.permute.xlu1 %847 }
0x15e0   :  { %v2135_v42 = vrot.slane %v2127_v40, %v2801_v38  ;;  %2196 = vst.msk [vmem:[%s3204_s5 + $0x7] sm:$0x1] %vm851_vm4, %v848_v41 }
0x15e2   :  { %v1386_v20 = vpop.permute.xlu0 %1385  ;;  %v2142_v43 = vrot.slane %v2135_v42, %v2801_v38 }
0x15e3   :  { %2213 = vst.msk [vmem:[%s3204_s5 + $0x3] sm:$0x1] %vm829_vm3, %v1386_v20  ;;  %v1035_v44 = vpop.permute.xlu1 %1034 }
0x15e4   :  { %2202 = vst.msk [vmem:[%s3204_s5 + $0x6] sm:$0x1] %vm851_vm4, %v1035_v44  ;;  %2143 = vrot.lane.b32.xlu1 %v2142_v43, %s2572_s4 }
0x15e6   :  { %v1572_v46 = vpop.permute.xlu0 %1571 }
0x15e7   :  { %v1221_v47 = vpop.permute.xlu1 %1220 }
0x15e8   :  { %2208 = vst.msk [vmem:[%s3204_s5 + $0x5] sm:$0x1] %vm851_vm4, %v1221_v47 }
0x15ea   :  { %v1756_v38 = vpop.permute.xlu0 %1755 }
0x15eb   :  { %2225 = vst.msk [vmem:[%s3204_s5 + $0x5] sm:$0x1] %vm829_vm3, %v1756_v38  ;;  %v1407_v31 = vpop.permute.xlu1 %1406 }
0x15ec   :  { %2214 = vst.msk [vmem:[%s3204_s5 + $0x4] sm:$0x1] %vm851_vm4, %v1407_v31 }
0x15ed   :  { %2219 = vst.msk [vmem:[%s3204_s5 + $0x4] sm:$0x1] %vm829_vm3, %v1572_v46 }
0x15ee   :  { %v1940_v18 = vpop.permute.xlu0 %1939 }
0x15ef   :  { %2231 = vst.msk [vmem:[%s3204_s5 + $0x6] sm:$0x1] %vm829_vm3, %v1940_v18  ;;  %v1592_v19 = vpop.permute.xlu1 %1591 }
0x15f0   :  { %2220 = vst.msk [vmem:[%s3204_s5 + $0x3] sm:$0x1] %vm851_vm4, %v1592_v19 }
0x15f3   :  { %v1776_v48 = vpop.permute.xlu1 %1775 }
0x15f4   :  { %2226 = vst.msk [vmem:[%s3204_s5 + $0x2] sm:$0x1] %vm851_vm4, %v1776_v48 }
0x15f7   :  { %v1960_v49 = vpop.permute.xlu1 %1959 }
0x15f8   :  { %2232 = vst.msk [vmem:[%s3204_s5 + $0x1] sm:$0x1] %vm851_vm4, %v1960_v49 }
0x164d   :  { %v2124_v50 = vpop.permute.xlu0 %2123 }
0x164e   :  { %2237 = vst.msk [vmem:[%s3204_s5 + $0x7] sm:$0x1] %vm829_vm3, %v2124_v50 }
0x1656   :  { %v2144_v52 = vpop.permute.xlu1 %2143 }
0x1657   :  { %2146 = vst.msk [vmem:[%s3204_s5] sm:$0x1] %vm851_vm4, %v2144_v52 }

// kernel: forward.3
= control target key start
LH: loop header
LB: loop body
LE: loop exit
PB: predicated region body
PF: predicated region fallthrough
CT: control target
= control target key end

     0   :  { %10 = vsyncpa [#allocation4], 0  ;;  %s3225_s0 = inlined_call_operand.vmem [shape: bf16[8,2,16], index: 0, kind: input, shape index: {}]   ;;  %s3226_s1 = inlined_call_operand.hbm [shape: bf16[16,256], index: 1, kind: input, shape index: {}]   ;;  %s3227_s2 = inlined_call_operand.hbm [shape: bf16[32,128], index: 2, kind: input, shape index: {}]   ;;  %s3228_s3 = inlined_call_operand.hbm [shape: bf16[32,128], index: 3, kind: input, shape index: {}]   ;;  %s3229_s4 = inlined_call_operand.hbm [shape: f32[1,256], index: 4, kind: input, shape index: {}]   ;;  %s3230_s5 = inlined_call_operand.vmem [shape: bf16[8,2,64], index: 5, kind: output, shape index: {}]  }
   0x1   :  { %11 = vsyncpa [#allocation6], 0 }
   0x2   :  { %12 = vsyncpa [#allocation9], 0  ;;  %s2674_s18 = smov [#allocation5]   ;;  %s2580_s22 = scalar_lea.hbm %s3227_s2, 256 }
   0x3   :  { %s32_s19 = sshll.u32 %s2674_s18, 4  ;;  %p2581_p0 = scmp.ne.s32.totalorder %s3227_s2, %s2580_s22  ;;  %s33_s19 = int_to_ptr.vmem [resolvable:$true] %s32_s19 }
   0x4   :  { %p2584_p1 = scmp.lt.u32.totalorder %s2580_s22, %s3227_s2 }
   0x6   :  { %p2586_p2 = pnand %p2584_p1, %p2581_p0 }
   0x8   :  { %2589 = shalt.err (!%p2586_p2)
}
   0x9   :  { %s2590_s27 = scalar_lea.vmem %s33_s19, 256  ;;  %p2595_p4 = scmp.lt.s32.totalorder %s33_s19, %s33_s19 }
   0xa   :  { %p2591_p3 = scmp.ne.s32.totalorder %s33_s19, %s2590_s27  ;;  %p2596_p5 = scmp.lt.s32.totalorder %s2590_s27, %s2590_s27 }
   0xc   :  { %p2597_p6 = por %p2596_p5, %p2595_p4 }
   0xe   :  { %p2598_p7 = pnand %p2597_p6, %p2591_p3 }
  0x10   :  { %2601 = shalt.err (!%p2598_p7)
}
  0x11   :  { %s2675_s28 = smov 64   ;;  %s2676_s29 = smov 4  }
  0x12   :  { %38 = dma.hbm_to_vmem [thread:$0]  %s3227_s2, 256, %s33_s19, [#allocation6], %s2675_s28, %s2675_s28, %s2676_s29  }
  0x13   :  { %s2677_s7 = smov [#allocation3]   ;;  %s2602_s11 = scalar_lea.hbm %s3226_s1, 256 }
  0x14   :  { %s20_s8 = sshll.u32 %s2677_s7, 4  ;;  %p2603_p8 = scmp.ne.s32.totalorder %s3226_s1, %s2602_s11  ;;  %s21_s8 = int_to_ptr.vmem [resolvable:$true] %s20_s8 }
  0x15   :  { %p2606_p9 = scmp.lt.u32.totalorder %s2602_s11, %s3226_s1 }
  0x17   :  { %p2608_p10 = pnand %p2606_p9, %p2603_p8 }
  0x19   :  { %2611 = shalt.err (!%p2608_p10)
}
  0x1a   :  { %s2612_s16 = scalar_lea.vmem %s21_s8, 256  ;;  %p2617_p12 = scmp.lt.s32.totalorder %s21_s8, %s21_s8 }
  0x1b   :  { %p2613_p11 = scmp.ne.s32.totalorder %s21_s8, %s2612_s16  ;;  %p2618_p13 = scmp.lt.s32.totalorder %s2612_s16, %s2612_s16 }
  0x1d   :  { %p2619_p0 = por %p2618_p13, %p2617_p12 }
  0x1f   :  { %p2620_p1 = pnand %p2619_p0, %p2613_p11 }
  0x21   :  { %2623 = shalt.err (!%p2620_p1)
}
  0x22   :  { %s2678_s2 = smov 128   ;;  %s2679_s17 = smov 8  }
  0x23   :  { %26 = dma.hbm_to_vmem [thread:$0]  %s3226_s1, 256, %s21_s8, [#allocation4], %s2678_s2, %s2678_s2, %s2679_s17  }
  0x24   :  { %s2680_s20 = smov [#allocation7]   ;;  %s2681_s22 = smov [#allocation8]  }
  0x25   :  { %s44_s21 = sshll.u32 %s2680_s20, 4  ;;  %s57_s23 = sshll.u32 %s2681_s22, 4  ;;  %s45_s21 = int_to_ptr.vmem [resolvable:$true] %s44_s21  ;;  %s58_s23 = int_to_ptr.vmem [resolvable:$true] %s57_s23 }
  0x26   :  { %s2624_s26 = scalar_lea.hbm %s3228_s3, 256 }
  0x27   :  { %p2625_p2 = scmp.ne.s32.totalorder %s3228_s3, %s2624_s26  ;;  %p2628_p3 = scmp.lt.u32.totalorder %s2624_s26, %s3228_s3 }
  0x29   :  { %p2630_p4 = pnand %p2628_p3, %p2625_p2 }
  0x2b   :  { %2633 = shalt.err (!%p2630_p4)
}
  0x2c   :  { %s2634_s1 = scalar_lea.vmem %s45_s21, 256  ;;  %p2639_p6 = scmp.lt.s32.totalorder %s45_s21, %s45_s21 }
  0x2d   :  { %p2635_p5 = scmp.ne.s32.totalorder %s45_s21, %s2634_s1  ;;  %p2640_p7 = scmp.lt.s32.totalorder %s2634_s1, %s2634_s1 }
  0x2f   :  { %p2641_p8 = por %p2640_p7, %p2639_p6 }
  0x31   :  { %p2642_p9 = pnand %p2641_p8, %p2635_p5 }
  0x33   :  { %2645 = shalt.err (!%p2642_p9)
}
  0x34   :  { %50 = dma.hbm_to_vmem [thread:$0]  %s3228_s3, 256, %s45_s21, [#allocation6], %s2675_s28, %s2675_s28, %s2676_s29  }
  0x35   :  { %s2646_s12 = scalar_lea.hbm %s3229_s4, 32 }
  0x36   :  { %p2647_p10 = scmp.ne.s32.totalorder %s3229_s4, %s2646_s12  ;;  %p2650_p11 = scmp.lt.u32.totalorder %s2646_s12, %s3229_s4 }
  0x38   :  { %p2652_p12 = pnand %p2650_p11, %p2647_p10 }
  0x3a   :  { %2655 = shalt.err (!%p2652_p12)
}
  0x3b   :  { %s2656_s2 = scalar_lea.vmem %s58_s23, 32  ;;  %p2661_p0 = scmp.lt.s32.totalorder %s58_s23, %s58_s23 }
  0x3c   :  { %p2657_p13 = scmp.ne.s32.totalorder %s58_s23, %s2656_s2  ;;  %p2662_p1 = scmp.lt.s32.totalorder %s2656_s2, %s2656_s2 }
  0x3e   :  { %p2663_p2 = por %p2662_p1, %p2661_p0 }
  0x40   :  { %p2664_p3 = pnand %p2663_p2, %p2657_p13 }
  0x42   :  { %2667 = shalt.err (!%p2664_p3)
}
  0x43   :  { %60 = dma.hbm_to_vmem [thread:$0]  %s3229_s4, 32, %s58_s23, [#allocation9]  }
  0x44   :  { %2668 = dma.done.wait [#allocation4], 256  }
  0x45   :  { %2669 = vsyncadd [#allocation4], 4294967040 }
  0x46   :  { %2670 = dma.done.wait [#allocation6], 512  }
  0x47   :  { %2671 = vsyncadd [#allocation6], 4294966784 }
  0x48   :  { %2672 = dma.done.wait [#allocation9], 32  }
  0x49   :  { %2673 = vsyncadd [#allocation9], 4294967264  ;;  %v2682_v0 = vmov 0   ;;  %v2441_v1 = vld [vmem:[#allocation3 + $0x4] ss:$8 sps:$4 sm:$0xff]   ;;  %vm88_vm0 = vcmask 130048   ;;  %v134_v16 = vlaneseq }
  0x4a   :  { %124 = vmatprep.mubr.bf16.mxu0 %v2682_v0  ;;  %204 = vmatprep.mubr.bf16.mxu1 %v2682_v0  ;;  %v2443_v2 = vld [vmem:[#allocation3] ss:$8 sps:$4 sm:$0xff]   ;;  %v77_v3 = vld [vmem:[%s3225_s0] sm:$0x1]  ;;  %v2176_v4 = vld [vmem:[%s3225_s0 + $0x1] sm:$0x1] }
  0x4b   :  { %92 = vmatprep.subr.bf16.mxu0 %v2441_v1  ;;  %172 = vmatprep.subr.bf16.mxu1 %v2441_v1  ;;  %v2180_v5 = vld [vmem:[%s3225_s0 + $0x2] sm:$0x1]  ;;  %v2184_v6 = vld [vmem:[%s3225_s0 + $0x3] sm:$0x1]  ;;  %v2188_v7 = vld [vmem:[%s3225_s0 + $0x4] sm:$0x1] }
  0x4c   :  { %93 = vmatpush1.bf16.msra.mxu0 %v2443_v2  ;;  %173 = vmatpush1.bf16.msra.mxu1 %v2443_v2  ;;  %v2192_v8 = vld [vmem:[%s3225_s0 + $0x5] sm:$0x1]  ;;  %v2683_v9 = vmov 0.0   ;;  %v2196_v10 = vld [vmem:[%s3225_s0 + $0x6] sm:$0x1]  ;;  %v2805_v13 = vld [vmem:[#allocation7] sm:$0xff]  }
  0x4d   :  { %312 = vmatprep.subr.bf16.mxu1 %v2441_v1  ;;  %242 = vmatprep.subr.bf16.mxu0 %v2441_v1  ;;  %v2200_v11 = vld [vmem:[%s3225_s0 + $0x7] sm:$0x1]  ;;  %v2810_v14 = vld [vmem:[#allocation5 + $0x8] sm:$0xff]   ;;  %vm2684_vm1 = vmmov 0   ;;  %v2816_v15 = vld [vmem:[#allocation7 + $0x8] sm:$0xff]   ;;  %v135_v17 = vshrl.u32 %v134_v16, 7 }
  0x4e   :  { %v2803_v12 = vld [vmem:[#allocation5] sm:$0xff]   ;;  %v2685_v20 = vmov 1966171168   ;;  %s2686_s0 = smov 32   ;;  %vm679_vm2 = vcmask 261120   ;;  %vm846_vm3 = vcmask 253952  }
  0x4f   :  { %2173 = vmatmul.mubr.msk.bf16.vlgmr.msra.gmra.mrb[0].mxu0 %vm88_vm0, %v77_v3  ;;  %2177 = vmatmul.mubr.msk.bf16.vlgmr.msra.gmra.mrb[0].mxu1 %vm88_vm0, %v2176_v4  ;;  %v136_v18 = vsub.s32 0, %v135_v17  ;;  %v76_v19 = vld [vmem:[#allocation8] sm:$0x3]  ;;  %v152_v21 = vunpack.c.l.s4 %v2685_v20  ;;  %v140_v22 = vsub.s32 1, %v135_v17  ;;  %vm868_vm4 = vcmask 516352  }
  0x50   :  { %313 = vmatpush1.bf16.msra.mxu1 %v2443_v2  ;;  %243 = vmatpush1.bf16.msra.mxu0 %v2443_v2 }
  0x51   :  { %274 = vmatprep.mubr.bf16.mxu0 %v2682_v0  ;;  %344 = vmatprep.mubr.bf16.mxu1 %v2682_v0  ;;  %v137_v23 = vrot.slane %v76_v19, %v136_v18  ;;  %v153_v24 = vunpack.c.0.s8 %v152_v21  ;;  %v2837_v25 = vrot.slane %v76_v19, %v140_v22 }
  0x52   :  { %452 = vmatprep.subr.bf16.mxu1 %v2441_v1  ;;  %382 = vmatprep.subr.bf16.mxu0 %v2441_v1 }
  0x53   :  { %v2839_v32 = vsub.s32 %v153_v24, %v135_v17 }
  0x57   :  { %2181 = vmatmul.mubr.msk.bf16.vlgmr.msra.gmra.mrb[4].mxu0 %vm88_vm0, %v2180_v5  ;;  %2185 = vmatmul.mubr.msk.bf16.vlgmr.msra.gmra.mrb[4].mxu1 %vm88_vm0, %v2184_v6 }
  0x58   :  { %453 = vmatpush1.bf16.msra.mxu1 %v2443_v2  ;;  %383 = vmatpush1.bf16.msra.mxu0 %v2443_v2 }
  0x59   :  { %414 = vmatprep.mubr.bf16.mxu0 %v2682_v0  ;;  %484 = vmatprep.mubr.bf16.mxu1 %v2682_v0 }
  0x5a   :  { %592 = vmatprep.subr.bf16.mxu1 %v2441_v1  ;;  %522 = vmatprep.subr.bf16.mxu0 %v2441_v1 }
  0x5f   :  { %2189 = vmatmul.mubr.msk.bf16.vlgmr.msra.gmra.mrb[8].mxu0 %vm88_vm0, %v2188_v7  ;;  %2193 = vmatmul.mubr.msk.bf16.vlgmr.msra.gmra.mrb[8].mxu1 %vm88_vm0, %v2192_v8 }
  0x60   :  { %593 = vmatpush1.bf16.msra.mxu1 %v2443_v2  ;;  %523 = vmatpush1.bf16.msra.mxu0 %v2443_v2 }
  0x61   :  { %554 = vmatprep.mubr.bf16.mxu0 %v2682_v0  ;;  %624 = vmatprep.mubr.bf16.mxu1 %v2682_v0 }
  0x62   :  { %2300 = vmatprep.subr.bf16.mxu0 %v2683_v9  ;;  %2308 = vmatprep.subr.bf16.mxu1 %v2683_v9 }
  0x67   :  { %2197 = vmatmul.mubr.msk.bf16.vlgmr.msra.gmra.mrb[12].mxu0 %vm88_vm0, %v2196_v10  ;;  %2201 = vmatmul.mubr.msk.bf16.vlgmr.msra.gmra.mrb[12].mxu1 %vm88_vm0, %v2200_v11 }
  0x68   :  { %2301 = vmatpush3.bf16.msra.mxu0 %v2803_v12  ;;  %2304 = vmatprep.mubr.msk.bf16.mxu0 %vm2684_vm1, %v2683_v9 }
  0x69   :  { %2302 = vmatprep.subr.bf16.mxu0 %v2683_v9  ;;  %2309 = vmatpush3.bf16.msra.mxu1 %v2805_v13 }
  0x6a   :  { %2310 = vmatprep.subr.bf16.mxu1 %v2683_v9  ;;  %2312 = vmatprep.mubr.msk.bf16.mxu1 %vm2684_vm1, %v2683_v9 }
  0x6c   :  { %2303 = vmatpush3.bf16.msra.mxu0 %v2810_v14 }
  0x6d   :  { %2311 = vmatpush3.bf16.msra.mxu1 %v2816_v15  ;;  %2316 = vmatprep.subr.bf16.mxu0 %v2683_v9 }
  0x6e   :  { %2324 = vmatprep.subr.bf16.mxu1 %v2683_v9 }
  0x6f   :  { %2305 = vmatmul.mubr.bf16.vlgmr.msra.gmra.mrb[16].mxu0 %v2682_v0 }
  0x70   :  { %2313 = vmatmul.mubr.bf16.vlgmr.msra.gmra.mrb[16].mxu1 %v2682_v0  ;;  %2317 = vmatpush3.bf16.msra.mxu0 %v2803_v12 }
  0x71   :  { %2318 = vmatprep.subr.bf16.mxu0 %v2683_v9  ;;  %2320 = vmatprep.mubr.msk.bf16.mxu0 %vm2684_vm1, %v2683_v9 }
  0x72   :  { %2325 = vmatpush3.bf16.msra.mxu1 %v2805_v13  ;;  %2328 = vmatprep.mubr.msk.bf16.mxu1 %vm2684_vm1, %v2683_v9 }
  0x73   :  { %2326 = vmatprep.subr.bf16.mxu1 %v2683_v9 }
  0x74   :  { %2319 = vmatpush3.bf16.msra.mxu0 %v2810_v14 }
  0x75   :  { %2332 = vmatprep.subr.bf16.mxu0 %v2683_v9 }
  0x76   :  { %2327 = vmatpush3.bf16.msra.mxu1 %v2816_v15 }
  0x77   :  { %2340 = vmatprep.subr.bf16.mxu1 %v2683_v9 }
 0x122   :  { %v206_v26 = vpop.f32.mrb[0].mxu1  ;;  %v126_v27 = vpop.f32.mrb[0].mxu0 }
 0x123   :  { %v213_v28 = vadd.f32 %v206_v26, %v137_v23  ;;  %v208_v29 = vpop.f32.mrb[1].mxu1  ;;  %v144_v30 = vadd.f32 %v137_v23, %v126_v27  ;;  %v128_v31 = vpop.f32.mrb[1].mxu0 }
 0x124   :  { %v214_v33 = vadd.f32 %v208_v29, %v2837_v25  ;;  %v210_v34 = vpop.f32.mrb[2].mxu1  ;;  %v145_v35 = vadd.f32 %v2837_v25, %v128_v31  ;;  %v130_v36 = vpop.f32.mrb[2].mxu0 }
 0x125   :  { %v211_v37 = vpop.f32.mrb[3].mxu1  ;;  %v131_v38 = vpop.f32.mrb[3].mxu0 }
 0x126   :  { %v2178_v39 = vpack.c.bf16 %v214_v33, %v213_v28  ;;  %v2174_v40 = vpack.c.bf16 %v145_v35, %v144_v30 }
 0x128   :  { %v226_v41 = vrot.slane %v2178_v39, %v2839_v32  ;;  %v157_v42 = vrot.slane %v2174_v40, %v2839_v32 }
 0x12a   :  { %2179 = vst.sshfl [vmem:[#allocation2 + $0x2] sm:$0x5 pattern:$0x73625140] %v226_v41  ;;  %v346_v43 = vpop.f32.mrb[4].mxu1  ;;  %v276_v44 = vpop.f32.mrb[4].mxu0 }
 0x12b   :  { %2175 = vst.sshfl [vmem:[#allocation2] sm:$0x5 pattern:$0x73625140] %v157_v42  ;;  %v353_v45 = vadd.f32 %v346_v43, %v137_v23  ;;  %v348_v46 = vpop.f32.mrb[5].mxu1  ;;  %v283_v47 = vadd.f32 %v276_v44, %v137_v23  ;;  %v278_v48 = vpop.f32.mrb[5].mxu0 }
 0x12c   :  { %v354_v49 = vadd.f32 %v348_v46, %v2837_v25  ;;  %v350_v50 = vpop.f32.mrb[6].mxu1  ;;  %v284_v51 = vadd.f32 %v278_v48, %v2837_v25  ;;  %v280_v52 = vpop.f32.mrb[6].mxu0 }
 0x12d   :  { %v351_v53 = vpop.f32.mrb[7].mxu1  ;;  %v281_v54 = vpop.f32.mrb[7].mxu0 }
 0x12e   :  { %v2186_v55 = vpack.c.bf16 %v354_v49, %v353_v45  ;;  %v2182_v56 = vpack.c.bf16 %v284_v51, %v283_v47 }
 0x130   :  { %v366_v57 = vrot.slane %v2186_v55, %v2839_v32  ;;  %v296_v58 = vrot.slane %v2182_v56, %v2839_v32 }
 0x132   :  { %2187 = vst.sshfl [vmem:[#allocation2 + $0x6] sm:$0x5 pattern:$0x73625140] %v366_v57  ;;  %v486_v59 = vpop.f32.mrb[8].mxu1  ;;  %v416_v60 = vpop.f32.mrb[8].mxu0 }
 0x133   :  { %2183 = vst.sshfl [vmem:[#allocation2 + $0x4] sm:$0x5 pattern:$0x73625140] %v296_v58  ;;  %v493_v61 = vadd.f32 %v486_v59, %v137_v23  ;;  %v488_v62 = vpop.f32.mrb[9].mxu1  ;;  %v423_v63 = vadd.f32 %v416_v60, %v137_v23  ;;  %v418_v0 = vpop.f32.mrb[9].mxu0 }
 0x134   :  { %v494_v1 = vadd.f32 %v488_v62, %v2837_v25  ;;  %v490_v2 = vpop.f32.mrb[10].mxu1  ;;  %v424_v3 = vadd.f32 %v418_v0, %v2837_v25  ;;  %v420_v4 = vpop.f32.mrb[10].mxu0  ;;  %v665_v33 = vld [vmem:[#allocation2] sm:$0x1] }
 0x135   :  { %v491_v5 = vpop.f32.mrb[11].mxu1  ;;  %v421_v6 = vpop.f32.mrb[11].mxu0  ;;  %v666_v36 = vunpack.c.l.bf16 %v665_v33 }
 0x136   :  { %v2194_v7 = vpack.c.bf16 %v494_v1, %v493_v61  ;;  %v2190_v8 = vpack.c.bf16 %v424_v3, %v423_v63 }
 0x138   :  { %v506_v10 = vrot.slane %v2194_v7, %v2839_v32  ;;  %v436_v11 = vrot.slane %v2190_v8, %v2839_v32 }
 0x13a   :  { %2195 = vst.sshfl [vmem:[#allocation2 + $0xa] sm:$0x5 pattern:$0x73625140] %v506_v10  ;;  %v626_v16 = vpop.f32.mrb[12].mxu1  ;;  %v556_v17 = vpop.f32.mrb[12].mxu0 }
 0x13b   :  { %2191 = vst.sshfl [vmem:[#allocation2 + $0x8] sm:$0x5 pattern:$0x73625140] %v436_v11  ;;  %v633_v18 = vadd.f32 %v626_v16, %v137_v23  ;;  %v628_v19 = vpop.f32.mrb[13].mxu1  ;;  %v563_v20 = vadd.f32 %v556_v17, %v137_v23  ;;  %v558_v21 = vpop.f32.mrb[13].mxu0 }
 0x13c   :  { %v634_v22 = vadd.f32 %v628_v19, %v2837_v25  ;;  %v630_v24 = vpop.f32.mrb[14].mxu1  ;;  %v564_v26 = vadd.f32 %v558_v21, %v2837_v25  ;;  %v560_v27 = vpop.f32.mrb[14].mxu0 }
 0x13d   :  { %v631_v28 = vpop.f32.mrb[15].mxu1  ;;  %v561_v29 = vpop.f32.mrb[15].mxu0 }
 0x13e   :  { %v2202_v30 = vpack.c.bf16 %v634_v22, %v633_v18  ;;  %v2198_v31 = vpack.c.bf16 %v564_v26, %v563_v20  ;;  %v870_v18 = vld [vmem:[#allocation2 + $0x2] sm:$0x1] }
 0x13f   :  { %v871_v19 = vunpack.c.l.bf16 %v870_v18 }
 0x140   :  { %v646_v34 = vrot.slane %v2202_v30, %v2839_v32  ;;  %v576_v35 = vrot.slane %v2198_v31, %v2839_v32 }
 0x142   :  { %2203 = vst.sshfl [vmem:[#allocation2 + $0xe] sm:$0x5 pattern:$0x73625140] %v646_v34  ;;  %v717_v23 = vpop.f32.mrb[16].mxu0 }
 0x143   :  { %2199 = vst.sshfl [vmem:[#allocation2 + $0xc] sm:$0x5 pattern:$0x73625140] %v576_v35  ;;  %v723_v37 = vadd.f32 %v717_v23, %v666_v36  ;;  %v2306_v38 = vpop.f32.mrb[17].mxu0  ;;  %v772_v39 = vpop.f32.mrb[16].mxu1 }
 0x144   :  { %v720_v40 = vpop.f32.mrb[18].mxu0  ;;  %v2314_v41 = vpop.f32.mrb[17].mxu1 }
 0x145   :  { %v2307_v25 = vpop.f32.mrb[19].mxu0  ;;  %v775_v42 = vpop.f32.mrb[18].mxu1  ;;  %2448 = vtanh.f32 %v723_v37  ;;  %v2208_v49 = vmul.f32 -1.442695, %v723_v37 }
 0x146   :  { %v2315_v43 = vpop.f32.mrb[19].mxu1 }
 0x149   :  { %v724_v44 = vld [vmem:[#allocation2 + $0xf] sm:$0x1] }
 0x14a   :  { %v725_v45 = vunpack.c.l.bf16 %v724_v44  ;;  %v918_v27 = vld [vmem:[#allocation2 + $0xd] sm:$0x1] }
 0x14b   :  { %v919_v28 = vunpack.c.l.bf16 %v918_v27 }
 0x14c   :  { %v778_v46 = vadd.f32 %v772_v39, %v725_v45 }
 0x14e   :  { %2450 = vtanh.f32 %v778_v46  ;;  %v2209_v50 = vmul.f32 -1.442695, %v778_v46 }
 0x14f   :  { %v2449_v47 = vpop.eup %2448  ;;  %2452 = vpow2.f32 %v2208_v49 }
 0x150   :  { %788 = vrot.lane.b32.xlu0 %v2449_v47, %s2675_s28  ;;  %2454 = vpow2.f32 %v2209_v50 }
 0x158   :  { %v2451_v48 = vpop.eup %2450 }
 0x159   :  { %812 = vrot.lane.b32.xlu0 %v2451_v48, %s2675_s28  ;;  %v2453_v51 = vpop.eup %2452 }
 0x15a   :  { %v782_v52 = vadd.f32 1.0, %v2453_v51  ;;  %v2455_v53 = vpop.eup %2454 }
 0x15b   :  { %v806_v54 = vadd.f32 1.0, %v2455_v53 }
 0x15c   :  { %2456 = vrcp.f32 %v782_v52 }
 0x15d   :  { %2458 = vrcp.f32 %v806_v54 }
 0x166   :  { %v2457_v55 = vpop.eup %2456 }
 0x167   :  { %v2459_v58 = vpop.eup %2458  ;;  %v786_v61 = vmul.f32 0.0, %v2457_v55 }
 0x168   :  { %v810_v0 = vmul.f32 0.0, %v2459_v58 }
 0x1c2   :  { %v789_v56 = vpop.permute.xlu0 %788 }
 0x1c3   :  { %v791_v57 = vmul.f32 %v2457_v55, %v789_v56 }
 0x1c5   :  { %793 = vrot.lane.b32.xlu1 %v791_v57, %s2686_s0 }
 0x1cb   :  { %v813_v59 = vpop.permute.xlu0 %812 }
 0x1cc   :  { %v815_v60 = vmul.f32 %v2459_v58, %v813_v59 }
 0x1ce   :  { %817 = vrot.lane.b32.xlu1 %v815_v60, %s2686_s0 }
 0x237   :  { %v794_v62 = vpop.permute.xlu1 %793 }
 0x238   :  { %v2861_v63 = vadd.f32 %v794_v62, %v786_v61 }
 0x23a   :  { %2460 = vtanh.f32 %v2861_v63 }
 0x240   :  { %v818_v1 = vpop.permute.xlu1 %817 }
 0x241   :  { %v2864_v2 = vadd.f32 %v818_v1, %v810_v0 }
 0x243   :  { %2462 = vtanh.f32 %v2864_v2 }
 0x244   :  { %v2461_v3 = vpop.eup %2460 }
 0x245   :  { %799 = vrot.lane.b32.xlu0 %v2461_v3, %s2675_s28 }
 0x24d   :  { %v2463_v4 = vpop.eup %2462 }
 0x24e   :  { %823 = vrot.lane.b32.xlu1 %v2463_v4, %s2675_s28 }
 0x2b7   :  { %v800_v5 = vpop.permute.xlu0 %799 }
 0x2b8   :  { %v802_v6 = vmul.f32 %v2457_v55, %v800_v5 }
 0x2ba   :  { %v2869_v7 = vpack.c.bf16 %v802_v6, %v802_v6  ;;  %v1104_v6 = vld [vmem:[#allocation2 + $0xb] sm:$0x1] }
 0x2bc   :  { %872 = vrot.lane.b32.xlu0 %v2869_v7, %s2686_s0 }
 0x2c0   :  { %v824_v8 = vpop.permute.xlu1 %823 }
 0x2c1   :  { %v826_v10 = vmul.f32 %v2459_v58, %v824_v8  ;;  %v1105_v8 = vunpack.c.l.bf16 %v1104_v6 }
 0x2c3   :  { %v2873_v11 = vpack.c.bf16 %v826_v10, %v826_v10 }
 0x2c5   :  { %920 = vrot.lane.b32.xlu1 %v2873_v11, %s2686_s0 }
 0x32e   :  { %v873_v16 = vpop.permute.xlu0 %872 }
 0x32f   :  { %2321 = vmatmul.mubr.msk.bf16.vlgmr.msra.gmra.mrb[20].mxu0 %vm679_vm2, %v873_v16 }
 0x330   :  { %2333 = vmatpush3.bf16.msra.mxu0 %v2803_v12  ;;  %2336 = vmatprep.mubr.msk.bf16.mxu0 %vm2684_vm1, %v2683_v9 }
 0x331   :  { %2334 = vmatprep.subr.bf16.mxu0 %v2683_v9 }
 0x334   :  { %2335 = vmatpush3.bf16.msra.mxu0 %v2810_v14 }
 0x335   :  { %2348 = vmatprep.subr.bf16.mxu0 %v2683_v9 }
 0x337   :  { %v921_v17 = vpop.permute.xlu1 %920 }
 0x338   :  { %2329 = vmatmul.mubr.msk.bf16.vlgmr.msra.gmra.mrb[20].mxu1 %vm679_vm2, %v921_v17 }
 0x339   :  { %2341 = vmatpush3.bf16.msra.mxu1 %v2805_v13  ;;  %2344 = vmatprep.mubr.msk.bf16.mxu1 %vm2684_vm1, %v2683_v9 }
 0x33a   :  { %2342 = vmatprep.subr.bf16.mxu1 %v2683_v9 }
 0x33d   :  { %2343 = vmatpush3.bf16.msra.mxu1 %v2816_v15 }
 0x33e   :  { %2356 = vmatprep.subr.bf16.mxu1 %v2683_v9 }
 0x402   :  { %v911_v20 = vpop.f32.mrb[20].mxu0 }
 0x403   :  { %v917_v21 = vadd.f32 %v911_v20, %v871_v19  ;;  %v2322_v22 = vpop.f32.mrb[21].mxu0 }
 0x404   :  { %v914_v24 = vpop.f32.mrb[22].mxu0 }
 0x405   :  { %2464 = vtanh.f32 %v917_v21  ;;  %v2323_v26 = vpop.f32.mrb[23].mxu0  ;;  %v2213_v23 = vmul.f32 -1.442695, %v917_v21 }
 0x40b   :  { %v959_v29 = vpop.f32.mrb[20].mxu1 }
 0x40c   :  { %v965_v30 = vadd.f32 %v959_v29, %v919_v28  ;;  %v2330_v31 = vpop.f32.mrb[21].mxu1 }
 0x40d   :  { %v962_v33 = vpop.f32.mrb[22].mxu1 }
 0x40e   :  { %2466 = vtanh.f32 %v965_v30  ;;  %v2331_v34 = vpop.f32.mrb[23].mxu1  ;;  %v2214_v37 = vmul.f32 -1.442695, %v965_v30 }
 0x40f   :  { %v2465_v35 = vpop.eup %2464  ;;  %2468 = vpow2.f32 %v2213_v23 }
 0x410   :  { %975 = vrot.lane.b32.xlu0 %v2465_v35, %s2675_s28  ;;  %2470 = vpow2.f32 %v2214_v37 }
 0x418   :  { %v2467_v36 = vpop.eup %2466 }
 0x419   :  { %999 = vrot.lane.b32.xlu1 %v2467_v36, %s2675_s28  ;;  %v2469_v38 = vpop.eup %2468 }
 0x41a   :  { %v969_v39 = vadd.f32 1.0, %v2469_v38  ;;  %v2471_v40 = vpop.eup %2470 }
 0x41b   :  { %v993_v41 = vadd.f32 1.0, %v2471_v40 }
 0x41c   :  { %2472 = vrcp.f32 %v969_v39 }
 0x41d   :  { %2474 = vrcp.f32 %v993_v41 }
 0x426   :  { %v2473_v25 = vpop.eup %2472 }
 0x427   :  { %v2475_v44 = vpop.eup %2474  ;;  %v973_v47 = vmul.f32 %v2473_v25, %v2861_v63  ;;  %v1056_v63 = vld [vmem:[#allocation2 + $0x4] sm:$0x1] }
 0x428   :  { %v997_v50 = vmul.f32 %v2475_v44, %v2864_v2  ;;  %v1057_v0 = vunpack.c.l.bf16 %v1056_v63 }
 0x482   :  { %v976_v42 = vpop.permute.xlu0 %975 }
 0x483   :  { %v978_v43 = vmul.f32 %v2473_v25, %v976_v42 }
 0x485   :  { %980 = vrot.lane.b32.xlu0 %v978_v43, %s2686_s0 }
 0x48b   :  { %v1000_v45 = vpop.permute.xlu1 %999 }
 0x48c   :  { %v1002_v46 = vmul.f32 %v2475_v44, %v1000_v45 }
 0x48e   :  { %1004 = vrot.lane.b32.xlu1 %v1002_v46, %s2686_s0 }
 0x4f7   :  { %v981_v48 = vpop.permute.xlu0 %980 }
 0x4f8   :  { %v2896_v49 = vadd.f32 %v981_v48, %v973_v47 }
 0x4fa   :  { %2476 = vtanh.f32 %v2896_v49 }
 0x500   :  { %v1005_v51 = vpop.permute.xlu1 %1004 }
 0x501   :  { %v2900_v52 = vadd.f32 %v1005_v51, %v997_v50  ;;  %v1242_v51 = vld [vmem:[#allocation2 + $0x6] sm:$0x1] }
 0x503   :  { %2478 = vtanh.f32 %v2900_v52 }
 0x504   :  { %v2477_v53 = vpop.eup %2476 }
 0x505   :  { %986 = vrot.lane.b32.xlu0 %v2477_v53, %s2675_s28 }
 0x50d   :  { %v2479_v54 = vpop.eup %2478 }
 0x50e   :  { %1010 = vrot.lane.b32.xlu1 %v2479_v54, %s2675_s28 }
 0x577   :  { %v987_v55 = vpop.permute.xlu0 %986 }
 0x578   :  { %v989_v56 = vmul.f32 %v2473_v25, %v987_v55 }
 0x57a   :  { %v2905_v57 = vpack.c.bf16 %v989_v56, %v989_v56 }
 0x57c   :  { %1058 = vrot.lane.b32.xlu0 %v2905_v57, %s2686_s0 }
 0x580   :  { %v1011_v58 = vpop.permute.xlu1 %1010 }
 0x581   :  { %v1013_v59 = vmul.f32 %v2475_v44, %v1011_v58 }
 0x583   :  { %v2909_v60 = vpack.c.bf16 %v1013_v59, %v1013_v59  ;;  %v1290_v59 = vld [vmem:[#allocation2 + $0x9] sm:$0x1] }
 0x585   :  { %1106 = vrot.lane.b32.xlu1 %v2909_v60, %s2686_s0 }
 0x5ee   :  { %v1059_v61 = vpop.permute.xlu0 %1058 }
 0x5ef   :  { %2337 = vmatmul.mubr.msk.bf16.vlgmr.msra.gmra.mrb[24].mxu0 %vm679_vm2, %v1059_v61  ;;  %v1291_v61 = vunpack.c.l.bf16 %v1290_v59 }
 0x5f0   :  { %2349 = vmatpush3.bf16.msra.mxu0 %v2803_v12  ;;  %2352 = vmatprep.mubr.msk.bf16.mxu0 %vm2684_vm1, %v2683_v9 }
 0x5f1   :  { %2350 = vmatprep.subr.bf16.mxu0 %v2683_v9 }
 0x5f4   :  { %2351 = vmatpush3.bf16.msra.mxu0 %v2810_v14 }
 0x5f5   :  { %2364 = vmatprep.subr.bf16.mxu0 %v2683_v9 }
 0x5f7   :  { %v1107_v62 = vpop.permute.xlu1 %1106 }
 0x5f8   :  { %2345 = vmatmul.mubr.msk.bf16.vlgmr.msra.gmra.mrb[24].mxu1 %vm679_vm2, %v1107_v62 }
 0x5f9   :  { %2357 = vmatpush3.bf16.msra.mxu1 %v2805_v13  ;;  %2360 = vmatprep.mubr.msk.bf16.mxu1 %vm2684_vm1, %v2683_v9 }
 0x5fa   :  { %2358 = vmatprep.subr.bf16.mxu1 %v2683_v9 }
 0x5fd   :  { %2359 = vmatpush3.bf16.msra.mxu1 %v2816_v15 }
 0x5fe   :  { %2372 = vmatprep.subr.bf16.mxu1 %v2683_v9 }
 0x6c2   :  { %v1097_v1 = vpop.f32.mrb[24].mxu0 }
 0x6c3   :  { %v1103_v2 = vadd.f32 %v1097_v1, %v1057_v0  ;;  %v2338_v3 = vpop.f32.mrb[25].mxu0 }
 0x6c4   :  { %v1100_v4 = vpop.f32.mrb[26].mxu0 }
 0x6c5   :  { %2480 = vtanh.f32 %v1103_v2  ;;  %v2339_v5 = vpop.f32.mrb[27].mxu0  ;;  %v2219_v22 = vmul.f32 -1.442695, %v1103_v2 }
 0x6cb   :  { %v1145_v10 = vpop.f32.mrb[24].mxu1 }
 0x6cc   :  { %v1151_v16 = vadd.f32 %v1145_v10, %v1105_v8  ;;  %v2346_v17 = vpop.f32.mrb[25].mxu1 }
 0x6cd   :  { %v1148_v18 = vpop.f32.mrb[26].mxu1 }
 0x6ce   :  { %2482 = vtanh.f32 %v1151_v16  ;;  %v2347_v19 = vpop.f32.mrb[27].mxu1  ;;  %v2220_v24 = vmul.f32 -1.442695, %v1151_v16 }
 0x6cf   :  { %v2481_v20 = vpop.eup %2480  ;;  %2484 = vpow2.f32 %v2219_v22 }
 0x6d0   :  { %1161 = vrot.lane.b32.xlu0 %v2481_v20, %s2675_s28  ;;  %2486 = vpow2.f32 %v2220_v24 }
 0x6d8   :  { %v2483_v21 = vpop.eup %2482 }
 0x6d9   :  { %1185 = vrot.lane.b32.xlu1 %v2483_v21, %s2675_s28  ;;  %v2485_v26 = vpop.eup %2484 }
 0x6da   :  { %v1155_v27 = vadd.f32 1.0, %v2485_v26  ;;  %v2487_v28 = vpop.eup %2486 }
 0x6db   :  { %v1179_v29 = vadd.f32 1.0, %v2487_v28 }
 0x6dc   :  { %2488 = vrcp.f32 %v1155_v27 }
 0x6dd   :  { %2490 = vrcp.f32 %v1179_v29 }
 0x6e6   :  { %v2489_v30 = vpop.eup %2488 }
 0x6e7   :  { %v2491_v34 = vpop.eup %2490  ;;  %v1159_v23 = vmul.f32 %v2489_v30, %v2896_v49 }
 0x6e8   :  { %v1183_v39 = vmul.f32 %v2491_v34, %v2900_v52  ;;  %v1243_v52 = vunpack.c.l.bf16 %v1242_v51 }
 0x742   :  { %v1162_v31 = vpop.permute.xlu0 %1161 }
 0x743   :  { %v1164_v33 = vmul.f32 %v2489_v30, %v1162_v31 }
 0x745   :  { %1166 = vrot.lane.b32.xlu0 %v1164_v33, %s2686_s0 }
 0x74b   :  { %v1186_v35 = vpop.permute.xlu1 %1185 }
 0x74c   :  { %v1188_v36 = vmul.f32 %v2491_v34, %v1186_v35 }
 0x74e   :  { %1190 = vrot.lane.b32.xlu1 %v1188_v36, %s2686_s0 }
 0x7b7   :  { %v1167_v37 = vpop.permute.xlu0 %1166 }
 0x7b8   :  { %v2932_v38 = vadd.f32 %v1167_v37, %v1159_v23 }
 0x7ba   :  { %2492 = vtanh.f32 %v2932_v38 }
 0x7c0   :  { %v1191_v40 = vpop.permute.xlu1 %1190 }
 0x7c1   :  { %v2936_v41 = vadd.f32 %v1191_v40, %v1183_v39 }
 0x7c3   :  { %2494 = vtanh.f32 %v2936_v41 }
 0x7c4   :  { %v2493_v25 = vpop.eup %2492 }
 0x7c5   :  { %1172 = vrot.lane.b32.xlu0 %v2493_v25, %s2675_s28  ;;  %v1428_v25 = vld [vmem:[#allocation2 + $0x8] sm:$0x1] }
 0x7cd   :  { %v2495_v42 = vpop.eup %2494 }
 0x7ce   :  { %1196 = vrot.lane.b32.xlu1 %v2495_v42, %s2675_s28  ;;  %v1429_v42 = vunpack.c.l.bf16 %v1428_v25 }
 0x837   :  { %v1173_v43 = vpop.permute.xlu0 %1172 }
 0x838   :  { %v1175_v44 = vmul.f32 %v2489_v30, %v1173_v43 }
 0x83a   :  { %v2941_v45 = vpack.c.bf16 %v1175_v44, %v1175_v44 }
 0x83c   :  { %1244 = vrot.lane.b32.xlu0 %v2941_v45, %s2686_s0 }
 0x840   :  { %v1197_v46 = vpop.permute.xlu1 %1196 }
 0x841   :  { %v1199_v47 = vmul.f32 %v2491_v34, %v1197_v46 }
 0x843   :  { %v2945_v48 = vpack.c.bf16 %v1199_v47, %v1199_v47 }
 0x845   :  { %1292 = vrot.lane.b32.xlu1 %v2945_v48, %s2686_s0 }
 0x8ae   :  { %v1245_v49 = vpop.permute.xlu0 %1244 }
 0x8af   :  { %2353 = vmatmul.mubr.msk.bf16.vlgmr.msra.gmra.mrb[28].mxu0 %vm679_vm2, %v1245_v49 }
 0x8b0   :  { %2365 = vmatpush3.bf16.msra.mxu0 %v2803_v12  ;;  %2368 = vmatprep.mubr.msk.bf16.mxu0 %vm2684_vm1, %v2683_v9 }
 0x8b1   :  { %2366 = vmatprep.subr.bf16.mxu0 %v2683_v9 }
 0x8b4   :  { %2367 = vmatpush3.bf16.msra.mxu0 %v2810_v14 }
 0x8b5   :  { %2380 = vmatprep.subr.bf16.mxu0 %v2683_v9 }
 0x8b7   :  { %v1293_v50 = vpop.permute.xlu1 %1292 }
 0x8b8   :  { %2361 = vmatmul.mubr.msk.bf16.vlgmr.msra.gmra.mrb[28].mxu1 %vm679_vm2, %v1293_v50  ;;  %v1476_v50 = vld [vmem:[#allocation2 + $0x7] sm:$0x1] }
 0x8b9   :  { %2373 = vmatpush3.bf16.msra.mxu1 %v2805_v13  ;;  %2376 = vmatprep.mubr.msk.bf16.mxu1 %vm2684_vm1, %v2683_v9  ;;  %v1477_v51 = vunpack.c.l.bf16 %v1476_v50 }
 0x8ba   :  { %2374 = vmatprep.subr.bf16.mxu1 %v2683_v9 }
 0x8bd   :  { %2375 = vmatpush3.bf16.msra.mxu1 %v2816_v15 }
 0x8be   :  { %2388 = vmatprep.subr.bf16.mxu1 %v2683_v9 }
 0x982   :  { %v1283_v53 = vpop.f32.mrb[28].mxu0 }
 0x983   :  { %v1289_v54 = vadd.f32 %v1283_v53, %v1243_v52  ;;  %v2354_v55 = vpop.f32.mrb[29].mxu0 }
 0x984   :  { %v1286_v56 = vpop.f32.mrb[30].mxu0 }
 0x985   :  { %2496 = vtanh.f32 %v1289_v54  ;;  %v2355_v58 = vpop.f32.mrb[31].mxu0  ;;  %v2225_v5 = vmul.f32 -1.442695, %v1289_v54 }
 0x98b   :  { %v1331_v62 = vpop.f32.mrb[28].mxu1 }
 0x98c   :  { %v1337_v63 = vadd.f32 %v1331_v62, %v1291_v61  ;;  %v2362_v0 = vpop.f32.mrb[29].mxu1 }
 0x98d   :  { %v1334_v1 = vpop.f32.mrb[30].mxu1 }
 0x98e   :  { %2498 = vtanh.f32 %v1337_v63  ;;  %v2363_v2 = vpop.f32.mrb[31].mxu1  ;;  %v2226_v6 = vmul.f32 -1.442695, %v1337_v63 }
 0x98f   :  { %v2497_v3 = vpop.eup %2496  ;;  %2500 = vpow2.f32 %v2225_v5 }
 0x990   :  { %1347 = vrot.lane.b32.xlu0 %v2497_v3, %s2675_s28  ;;  %2502 = vpow2.f32 %v2226_v6 }
 0x998   :  { %v2499_v4 = vpop.eup %2498 }
 0x999   :  { %1371 = vrot.lane.b32.xlu1 %v2499_v4, %s2675_s28  ;;  %v2501_v8 = vpop.eup %2500 }
 0x99a   :  { %v1341_v10 = vadd.f32 1.0, %v2501_v8  ;;  %v2503_v16 = vpop.eup %2502 }
 0x99b   :  { %v1365_v17 = vadd.f32 1.0, %v2503_v16 }
 0x99c   :  { %2504 = vrcp.f32 %v1341_v10 }
 0x99d   :  { %2506 = vrcp.f32 %v1365_v17 }
 0x9a6   :  { %v2505_v18 = vpop.eup %2504 }
 0x9a7   :  { %v2507_v21 = vpop.eup %2506  ;;  %v1345_v26 = vmul.f32 %v2505_v18, %v2932_v38 }
 0x9a8   :  { %v1369_v29 = vmul.f32 %v2507_v21, %v2936_v41 }
 0xa02   :  { %v1348_v19 = vpop.permute.xlu0 %1347 }
 0xa03   :  { %v1350_v20 = vmul.f32 %v2505_v18, %v1348_v19 }
 0xa05   :  { %1352 = vrot.lane.b32.xlu0 %v1350_v20, %s2686_s0 }
 0xa0b   :  { %v1372_v22 = vpop.permute.xlu1 %1371 }
 0xa0c   :  { %v1374_v24 = vmul.f32 %v2507_v21, %v1372_v22 }
 0xa0e   :  { %1376 = vrot.lane.b32.xlu1 %v1374_v24, %s2686_s0 }
 0xa77   :  { %v1353_v27 = vpop.permute.xlu0 %1352 }
 0xa78   :  { %v2968_v28 = vadd.f32 %v1353_v27, %v1345_v26 }
 0xa7a   :  { %2508 = vtanh.f32 %v2968_v28 }
 0xa80   :  { %v1377_v30 = vpop.permute.xlu1 %1376 }
 0xa81   :  { %v2972_v31 = vadd.f32 %v1377_v30, %v1369_v29 }
 0xa83   :  { %2510 = vtanh.f32 %v2972_v31 }
 0xa84   :  { %v2509_v33 = vpop.eup %2508 }
 0xa85   :  { %1358 = vrot.lane.b32.xlu0 %v2509_v33, %s2675_s28 }
 0xa8d   :  { %v2511_v34 = vpop.eup %2510 }
 0xa8e   :  { %1382 = vrot.lane.b32.xlu1 %v2511_v34, %s2675_s28 }
 0xaf7   :  { %v1359_v35 = vpop.permute.xlu0 %1358 }
 0xaf8   :  { %v1361_v36 = vmul.f32 %v2505_v18, %v1359_v35 }
 0xafa   :  { %v2977_v23 = vpack.c.bf16 %v1361_v36, %v1361_v36 }
 0xafc   :  { %1430 = vrot.lane.b32.xlu0 %v2977_v23, %s2686_s0 }
 0xb00   :  { %v1383_v37 = vpop.permute.xlu1 %1382 }
 0xb01   :  { %v1385_v38 = vmul.f32 %v2507_v21, %v1383_v37 }
 0xb03   :  { %v2981_v39 = vpack.c.bf16 %v1385_v38, %v1385_v38 }
 0xb05   :  { %1478 = vrot.lane.b32.xlu1 %v2981_v39, %s2686_s0 }
 0xb6e   :  { %v1431_v40 = vpop.permute.xlu0 %1430 }
 0xb6f   :  { %2369 = vmatmul.mubr.msk.bf16.vlgmr.msra.gmra.mrb[32].mxu0 %vm679_vm2, %v1431_v40 }
 0xb70   :  { %2381 = vmatpush3.bf16.msra.mxu0 %v2803_v12  ;;  %2384 = vmatprep.mubr.msk.bf16.mxu0 %vm2684_vm1, %v2683_v9 }
 0xb71   :  { %2382 = vmatprep.subr.bf16.mxu0 %v2683_v9 }
 0xb74   :  { %2383 = vmatpush3.bf16.msra.mxu0 %v2810_v14 }
 0xb75   :  { %2396 = vmatprep.subr.bf16.mxu0 %v2683_v9 }
 0xb77   :  { %v1479_v41 = vpop.permute.xlu1 %1478 }
 0xb78   :  { %2377 = vmatmul.mubr.msk.bf16.vlgmr.msra.gmra.mrb[32].mxu1 %vm679_vm2, %v1479_v41  ;;  %v1660_v41 = vld [vmem:[#allocation2 + $0x5] sm:$0x1] }
 0xb79   :  { %2389 = vmatpush3.bf16.msra.mxu1 %v2805_v13  ;;  %2392 = vmatprep.mubr.msk.bf16.mxu1 %vm2684_vm1, %v2683_v9  ;;  %v1661_v25 = vunpack.c.l.bf16 %v1660_v41 }
 0xb7a   :  { %2390 = vmatprep.subr.bf16.mxu1 %v2683_v9 }
 0xb7d   :  { %2391 = vmatpush3.bf16.msra.mxu1 %v2816_v15 }
 0xb7e   :  { %2404 = vmatprep.subr.bf16.mxu1 %v2683_v9 }
 0xc42   :  { %v1469_v43 = vpop.f32.mrb[32].mxu0 }
 0xc43   :  { %v1475_v44 = vadd.f32 %v1469_v43, %v1429_v42  ;;  %v2370_v46 = vpop.f32.mrb[33].mxu0 }
 0xc44   :  { %v1472_v47 = vpop.f32.mrb[34].mxu0 }
 0xc45   :  { %2512 = vtanh.f32 %v1475_v44  ;;  %v2371_v49 = vpop.f32.mrb[35].mxu0  ;;  %v2231_v61 = vmul.f32 -1.442695, %v1475_v44 }
 0xc4b   :  { %v1517_v52 = vpop.f32.mrb[32].mxu1 }
 0xc4c   :  { %v1523_v53 = vadd.f32 %v1517_v52, %v1477_v51  ;;  %v2378_v54 = vpop.f32.mrb[33].mxu1 }
 0xc4d   :  { %v1520_v55 = vpop.f32.mrb[34].mxu1 }
 0xc4e   :  { %2514 = vtanh.f32 %v1523_v53  ;;  %v2379_v56 = vpop.f32.mrb[35].mxu1  ;;  %v2232_v62 = vmul.f32 -1.442695, %v1523_v53 }
 0xc4f   :  { %v2513_v58 = vpop.eup %2512  ;;  %2516 = vpow2.f32 %v2231_v61 }
 0xc50   :  { %1533 = vrot.lane.b32.xlu0 %v2513_v58, %s2675_s28  ;;  %2518 = vpow2.f32 %v2232_v62 }
 0xc58   :  { %v2515_v59 = vpop.eup %2514 }
 0xc59   :  { %1557 = vrot.lane.b32.xlu1 %v2515_v59, %s2675_s28  ;;  %v2517_v63 = vpop.eup %2516 }
 0xc5a   :  { %v1527_v0 = vadd.f32 1.0, %v2517_v63  ;;  %v2519_v1 = vpop.eup %2518 }
 0xc5b   :  { %v1551_v2 = vadd.f32 1.0, %v2519_v1 }
 0xc5c   :  { %2520 = vrcp.f32 %v1527_v0 }
 0xc5d   :  { %2522 = vrcp.f32 %v1551_v2 }
 0xc66   :  { %v2521_v3 = vpop.eup %2520 }
 0xc67   :  { %v2523_v6 = vpop.eup %2522  ;;  %v1531_v16 = vmul.f32 %v2521_v3, %v2968_v28 }
 0xc68   :  { %v1555_v19 = vmul.f32 %v2523_v6, %v2972_v31 }
 0xcc2   :  { %v1534_v4 = vpop.permute.xlu0 %1533 }
 0xcc3   :  { %v1536_v5 = vmul.f32 %v2521_v3, %v1534_v4 }
 0xcc5   :  { %1538 = vrot.lane.b32.xlu0 %v1536_v5, %s2686_s0 }
 0xccb   :  { %v1558_v8 = vpop.permute.xlu1 %1557 }
 0xccc   :  { %v1560_v10 = vmul.f32 %v2523_v6, %v1558_v8 }
 0xcce   :  { %1562 = vrot.lane.b32.xlu1 %v1560_v10, %s2686_s0 }
 0xd37   :  { %v1539_v17 = vpop.permute.xlu0 %1538 }
 0xd38   :  { %v3004_v18 = vadd.f32 %v1539_v17, %v1531_v16 }
 0xd3a   :  { %2524 = vtanh.f32 %v3004_v18 }
 0xd40   :  { %v1563_v20 = vpop.permute.xlu1 %1562 }
 0xd41   :  { %v3008_v21 = vadd.f32 %v1563_v20, %v1555_v19 }
 0xd43   :  { %2526 = vtanh.f32 %v3008_v21 }
 0xd44   :  { %v2525_v22 = vpop.eup %2524 }
 0xd45   :  { %1544 = vrot.lane.b32.xlu0 %v2525_v22, %s2675_s28  ;;  %v2577_v22 = vld [vmem:[#allocation5 + $0x8] sm:$0xff]  }
 0xd4d   :  { %v2527_v24 = vpop.eup %2526 }
 0xd4e   :  { %1568 = vrot.lane.b32.xlu1 %v2527_v24, %s2675_s28 }
 0xdb7   :  { %v1545_v26 = vpop.permute.xlu0 %1544 }
 0xdb8   :  { %v1547_v27 = vmul.f32 %v2521_v3, %v1545_v26  ;;  %v2578_v26 = vld [vmem:[#allocation7] sm:$0xff]  }
 0xdba   :  { %v3013_v28 = vpack.c.bf16 %v1547_v27, %v1547_v27  ;;  %v2579_v27 = vld [vmem:[#allocation7 + $0x8] sm:$0xff]  }
 0xdbc   :  { %1614 = vrot.lane.b32.xlu0 %v3013_v28, %s2686_s0 }
 0xdc0   :  { %v1569_v29 = vpop.permute.xlu1 %1568 }
 0xdc1   :  { %v1571_v30 = vmul.f32 %v2523_v6, %v1569_v29  ;;  %v1796_v29 = vld [vmem:[#allocation2 + $0xc] sm:$0x1] }
 0xdc3   :  { %v3017_v31 = vpack.c.bf16 %v1571_v30, %v1571_v30  ;;  %v1797_v30 = vunpack.c.l.bf16 %v1796_v29  ;;  %v2028_v29 = vld [vmem:[#allocation2 + $0x1] sm:$0x1] }
 0xdc5   :  { %1662 = vrot.lane.b32.xlu1 %v3017_v31, %s2686_s0 }
 0xe2e   :  { %v1615_v33 = vpop.permute.xlu0 %1614 }
 0xe2f   :  { %2385 = vmatmul.mubr.msk.bf16.vlgmr.msra.gmra.mrb[36].mxu0 %vm679_vm2, %v1615_v33 }
 0xe30   :  { %2397 = vmatpush3.bf16.msra.mxu0 %v2803_v12  ;;  %2400 = vmatprep.mubr.msk.bf16.mxu0 %vm2684_vm1, %v2683_v9  ;;  %v1612_v12 = vld [vmem:[#allocation2 + $0xa] sm:$0x1] }
 0xe31   :  { %2398 = vmatprep.subr.bf16.mxu0 %v2683_v9  ;;  %v1613_v35 = vunpack.c.l.bf16 %v1612_v12 }
 0xe34   :  { %2399 = vmatpush3.bf16.msra.mxu0 %v2810_v14 }
 0xe35   :  { %2412 = vmatprep.subr.bf16.mxu0 %v2683_v9 }
 0xe37   :  { %v1663_v34 = vpop.permute.xlu1 %1662 }
 0xe38   :  { %2393 = vmatmul.mubr.msk.bf16.vlgmr.msra.gmra.mrb[36].mxu1 %vm679_vm2, %v1663_v34 }
 0xe39   :  { %2405 = vmatpush3.bf16.msra.mxu1 %v2805_v13  ;;  %2408 = vmatprep.mubr.msk.bf16.mxu1 %vm2684_vm1, %v2683_v9 }
 0xe3a   :  { %2406 = vmatprep.subr.bf16.mxu1 %v2683_v9 }
 0xe3d   :  { %2407 = vmatpush3.bf16.msra.mxu1 %v2816_v15 }
 0xe3e   :  { %2420 = vmatprep.subr.bf16.mxu1 %v2683_v9 }
 0xf02   :  { %v1653_v36 = vpop.f32.mrb[36].mxu0 }
 0xf03   :  { %v1659_v14 = vadd.f32 %v1653_v36, %v1613_v35  ;;  %v2386_v37 = vpop.f32.mrb[37].mxu0 }
 0xf04   :  { %v1656_v38 = vpop.f32.mrb[38].mxu0 }
 0xf05   :  { %2528 = vtanh.f32 %v1659_v14  ;;  %v2387_v40 = vpop.f32.mrb[39].mxu0  ;;  %v2237_v49 = vmul.f32 -1.442695, %v1659_v14  ;;  %v1844_v14 = vld [vmem:[#allocation2 + $0x3] sm:$0x1] }
 0xf06   :  { %v1845_v37 = vunpack.c.l.bf16 %v1844_v14 }
 0xf0b   :  { %v1701_v13 = vpop.f32.mrb[36].mxu1 }
 0xf0c   :  { %v1707_v42 = vadd.f32 %v1701_v13, %v1661_v25  ;;  %v2394_v43 = vpop.f32.mrb[37].mxu1 }
 0xf0d   :  { %v1704_v44 = vpop.f32.mrb[38].mxu1 }
 0xf0e   :  { %2530 = vtanh.f32 %v1707_v42  ;;  %v2395_v46 = vpop.f32.mrb[39].mxu1  ;;  %v2238_v50 = vmul.f32 -1.442695, %v1707_v42 }
 0xf0f   :  { %v2529_v47 = vpop.eup %2528  ;;  %2532 = vpow2.f32 %v2237_v49 }
 0xf10   :  { %1717 = vrot.lane.b32.xlu0 %v2529_v47, %s2675_s28  ;;  %2534 = vpow2.f32 %v2238_v50 }
 0xf18   :  { %v2531_v15 = vpop.eup %2530 }
 0xf19   :  { %1741 = vrot.lane.b32.xlu1 %v2531_v15, %s2675_s28  ;;  %v2533_v51 = vpop.eup %2532 }
 0xf1a   :  { %v1711_v52 = vadd.f32 1.0, %v2533_v51  ;;  %v2535_v53 = vpop.eup %2534 }
 0xf1b   :  { %v1735_v54 = vadd.f32 1.0, %v2535_v53 }
 0xf1c   :  { %2536 = vrcp.f32 %v1711_v52 }
 0xf1d   :  { %2538 = vrcp.f32 %v1735_v54 }
 0xf26   :  { %v2537_v55 = vpop.eup %2536 }
 0xf27   :  { %v2539_v59 = vpop.eup %2538  ;;  %v1715_v63 = vmul.f32 %v2537_v55, %v3004_v18 }
 0xf28   :  { %v1739_v2 = vmul.f32 %v2539_v59, %v3008_v21  ;;  %v2576_v21 = vld [vmem:[#allocation5] sm:$0xff]  }
 0xf82   :  { %v1718_v56 = vpop.permute.xlu0 %1717 }
 0xf83   :  { %v1720_v58 = vmul.f32 %v2537_v55, %v1718_v56 }
 0xf85   :  { %1722 = vrot.lane.b32.xlu0 %v1720_v58, %s2686_s0 }
 0xf8b   :  { %v1742_v61 = vpop.permute.xlu1 %1741 }
 0xf8c   :  { %v1744_v62 = vmul.f32 %v2539_v59, %v1742_v61 }
 0xf8e   :  { %1746 = vrot.lane.b32.xlu1 %v1744_v62, %s2686_s0 }
 0xff7   :  { %v1723_v0 = vpop.permute.xlu0 %1722 }
 0xff8   :  { %v3040_v1 = vadd.f32 %v1723_v0, %v1715_v63 }
 0xffa   :  { %2540 = vtanh.f32 %v3040_v1 }
0x1000   :  { %v1747_v3 = vpop.permute.xlu1 %1746 }
0x1001   :  { %v3044_v4 = vadd.f32 %v1747_v3, %v1739_v2 }
0x1003   :  { %2542 = vtanh.f32 %v3044_v4 }
0x1004   :  { %v2541_v5 = vpop.eup %2540 }
0x1005   :  { %1728 = vrot.lane.b32.xlu0 %v2541_v5, %s2675_s28 }
0x100d   :  { %v2543_v6 = vpop.eup %2542 }
0x100e   :  { %1752 = vrot.lane.b32.xlu1 %v2543_v6, %s2675_s28 }
0x1077   :  { %v1729_v8 = vpop.permute.xlu0 %1728 }
0x1078   :  { %v1731_v10 = vmul.f32 %v2537_v55, %v1729_v8 }
0x107a   :  { %v3049_v16 = vpack.c.bf16 %v1731_v10, %v1731_v10 }
0x107c   :  { %1798 = vrot.lane.b32.xlu0 %v3049_v16, %s2686_s0 }
0x1080   :  { %v1753_v17 = vpop.permute.xlu1 %1752 }
0x1081   :  { %v1755_v18 = vmul.f32 %v2539_v59, %v1753_v17 }
0x1083   :  { %v3053_v19 = vpack.c.bf16 %v1755_v18, %v1755_v18  ;;  %v1980_v18 = vld [vmem:[#allocation2 + $0xe] sm:$0x1] }
0x1085   :  { %1846 = vrot.lane.b32.xlu1 %v3053_v19, %s2686_s0 }
0x10ee   :  { %v1799_v20 = vpop.permute.xlu0 %1798 }
0x10ef   :  { %2401 = vmatmul.mubr.msk.bf16.vlgmr.msra.gmra.mrb[40].mxu0 %vm679_vm2, %v1799_v20  ;;  %v1981_v20 = vunpack.c.l.bf16 %v1980_v18  ;;  %v1784_v18 = vrot.slane %v3053_v19, %v2839_v32 }
0x10f0   :  { %2413 = vmatpush3.bf16.msra.mxu0 %v2576_v21  ;;  %2416 = vmatprep.mubr.msk.bf16.mxu0 %vm2684_vm1, %v2683_v9 }
0x10f1   :  { %2414 = vmatprep.subr.bf16.mxu0 %v2683_v9 }
0x10f4   :  { %2415 = vmatpush3.bf16.msra.mxu0 %v2577_v22 }
0x10f7   :  { %v1847_v24 = vpop.permute.xlu1 %1846 }
0x10f8   :  { %2409 = vmatmul.mubr.msk.bf16.vlgmr.msra.gmra.mrb[40].mxu1 %vm679_vm2, %v1847_v24 }
0x10f9   :  { %2421 = vmatpush3.bf16.msra.mxu1 %v2578_v26  ;;  %2424 = vmatprep.mubr.msk.bf16.mxu1 %vm2684_vm1, %v2683_v9 }
0x10fa   :  { %2422 = vmatprep.subr.bf16.mxu1 %v2683_v9 }
0x10fd   :  { %2423 = vmatpush3.bf16.msra.mxu1 %v2579_v27 }
0x11c2   :  { %v1837_v33 = vpop.f32.mrb[40].mxu0 }
0x11c3   :  { %v1843_v34 = vadd.f32 %v1837_v33, %v1797_v30  ;;  %v2402_v12 = vpop.f32.mrb[41].mxu0  ;;  %v2029_v30 = vunpack.c.l.bf16 %v2028_v29 }
0x11c4   :  { %v1840_v35 = vpop.f32.mrb[42].mxu0 }
0x11c5   :  { %2544 = vtanh.f32 %v1843_v34  ;;  %v2403_v36 = vpop.f32.mrb[43].mxu0  ;;  %v2243_v43 = vmul.f32 -1.442695, %v1843_v34 }
0x11cb   :  { %v1885_v38 = vpop.f32.mrb[40].mxu1 }
0x11cc   :  { %v1891_v40 = vadd.f32 %v1885_v38, %v1845_v37  ;;  %v2410_v41 = vpop.f32.mrb[41].mxu1 }
0x11cd   :  { %v1888_v25 = vpop.f32.mrb[42].mxu1 }
0x11ce   :  { %2546 = vtanh.f32 %v1891_v40  ;;  %v2411_v13 = vpop.f32.mrb[43].mxu1  ;;  %v2244_v44 = vmul.f32 -1.442695, %v1891_v40 }
0x11cf   :  { %v2545_v42 = vpop.eup %2544  ;;  %2548 = vpow2.f32 %v2243_v43 }
0x11d0   :  { %1901 = vrot.lane.b32.xlu0 %v2545_v42, %s2675_s28  ;;  %2550 = vpow2.f32 %v2244_v44 }
0x11d8   :  { %v2547_v9 = vpop.eup %2546 }
0x11d9   :  { %1925 = vrot.lane.b32.xlu1 %v2547_v9, %s2675_s28  ;;  %v2549_v46 = vpop.eup %2548 }
0x11da   :  { %v1895_v47 = vadd.f32 1.0, %v2549_v46  ;;  %v2551_v15 = vpop.eup %2550 }
0x11db   :  { %v1919_v49 = vadd.f32 1.0, %v2551_v15 }
0x11dc   :  { %2552 = vrcp.f32 %v1895_v47 }
0x11dd   :  { %2554 = vrcp.f32 %v1919_v49 }
0x11e6   :  { %v2553_v50 = vpop.eup %2552 }
0x11e7   :  { %v2555_v53 = vpop.eup %2554  ;;  %v1899_v56 = vmul.f32 %v2553_v50, %v3040_v1 }
0x11e8   :  { %v1923_v61 = vmul.f32 %v2555_v53, %v3044_v4 }
0x1242   :  { %v1902_v51 = vpop.permute.xlu0 %1901 }
0x1243   :  { %v1904_v52 = vmul.f32 %v2553_v50, %v1902_v51 }
0x1245   :  { %1906 = vrot.lane.b32.xlu0 %v1904_v52, %s2686_s0 }
0x124b   :  { %v1926_v54 = vpop.permute.xlu1 %1925 }
0x124c   :  { %v1928_v55 = vmul.f32 %v2555_v53, %v1926_v54 }
0x124e   :  { %1930 = vrot.lane.b32.xlu1 %v1928_v55, %s2686_s0  ;;  %v835_v55 = vrot.slane %v2869_v7, %v2839_v32 }
0x12b7   :  { %v1907_v58 = vpop.permute.xlu0 %1906 }
0x12b8   :  { %v1909_v59 = vadd.f32 %v1907_v58, %v1899_v56  ;;  %v1022_v58 = vrot.slane %v2905_v57, %v2839_v32  ;;  %v1394_v57 = vrot.slane %v2977_v23, %v2839_v32 }
0x12ba   :  { %2556 = vtanh.f32 %v1909_v59 }
0x12c0   :  { %v1931_v62 = vpop.permute.xlu1 %1930 }
0x12c1   :  { %v1933_v63 = vadd.f32 %v1931_v62, %v1923_v61  ;;  %v842_v61 = vrot.slane %v835_v55, %v2839_v32  ;;  %v1029_v62 = vrot.slane %v1022_v58, %v2839_v32 }
0x12c3   :  { %2558 = vtanh.f32 %v1933_v63 }
0x12c4   :  { %v2557_v0 = vpop.eup %2556 }
0x12c5   :  { %1912 = vrot.lane.b32.xlu0 %v2557_v0, %s2675_s28 }
0x12cd   :  { %v2559_v2 = vpop.eup %2558 }
0x12ce   :  { %1936 = vrot.lane.b32.xlu1 %v2559_v2, %s2675_s28  ;;  %v1043_v2 = vrot.slane %v2909_v60, %v2839_v32  ;;  %v1764_v60 = vrot.slane %v3049_v16, %v2839_v32 }
0x12d0   :  { %v1050_v23 = vrot.slane %v1043_v2, %v2839_v32 }
0x1337   :  { %v1913_v3 = vpop.permute.xlu0 %1912 }
0x1338   :  { %v1915_v5 = vmul.f32 %v2553_v50, %v1913_v3  ;;  %v1401_v3 = vrot.slane %v1394_v57, %v2839_v32 }
0x133a   :  { %v3073_v6 = vpack.c.bf16 %v1915_v5, %v1915_v5  ;;  %v1229_v5 = vrot.slane %v2945_v48, %v2839_v32 }
0x133c   :  { %1982 = vrot.lane.b32.xlu0 %v3073_v6, %s2686_s0  ;;  %v1948_v48 = vrot.slane %v3073_v6, %v2839_v32  ;;  %v1791_v6 = vrot.slane %v1784_v18, %v2839_v32 }
0x1340   :  { %v1937_v1 = vpop.permute.xlu1 %1936 }
0x1341   :  { %v1939_v8 = vmul.f32 %v2555_v53, %v1937_v1 }
0x1343   :  { %v3077_v10 = vpack.c.bf16 %v1939_v8, %v1939_v8  ;;  %v1415_v8 = vrot.slane %v2981_v39, %v2839_v32  ;;  %v1955_v39 = vrot.slane %v1948_v48, %v2839_v32 }
0x1345   :  { %2030 = vrot.lane.b32.xlu1 %v3077_v10, %s2686_s0  ;;  %v1422_v16 = vrot.slane %v1415_v8, %v2839_v32 }
0x13ae   :  { %v1983_v4 = vpop.permute.xlu0 %1982 }
0x13af   :  { %2417 = vmatmul.mubr.msk.bf16.vlgmr.msra.gmra.mrb[44].mxu0 %vm679_vm2, %v1983_v4  ;;  %v1771_v4 = vrot.slane %v1764_v60, %v2839_v32 }
0x13b7   :  { %v2031_v17 = vpop.permute.xlu1 %2030 }
0x13b8   :  { %2425 = vmatmul.mubr.msk.bf16.vlgmr.msra.gmra.mrb[44].mxu1 %vm679_vm2, %v2031_v17  ;;  %v1600_v17 = vrot.slane %v3017_v31, %v2839_v32  ;;  %v1968_v31 = vrot.slane %v3077_v10, %v2839_v32 }
0x1482   :  { %v2021_v21 = vpop.f32.mrb[44].mxu0 }
0x1483   :  { %v2027_v22 = vadd.f32 %v2021_v21, %v1981_v20  ;;  %v2418_v24 = vpop.f32.mrb[45].mxu0  ;;  %v1607_v20 = vrot.slane %v1600_v17, %v2839_v32  ;;  %v1975_v21 = vrot.slane %v1968_v31, %v2839_v32 }
0x1484   :  { %v2024_v26 = vpop.f32.mrb[46].mxu0 }
0x1485   :  { %2560 = vtanh.f32 %v2027_v22  ;;  %v2419_v27 = vpop.f32.mrb[47].mxu0  ;;  %v2249_v38 = vmul.f32 -1.442695, %v2027_v22 }
0x148b   :  { %v2069_v33 = vpop.f32.mrb[44].mxu1 }
0x148c   :  { %v2075_v34 = vadd.f32 %v2069_v33, %v2029_v30  ;;  %v2426_v12 = vpop.f32.mrb[45].mxu1 }
0x148d   :  { %v2072_v35 = vpop.f32.mrb[46].mxu1 }
0x148e   :  { %2562 = vtanh.f32 %v2075_v34  ;;  %v2427_v36 = vpop.f32.mrb[47].mxu1  ;;  %v2250_v40 = vmul.f32 -1.442695, %v2075_v34 }
0x148f   :  { %v2561_v14 = vpop.eup %2560  ;;  %2564 = vpow2.f32 %v2249_v38 }
0x1490   :  { %2085 = vrot.lane.b32.xlu0 %v2561_v14, %s2675_s28  ;;  %2566 = vpow2.f32 %v2250_v40 }
0x1498   :  { %v2563_v37 = vpop.eup %2562 }
0x1499   :  { %2109 = vrot.lane.b32.xlu1 %v2563_v37, %s2675_s28  ;;  %v2565_v41 = vpop.eup %2564 }
0x149a   :  { %v2079_v25 = vadd.f32 1.0, %v2565_v41  ;;  %v2567_v13 = vpop.eup %2566 }
0x149b   :  { %v2103_v42 = vadd.f32 1.0, %v2567_v13 }
0x149c   :  { %2568 = vrcp.f32 %v2079_v25 }
0x149d   :  { %2570 = vrcp.f32 %v2103_v42 }
0x14a6   :  { %v3085_v9 = vpop.eup %2568 }
0x14a7   :  { %v3089_v46 = vpop.eup %2570  ;;  %v2083_v49 = vmul.f32 %v3085_v9, %v1909_v59  ;;  %v1208_v59 = vrot.slane %v2941_v45, %v2839_v32 }
0x14a8   :  { %v2107_v52 = vmul.f32 %v3089_v46, %v1933_v63  ;;  %v856_v63 = vrot.slane %v2873_v11, %v2839_v32  ;;  %v1580_v11 = vrot.slane %v3013_v28, %v2839_v32  ;;  %v1236_v28 = vrot.slane %v1229_v5, %v2839_v32 }
0x14a9   :  { %v1215_v0 = vrot.slane %v1208_v59, %v2839_v32 }
0x14aa   :  { %v863_v45 = vrot.slane %v856_v63, %v2839_v32  ;;  %v1587_v1 = vrot.slane %v1580_v11, %v2839_v32 }
0x1502   :  { %v2086_v43 = vpop.permute.xlu0 %2085 }
0x1503   :  { %v2088_v44 = vmul.f32 %v3085_v9, %v2086_v43 }
0x1505   :  { %2090 = vrot.lane.b32.xlu0 %v2088_v44, %s2686_s0 }
0x150b   :  { %v2110_v47 = vpop.permute.xlu1 %2109 }
0x150c   :  { %v2112_v15 = vmul.f32 %v3089_v46, %v2110_v47 }
0x150e   :  { %2114 = vrot.lane.b32.xlu1 %v2112_v15, %s2686_s0 }
0x1577   :  { %v2091_v50 = vpop.permute.xlu0 %2090 }
0x1578   :  { %v2093_v51 = vadd.f32 %v2091_v50, %v2083_v49 }
0x157a   :  { %2572 = vtanh.f32 %v2093_v51 }
0x1580   :  { %v2115_v53 = vpop.permute.xlu1 %2114 }
0x1581   :  { %v2117_v54 = vadd.f32 %v2115_v53, %v2107_v52 }
0x1583   :  { %2574 = vtanh.f32 %v2117_v54 }
0x1584   :  { %v2573_v56 = vpop.eup %2572 }
0x1585   :  { %2096 = vrot.lane.b32.xlu0 %v2573_v56, %s2675_s28 }
0x1589   :  { %843 = vrot.lane.b32.xlu0 %v842_v61, %s2686_s0 }
0x158d   :  { %v2575_v7 = vpop.eup %2574  ;;  %1030 = vrot.lane.b32.xlu0 %v1029_v62, %s2686_s0 }
0x158e   :  { %2120 = vrot.lane.b32.xlu1 %v2575_v7, %s2675_s28 }
0x1591   :  { %1216 = vrot.lane.b32.xlu0 %v1215_v0, %s2686_s0 }
0x1592   :  { %864 = vrot.lane.b32.xlu1 %v863_v45, %s2675_s28 }
0x1595   :  { %1402 = vrot.lane.b32.xlu0 %v1401_v3, %s2686_s0 }
0x1596   :  { %1051 = vrot.lane.b32.xlu1 %v1050_v23, %s2675_s28 }
0x1599   :  { %1588 = vrot.lane.b32.xlu0 %v1587_v1, %s2686_s0 }
0x159a   :  { %1237 = vrot.lane.b32.xlu1 %v1236_v28, %s2675_s28 }
0x159d   :  { %1772 = vrot.lane.b32.xlu0 %v1771_v4, %s2686_s0 }
0x159e   :  { %1423 = vrot.lane.b32.xlu1 %v1422_v16, %s2675_s28 }
0x15a1   :  { %1956 = vrot.lane.b32.xlu0 %v1955_v39, %s2686_s0 }
0x15a2   :  { %1608 = vrot.lane.b32.xlu1 %v1607_v20, %s2675_s28 }
0x15a6   :  { %1792 = vrot.lane.b32.xlu1 %v1791_v6, %s2675_s28 }
0x15aa   :  { %1976 = vrot.lane.b32.xlu1 %v1975_v21, %s2675_s28 }
0x15f7   :  { %v2097_v22 = vpop.permute.xlu0 %2096 }
0x15f8   :  { %v2099_v19 = vmul.f32 %v3085_v9, %v2097_v22 }
0x15fa   :  { %v2124_v24 = vpack.c.bf16 %v2099_v19, %v2099_v19 }
0x15fb   :  { %v844_v26 = vpop.permute.xlu0 %843 }
0x15fc   :  { %v2132_v27 = vrot.slane %v2124_v24, %v2839_v32  ;;  %847 = vst.msk [vmem:[%s3230_s5] sm:$0x1] %vm846_vm3, %v844_v26 }
0x15fe   :  { %v2139_v10 = vrot.slane %v2132_v27, %v2839_v32 }
0x15ff   :  { %v1031_v29 = vpop.permute.xlu0 %1030 }
0x1600   :  { %2215 = vst.msk [vmem:[%s3230_s5 + $0x1] sm:$0x1] %vm846_vm3, %v1031_v29  ;;  %v2121_v30 = vpop.permute.xlu1 %2120  ;;  %2140 = vrot.lane.b32.xlu0 %v2139_v10, %s2686_s0 }
0x1601   :  { %v2123_v33 = vmul.f32 %v3089_v46, %v2121_v30 }
0x1603   :  { %v2144_v34 = vpack.c.bf16 %v2123_v33, %v2123_v33  ;;  %v1217_v12 = vpop.permute.xlu0 %1216 }
0x1604   :  { %2221 = vst.msk [vmem:[%s3230_s5 + $0x2] sm:$0x1] %vm846_vm3, %v1217_v12  ;;  %v865_v35 = vpop.permute.xlu1 %864 }
0x1605   :  { %v2152_v36 = vrot.slane %v2144_v34, %v2839_v32  ;;  %2210 = vst.msk [vmem:[%s3230_s5 + $0x7] sm:$0x1] %vm868_vm4, %v865_v35 }
0x1607   :  { %v1403_v14 = vpop.permute.xlu0 %1402  ;;  %v2159_v37 = vrot.slane %v2152_v36, %v2839_v32 }
0x1608   :  { %2227 = vst.msk [vmem:[%s3230_s5 + $0x3] sm:$0x1] %vm846_vm3, %v1403_v14  ;;  %v1052_v38 = vpop.permute.xlu1 %1051 }
0x1609   :  { %2216 = vst.msk [vmem:[%s3230_s5 + $0x6] sm:$0x1] %vm868_vm4, %v1052_v38  ;;  %2160 = vrot.lane.b32.xlu1 %v2159_v37, %s2675_s28 }
0x160b   :  { %v1589_v40 = vpop.permute.xlu0 %1588 }
0x160c   :  { %v1238_v41 = vpop.permute.xlu1 %1237 }
0x160d   :  { %2222 = vst.msk [vmem:[%s3230_s5 + $0x5] sm:$0x1] %vm868_vm4, %v1238_v41 }
0x160f   :  { %v1773_v32 = vpop.permute.xlu0 %1772 }
0x1610   :  { %2239 = vst.msk [vmem:[%s3230_s5 + $0x5] sm:$0x1] %vm846_vm3, %v1773_v32  ;;  %v1424_v25 = vpop.permute.xlu1 %1423 }
0x1611   :  { %2228 = vst.msk [vmem:[%s3230_s5 + $0x4] sm:$0x1] %vm868_vm4, %v1424_v25 }
0x1612   :  { %2233 = vst.msk [vmem:[%s3230_s5 + $0x4] sm:$0x1] %vm846_vm3, %v1589_v40 }
0x1613   :  { %v1957_v13 = vpop.permute.xlu0 %1956 }
0x1614   :  { %2245 = vst.msk [vmem:[%s3230_s5 + $0x6] sm:$0x1] %vm846_vm3, %v1957_v13  ;;  %v1609_v42 = vpop.permute.xlu1 %1608 }
0x1615   :  { %2234 = vst.msk [vmem:[%s3230_s5 + $0x3] sm:$0x1] %vm868_vm4, %v1609_v42 }
0x1618   :  { %v1793_v9 = vpop.permute.xlu1 %1792 }
0x1619   :  { %2240 = vst.msk [vmem:[%s3230_s5 + $0x2] sm:$0x1] %vm868_vm4, %v1793_v9 }
0x161c   :  { %v1977_v43 = vpop.permute.xlu1 %1976 }
0x161d   :  { %2246 = vst.msk [vmem:[%s3230_s5 + $0x1] sm:$0x1] %vm868_vm4, %v1977_v43 }
0x1672   :  { %v2141_v44 = vpop.permute.xlu0 %2140 }
0x1673   :  { %2251 = vst.msk [vmem:[%s3230_s5 + $0x7] sm:$0x1] %vm846_vm3, %v2141_v44 }
0x167b   :  { %v2161_v46 = vpop.permute.xlu1 %2160 }
0x167c   :  { %2163 = vst.msk [vmem:[%s3230_s5] sm:$0x1] %vm868_vm4, %v2161_v46 }
0x167d   :  { %2168 = vsyncpa [#allocation4], 1 }
0x167e   :  { %2169 = vsyncpa [#allocation6], 1 }
0x167f   :  { %2170 = vsyncpa [#allocation9], 1 }

</bundles_post_ra>
